<compile_context>
chip_gen: v5e
topology: v5e:2x2
jax: 0.10.0
libtpu: 0.0.40
codegen_flags: <defaults>
</compile_context>

<pallas_src>
import functools

import numpy as np
import jax
import jax.numpy as jnp
from jax.experimental import pallas as pl
from jax.experimental.pallas import tpu as pltpu

LANE = 128
_VMEM = pl.BlockSpec(memory_space=pltpu.MemorySpace.VMEM)


def _ru(x, m):
    return ((x + m - 1) // m) * m


# ---------------------------------------------------------------------------
# Fused LeNet kernel (single invocation, everything VMEM-resident)
# ---------------------------------------------------------------------------
def _lenet_kernel(a1q_ref, w1_ref, b1_ref,
                  s2_ref, w2_ref, b2_ref,
                  h3_ref, t4_ref,
                  fw1_ref, fb1_ref, fw2_ref, fb2_ref, fw3_ref, fb3_ref,
                  out_ref):
    f32 = jnp.float32

    def mm(a, b):
        return jnp.dot(a, b, preferred_element_type=f32)

    # --- conv1 + bias + ReLU, one matmul per 2x2 pooling offset, then max -----
    w1 = w1_ref[...]
    b1 = b1_ref[...]
    p1 = jnp.maximum(mm(a1q_ref[0], w1) + b1, 0.0)
    for q in range(1, 4):
        p1 = jnp.maximum(p1, jnp.maximum(mm(a1q_ref[q], w1) + b1, 0.0))
    # p1: (M1P, 128) rows = (n, ph, pw) of pool1 output, lanes = conv1 channels.

    # --- conv2: sum over the 5x5 taps. Each tap gathers the needed pooled rows
    #     with a constant 0/1 selection matmul, then contracts (Cin -> Cout). ---
    nk = s2_ref.shape[0]
    acc = mm(mm(s2_ref[0], p1), w2_ref[0])
    for k in range(1, nk):
        acc = acc + mm(mm(s2_ref[k], p1), w2_ref[k])
    y2 = jnp.maximum(acc + b2_ref[...], 0.0)          # (M2P, 128)

    # --- pool2: max over the four 2x2 offsets (row-selection matmuls) ---------
    p2 = mm(h3_ref[0], y2)
    for j in range(1, 4):
        p2 = jnp.maximum(p2, mm(h3_ref[j], y2))       # (M3P, 128)

    # --- fc1: contract per pooled spatial position (fw1 rows pre-permuted) ----
    nsp = t4_ref.shape[0]
    z = mm(mm(t4_ref[0], p2), fw1_ref[0])
    for p in range(1, nsp):
        z = z + mm(mm(t4_ref[p], p2), fw1_ref[p])
    z = jnp.maximum(z + fb1_ref[...], 0.0)            # (NP, 128)

    # --- fc2 + ReLU, fc3 (logits) ---------------------------------------------
    z = jnp.maximum(mm(z, fw2_ref[...]) + fb2_ref[...], 0.0)
    out_ref[...] = (mm(z, fw3_ref[...]) + fb3_ref[...]).astype(out_ref.dtype)


# ---------------------------------------------------------------------------
# One-time parameter / constant preparation (padding, permutation, selections)
# ---------------------------------------------------------------------------
def prepare_params(params, *, batch, in_channels, img_size, num_classes):
    w1, b1, w2, b2, fw1, fb1, fw2, fb2, fw3, fb3 = params
    KH = KW = 5
    C1, C2, F1, F2 = 6, 16, 120, 84
    N = batch
    H1o = img_size - KH + 1          # conv1 spatial out
    P1s = H1o // 2                   # pool1 spatial out
    H2o = P1s - KH + 1               # conv2 spatial out
    P2s = H2o // 2                   # pool2 spatial out

    M1P = _ru(N * P1s * P1s, LANE)   # rows of pool1 activation (also a lane dim)
    M2P = _ru(N * H2o * H2o, 8)
    M3P = _ru(N * P2s * P2s, 8)
    NP = _ru(N, 8)
    K1 = KH * KW * in_channels
    K1P = _ru(K1, LANE)

    f32 = jnp.float32
    # conv1 weight rows ordered (kh, kw, cin) to match the wrapper's im2col.
    w1p = jnp.zeros((K1P, LANE), f32).at[:K1, :C1].set(
        jnp.transpose(w1, (2, 3, 1, 0)).reshape(K1, C1).astype(f32))
    b1p = jnp.zeros((1, LANE), f32).at[0, :C1].set(b1.astype(f32))
    # conv2 weights stacked per tap k = kh*KW + kw: (k, cin, cout), zero padded.
    w2s = jnp.zeros((KH * KW, LANE, LANE), f32).at[:, :C1, :C2].set(
        jnp.transpose(w2, (2, 3, 1, 0)).reshape(KH * KW, C1, C2).astype(f32))
    b2p = jnp.zeros((1, LANE), f32).at[0, :C2].set(b2.astype(f32))
    # fc1 weight: PyTorch flatten order is (c, ph, pw); re-permute rows to the
    # kernel's (spatial p, channel c) layout so no activation transpose is needed.
    fw1s = jnp.zeros((P2s * P2s, LANE, LANE), f32).at[:, :C2, :F1].set(
        jnp.transpose(fw1.reshape(F1, C2, P2s * P2s), (2, 1, 0)).astype(f32))
    fb1p = jnp.zeros((1, LANE), f32).at[0, :F1].set(fb1.astype(f32))
    fw2p = jnp.zeros((LANE, LANE), f32).at[:F1, :F2].set(fw2.T.astype(f32))
    fb2p = jnp.zeros((1, LANE), f32).at[0, :F2].set(fb2.astype(f32))
    fw3p = jnp.zeros((LANE, LANE), f32).at[:F2, :num_classes].set(fw3.T.astype(f32))
    fb3p = jnp.zeros((1, LANE), f32).at[0, :num_classes].set(fb3.astype(f32))

    # Constant 0/1 row-selection matrices (built once on host).
    # conv2 gather: tap k picks pool1 row (n, ho+kh, wo+kw) for output (n, ho, wo).
    s2 = np.zeros((KH * KW, M2P, M1P), np.float32)
    for kh in range(KH):
        for kw in range(KW):
            k = kh * KW + kw
            for n in range(N):
                for ho in range(H2o):
                    for wo in range(H2o):
                        r2 = n * H2o * H2o + ho * H2o + wo
                        r1 = n * P1s * P1s + (ho + kh) * P1s + (wo + kw)
                        s2[k, r2, r1] = 1.0
    # pool2 gather: offset (jh, jw) picks conv2 row (n, 2ph+jh, 2pw+jw).
    h3 = np.zeros((4, M3P, M2P), np.float32)
    for jh in range(2):
        for jw in range(2):
            j = jh * 2 + jw
            for n in range(N):
                for ph in range(P2s):
                    for pw in range(P2s):
                        r3 = n * P2s * P2s + ph * P2s + pw
                        r2 = n * H2o * H2o + (2 * ph + jh) * H2o + (2 * pw + jw)
                        h3[j, r3, r2] = 1.0
    # fc1 per-spatial-position gather: picks pool2 row (n, p) into row n.
    t4 = np.zeros((P2s * P2s, NP, M3P), np.float32)
    for p in range(P2s * P2s):
        for n in range(N):
            t4[p, n, n * P2s * P2s + p] = 1.0

    return dict(w1=w1p, b1=b1p, w2=w2s, b2=b2p,
                fw1=fw1s, fb1=fb1p, fw2=fw2p, fb2=fb2p, fw3=fw3p, fb3=fb3p,
                s2=jnp.asarray(s2), h3=jnp.asarray(h3), t4=jnp.asarray(t4))


# ---------------------------------------------------------------------------
# Forward: tiny trace-time input prep + ONE pallas_call
# ---------------------------------------------------------------------------
@functools.partial(jax.jit, static_argnames=("num_classes",))
def lenet_forward(x_nchw, prep, *, num_classes):
    KH = KW = 5
    N, C, H, _ = x_nchw.shape
    H1o = H - KH + 1
    P1s = H1o // 2
    K1 = KH * KW * C
    M1P = prep["s2"].shape[2]
    K1P = prep["w1"].shape[0]
    NP = prep["t4"].shape[1]

    x = jnp.transpose(x_nchw, (0, 2, 3, 1)).astype(jnp.float32)     # NHWC
    # im2col for conv1, split into the 4 pool-offset quadrants (pool1 is folded
    # into the conv1 epilogue inside the kernel).
    pieces = []
    for kh in range(KH):
        for kw in range(KW):
            pieces.append(x[:, kh:kh + H1o, kw:kw + H1o, :])
    patches = jnp.concatenate(pieces, axis=-1)                      # (N,H1o,H1o,K1)
    quads = []
    for dh in range(2):
        for dw in range(2):
            quads.append(patches[:, dh::2, dw::2, :].reshape(N * P1s * P1s, K1))
    a1q = jnp.stack(quads, axis=0)                                  # (4, N*P1s^2, K1)
    a1q = jnp.pad(a1q, ((0, 0), (0, M1P - N * P1s * P1s), (0, K1P - K1)))

    out = pl.pallas_call(
        _lenet_kernel,
        out_shape=jax.ShapeDtypeStruct((NP, LANE), jnp.float32),
        in_specs=[_VMEM] * 14,
        out_specs=_VMEM,
    )(a1q, prep["w1"], prep["b1"], prep["s2"], prep["w2"], prep["b2"],
      prep["h3"], prep["t4"], prep["fw1"], prep["fb1"],
      prep["fw2"], prep["fb2"], prep["fw3"], prep["fb3"])
    return out[:N, :num_classes]


# ---------------------------------------------------------------------------
# Parameter init (PyTorch-style uniform) and pure-JAX reference
# ---------------------------------------------------------------------------
def init_params(key, in_channels, img_size, num_classes):
    feat = 16 * (img_size // 4 - 3) ** 2

    def u(k, shape, fan_in):
        bound = 1.0 / (fan_in ** 0.5)
        return jax.random.uniform(k, shape, jnp.float32, -bound, bound)

    ks = jax.random.split(key, 10)
    w1 = u(ks[0], (6, in_channels, 5, 5), in_channels * 25)
    b1 = u(ks[1], (6,), in_channels * 25)
    w2 = u(ks[2], (16, 6, 5, 5), 6 * 25)
    b2 = u(ks[3], (16,), 6 * 25)
    fw1 = u(ks[4], (120, feat), feat)
    fb1 = u(ks[5], (120,), feat)
    fw2 = u(ks[6], (84, 120), 120)
    fb2 = u(ks[7], (84,), 120)
    fw3 = u(ks[8], (num_classes, 84), 84)
    fb3 = u(ks[9], (num_classes,), 84)
    return (w1, b1, w2, b2, fw1, fb1, fw2, fb2, fw3, fb3)


def lenet_ref(x_nchw, params):
    (w1, b1, w2, b2, fw1, fb1, fw2, fb2, fw3, fb3) = params
    dn = ('NCHW', 'OIHW', 'NCHW')
    hi = jax.lax.Precision.HIGHEST

    y = jax.lax.conv_general_dilated(x_nchw, w1, (1, 1), 'VALID',
                                     dimension_numbers=dn, precision=hi)
    y = jnp.maximum(y + b1[None, :, None, None], 0.0)
    N, C, H, W = y.shape
    y = y.reshape(N, C, H // 2, 2, W // 2, 2).max(axis=(3, 5))

    y = jax.lax.conv_general_dilated(y, w2, (1, 1), 'VALID',
                                     dimension_numbers=dn, precision=hi)
    y = jnp.maximum(y + b2[None, :, None, None], 0.0)
    N, C, H, W = y.shape
    y = y.reshape(N, C, H // 2, 2, W // 2, 2).max(axis=(3, 5))

    y = y.reshape(N, -1)
    y = jnp.maximum(jnp.dot(y, fw1.T, precision=hi) + fb1, 0.0)
    y = jnp.maximum(jnp.dot(y, fw2.T, precision=hi) + fb2, 0.0)
    return jnp.dot(y, fw3.T, precision=hi) + fb3


# ---------------------------------------------------------------------------
if __name__ == "__main__":
    batch, in_channels, img_size, num_classes = 2, 3, 16, 10

    kx, kp = jax.random.split(jax.random.PRNGKey(0))
    x = jax.random.normal(kx, (batch, in_channels, img_size, img_size), jnp.float32)
    params = init_params(kp, in_channels, img_size, num_classes)

    prep = prepare_params(params, batch=batch, in_channels=in_channels,
                          img_size=img_size, num_classes=num_classes)

    out = jax.block_until_ready(lenet_forward(x, prep, num_classes=num_classes))
    ref = lenet_ref(x, params)

    assert out.shape == (batch, num_classes), out.shape
    assert jnp.allclose(out, ref, atol=5e-2, rtol=5e-2), \
        f"max abs diff {jnp.max(jnp.abs(out - ref))}"
    print("KERNEL_OK")
</pallas_src>

<mosaic_0001>
module attributes {stable_mosaic.version = 11 : i64} {
  func.func @_lenet_kernel(%arg0: memref<4x128x128xf32, #tpu.memory_space<vmem>>, %arg1: memref<128x128xf32, #tpu.memory_space<vmem>>, %arg2: memref<1x128xf32, #tpu.memory_space<vmem>>, %arg3: memref<25x8x128xf32, #tpu.memory_space<vmem>>, %arg4: memref<25x128x128xf32, #tpu.memory_space<vmem>>, %arg5: memref<1x128xf32, #tpu.memory_space<vmem>>, %arg6: memref<4x8x8xf32, #tpu.memory_space<vmem>>, %arg7: memref<1x8x8xf32, #tpu.memory_space<vmem>>, %arg8: memref<1x128x128xf32, #tpu.memory_space<vmem>>, %arg9: memref<1x128xf32, #tpu.memory_space<vmem>>, %arg10: memref<128x128xf32, #tpu.memory_space<vmem>>, %arg11: memref<1x128xf32, #tpu.memory_space<vmem>>, %arg12: memref<128x128xf32, #tpu.memory_space<vmem>>, %arg13: memref<1x128xf32, #tpu.memory_space<vmem>>, %arg14: memref<8x128xf32, #tpu.memory_space<vmem>>) attributes {dimension_semantics = [], scalar_prefetch = 0 : i64, scratch_operands = 0 : i64, tpu.core_type = #tpu.core_type<tc>} {
    %c0 = arith.constant 0 : index
    %c0_0 = arith.constant 0 : index
    %0 = vector.load %arg1[%c0, %c0_0] : memref<128x128xf32, #tpu.memory_space<vmem>>, vector<128x128xf32>
    %c0_1 = arith.constant 0 : index
    %c0_2 = arith.constant 0 : index
    %1 = vector.load %arg2[%c0_1, %c0_2] : memref<1x128xf32, #tpu.memory_space<vmem>>, vector<1x128xf32>
    %c0_3 = arith.constant 0 : index
    %c0_4 = arith.constant 0 : index
    %c0_5 = arith.constant 0 : index
    %2 = vector.load %arg0[%c0_3, %c0_4, %c0_5] : memref<4x128x128xf32, #tpu.memory_space<vmem>>, vector<1x128x128xf32>
    %3 = vector.shape_cast %2 : vector<1x128x128xf32> to vector<128x128xf32>
    %cst = arith.constant dense<0.000000e+00> : vector<128x128xf32>
    %4 = tpu.matmul %3, %0, %cst {dimension_numbers = #tpu.dot_dimension_numbers<[1], [0], [0], [1], [0, 0, 1, 1], [], []>} : vector<128x128xf32>, vector<128x128xf32>, vector<128x128xf32> -> vector<128x128xf32>
    %5 = vector.broadcast %1 : vector<1x128xf32> to vector<128x128xf32>
    %6 = arith.addf %4, %5 : vector<128x128xf32>
    %cst_6 = arith.constant 0.000000e+00 : f32
    %7 = vector.broadcast %cst_6 : f32 to vector<128x128xf32>
    %8 = arith.maximumf %6, %7 : vector<128x128xf32>
    %c1 = arith.constant 1 : index
    %c0_7 = arith.constant 0 : index
    %c0_8 = arith.constant 0 : index
    %9 = vector.load %arg0[%c1, %c0_7, %c0_8] : memref<4x128x128xf32, #tpu.memory_space<vmem>>, vector<1x128x128xf32>
    %10 = vector.shape_cast %9 : vector<1x128x128xf32> to vector<128x128xf32>
    %cst_9 = arith.constant dense<0.000000e+00> : vector<128x128xf32>
    %11 = tpu.matmul %10, %0, %cst_9 {dimension_numbers = #tpu.dot_dimension_numbers<[1], [0], [0], [1], [0, 0, 1, 1], [], []>} : vector<128x128xf32>, vector<128x128xf32>, vector<128x128xf32> -> vector<128x128xf32>
    %12 = vector.broadcast %1 : vector<1x128xf32> to vector<128x128xf32>
    %13 = arith.addf %11, %12 : vector<128x128xf32>
    %cst_10 = arith.constant 0.000000e+00 : f32
    %14 = vector.broadcast %cst_10 : f32 to vector<128x128xf32>
    %15 = arith.maximumf %13, %14 : vector<128x128xf32>
    %16 = arith.maximumf %8, %15 : vector<128x128xf32>
    %c2 = arith.constant 2 : index
    %c0_11 = arith.constant 0 : index
    %c0_12 = arith.constant 0 : index
    %17 = vector.load %arg0[%c2, %c0_11, %c0_12] : memref<4x128x128xf32, #tpu.memory_space<vmem>>, vector<1x128x128xf32>
    %18 = vector.shape_cast %17 : vector<1x128x128xf32> to vector<128x128xf32>
    %cst_13 = arith.constant dense<0.000000e+00> : vector<128x128xf32>
    %19 = tpu.matmul %18, %0, %cst_13 {dimension_numbers = #tpu.dot_dimension_numbers<[1], [0], [0], [1], [0, 0, 1, 1], [], []>} : vector<128x128xf32>, vector<128x128xf32>, vector<128x128xf32> -> vector<128x128xf32>
    %20 = vector.broadcast %1 : vector<1x128xf32> to vector<128x128xf32>
    %21 = arith.addf %19, %20 : vector<128x128xf32>
    %cst_14 = arith.constant 0.000000e+00 : f32
    %22 = vector.broadcast %cst_14 : f32 to vector<128x128xf32>
    %23 = arith.maximumf %21, %22 : vector<128x128xf32>
    %24 = arith.maximumf %16, %23 : vector<128x128xf32>
    %c3 = arith.constant 3 : index
    %c0_15 = arith.constant 0 : index
    %c0_16 = arith.constant 0 : index
    %25 = vector.load %arg0[%c3, %c0_15, %c0_16] : memref<4x128x128xf32, #tpu.memory_space<vmem>>, vector<1x128x128xf32>
    %26 = vector.shape_cast %25 : vector<1x128x128xf32> to vector<128x128xf32>
    %cst_17 = arith.constant dense<0.000000e+00> : vector<128x128xf32>
    %27 = tpu.matmul %26, %0, %cst_17 {dimension_numbers = #tpu.dot_dimension_numbers<[1], [0], [0], [1], [0, 0, 1, 1], [], []>} : vector<128x128xf32>, vector<128x128xf32>, vector<128x128xf32> -> vector<128x128xf32>
    %28 = vector.broadcast %1 : vector<1x128xf32> to vector<128x128xf32>
    %29 = arith.addf %27, %28 : vector<128x128xf32>
    %cst_18 = arith.constant 0.000000e+00 : f32
    %30 = vector.broadcast %cst_18 : f32 to vector<128x128xf32>
    %31 = arith.maximumf %29, %30 : vector<128x128xf32>
    %32 = arith.maximumf %24, %31 : vector<128x128xf32>
    %c0_19 = arith.constant 0 : index
    %c0_20 = arith.constant 0 : index
    %c0_21 = arith.constant 0 : index
    %33 = vector.load %arg3[%c0_19, %c0_20, %c0_21] : memref<25x8x128xf32, #tpu.memory_space<vmem>>, vector<1x8x128xf32>
    %34 = vector.shape_cast %33 : vector<1x8x128xf32> to vector<8x128xf32>
    %cst_22 = arith.constant dense<0.000000e+00> : vector<8x128xf32>
    %35 = tpu.matmul %34, %32, %cst_22 {dimension_numbers = #tpu.dot_dimension_numbers<[1], [0], [0], [1], [0, 0, 1, 1], [], []>} : vector<8x128xf32>, vector<128x128xf32>, vector<8x128xf32> -> vector<8x128xf32>
    %c0_23 = arith.constant 0 : index
    %c0_24 = arith.constant 0 : index
    %c0_25 = arith.constant 0 : index
    %36 = vector.load %arg4[%c0_23, %c0_24, %c0_25] : memref<25x128x128xf32, #tpu.memory_space<vmem>>, vector<1x128x128xf32>
    %37 = vector.shape_cast %36 : vector<1x128x128xf32> to vector<128x128xf32>
    %cst_26 = arith.constant dense<0.000000e+00> : vector<8x128xf32>
    %38 = tpu.matmul %35, %37, %cst_26 {dimension_numbers = #tpu.dot_dimension_numbers<[1], [0], [0], [1], [0, 0, 1, 1], [], []>} : vector<8x128xf32>, vector<128x128xf32>, vector<8x128xf32> -> vector<8x128xf32>
    %c1_27 = arith.constant 1 : index
    %c0_28 = arith.constant 0 : index
    %c0_29 = arith.constant 0 : index
    %39 = vector.load %arg3[%c1_27, %c0_28, %c0_29] : memref<25x8x128xf32, #tpu.memory_space<vmem>>, vector<1x8x128xf32>
    %40 = vector.shape_cast %39 : vector<1x8x128xf32> to vector<8x128xf32>
    %cst_30 = arith.constant dense<0.000000e+00> : vector<8x128xf32>
    %41 = tpu.matmul %40, %32, %cst_30 {dimension_numbers = #tpu.dot_dimension_numbers<[1], [0], [0], [1], [0, 0, 1, 1], [], []>} : vector<8x128xf32>, vector<128x128xf32>, vector<8x128xf32> -> vector<8x128xf32>
    %c1_31 = arith.constant 1 : index
    %c0_32 = arith.constant 0 : index
    %c0_33 = arith.constant 0 : index
    %42 = vector.load %arg4[%c1_31, %c0_32, %c0_33] : memref<25x128x128xf32, #tpu.memory_space<vmem>>, vector<1x128x128xf32>
    %43 = vector.shape_cast %42 : vector<1x128x128xf32> to vector<128x128xf32>
    %cst_34 = arith.constant dense<0.000000e+00> : vector<8x128xf32>
    %44 = tpu.matmul %41, %43, %cst_34 {dimension_numbers = #tpu.dot_dimension_numbers<[1], [0], [0], [1], [0, 0, 1, 1], [], []>} : vector<8x128xf32>, vector<128x128xf32>, vector<8x128xf32> -> vector<8x128xf32>
    %45 = arith.addf %38, %44 : vector<8x128xf32>
    %c2_35 = arith.constant 2 : index
    %c0_36 = arith.constant 0 : index
    %c0_37 = arith.constant 0 : index
    %46 = vector.load %arg3[%c2_35, %c0_36, %c0_37] : memref<25x8x128xf32, #tpu.memory_space<vmem>>, vector<1x8x128xf32>
    %47 = vector.shape_cast %46 : vector<1x8x128xf32> to vector<8x128xf32>
    %cst_38 = arith.constant dense<0.000000e+00> : vector<8x128xf32>
    %48 = tpu.matmul %47, %32, %cst_38 {dimension_numbers = #tpu.dot_dimension_numbers<[1], [0], [0], [1], [0, 0, 1, 1], [], []>} : vector<8x128xf32>, vector<128x128xf32>, vector<8x128xf32> -> vector<8x128xf32>
    %c2_39 = arith.constant 2 : index
    %c0_40 = arith.constant 0 : index
    %c0_41 = arith.constant 0 : index
    %49 = vector.load %arg4[%c2_39, %c0_40, %c0_41] : memref<25x128x128xf32, #tpu.memory_space<vmem>>, vector<1x128x128xf32>
    %50 = vector.shape_cast %49 : vector<1x128x128xf32> to vector<128x128xf32>
    %cst_42 = arith.constant dense<0.000000e+00> : vector<8x128xf32>
    %51 = tpu.matmul %48, %50, %cst_42 {dimension_numbers = #tpu.dot_dimension_numbers<[1], [0], [0], [1], [0, 0, 1, 1], [], []>} : vector<8x128xf32>, vector<128x128xf32>, vector<8x128xf32> -> vector<8x128xf32>
    %52 = arith.addf %45, %51 : vector<8x128xf32>
    %c3_43 = arith.constant 3 : index
    %c0_44 = arith.constant 0 : index
    %c0_45 = arith.constant 0 : index
    %53 = vector.load %arg3[%c3_43, %c0_44, %c0_45] : memref<25x8x128xf32, #tpu.memory_space<vmem>>, vector<1x8x128xf32>
    %54 = vector.shape_cast %53 : vector<1x8x128xf32> to vector<8x128xf32>
    %cst_46 = arith.constant dense<0.000000e+00> : vector<8x128xf32>
    %55 = tpu.matmul %54, %32, %cst_46 {dimension_numbers = #tpu.dot_dimension_numbers<[1], [0], [0], [1], [0, 0, 1, 1], [], []>} : vector<8x128xf32>, vector<128x128xf32>, vector<8x128xf32> -> vector<8x128xf32>
    %c3_47 = arith.constant 3 : index
    %c0_48 = arith.constant 0 : index
    %c0_49 = arith.constant 0 : index
    %56 = vector.load %arg4[%c3_47, %c0_48, %c0_49] : memref<25x128x128xf32, #tpu.memory_space<vmem>>, vector<1x128x128xf32>
    %57 = vector.shape_cast %56 : vector<1x128x128xf32> to vector<128x128xf32>
    %cst_50 = arith.constant dense<0.000000e+00> : vector<8x128xf32>
    %58 = tpu.matmul %55, %57, %cst_50 {dimension_numbers = #tpu.dot_dimension_numbers<[1], [0], [0], [1], [0, 0, 1, 1], [], []>} : vector<8x128xf32>, vector<128x128xf32>, vector<8x128xf32> -> vector<8x128xf32>
    %59 = arith.addf %52, %58 : vector<8x128xf32>
    %c4 = arith.constant 4 : index
    %c0_51 = arith.constant 0 : index
    %c0_52 = arith.constant 0 : index
    %60 = vector.load %arg3[%c4, %c0_51, %c0_52] : memref<25x8x128xf32, #tpu.memory_space<vmem>>, vector<1x8x128xf32>
    %61 = vector.shape_cast %60 : vector<1x8x128xf32> to vector<8x128xf32>
    %cst_53 = arith.constant dense<0.000000e+00> : vector<8x128xf32>
    %62 = tpu.matmul %61, %32, %cst_53 {dimension_numbers = #tpu.dot_dimension_numbers<[1], [0], [0], [1], [0, 0, 1, 1], [], []>} : vector<8x128xf32>, vector<128x128xf32>, vector<8x128xf32> -> vector<8x128xf32>
    %c4_54 = arith.constant 4 : index
    %c0_55 = arith.constant 0 : index
    %c0_56 = arith.constant 0 : index
    %63 = vector.load %arg4[%c4_54, %c0_55, %c0_56] : memref<25x128x128xf32, #tpu.memory_space<vmem>>, vector<1x128x128xf32>
    %64 = vector.shape_cast %63 : vector<1x128x128xf32> to vector<128x128xf32>
    %cst_57 = arith.constant dense<0.000000e+00> : vector<8x128xf32>
    %65 = tpu.matmul %62, %64, %cst_57 {dimension_numbers = #tpu.dot_dimension_numbers<[1], [0], [0], [1], [0, 0, 1, 1], [], []>} : vector<8x128xf32>, vector<128x128xf32>, vector<8x128xf32> -> vector<8x128xf32>
    %66 = arith.addf %59, %65 : vector<8x128xf32>
    %c5 = arith.constant 5 : index
    %c0_58 = arith.constant 0 : index
    %c0_59 = arith.constant 0 : index
    %67 = vector.load %arg3[%c5, %c0_58, %c0_59] : memref<25x8x128xf32, #tpu.memory_space<vmem>>, vector<1x8x128xf32>
    %68 = vector.shape_cast %67 : vector<1x8x128xf32> to vector<8x128xf32>
    %cst_60 = arith.constant dense<0.000000e+00> : vector<8x128xf32>
    %69 = tpu.matmul %68, %32, %cst_60 {dimension_numbers = #tpu.dot_dimension_numbers<[1], [0], [0], [1], [0, 0, 1, 1], [], []>} : vector<8x128xf32>, vector<128x128xf32>, vector<8x128xf32> -> vector<8x128xf32>
    %c5_61 = arith.constant 5 : index
    %c0_62 = arith.constant 0 : index
    %c0_63 = arith.constant 0 : index
    %70 = vector.load %arg4[%c5_61, %c0_62, %c0_63] : memref<25x128x128xf32, #tpu.memory_space<vmem>>, vector<1x128x128xf32>
    %71 = vector.shape_cast %70 : vector<1x128x128xf32> to vector<128x128xf32>
    %cst_64 = arith.constant dense<0.000000e+00> : vector<8x128xf32>
    %72 = tpu.matmul %69, %71, %cst_64 {dimension_numbers = #tpu.dot_dimension_numbers<[1], [0], [0], [1], [0, 0, 1, 1], [], []>} : vector<8x128xf32>, vector<128x128xf32>, vector<8x128xf32> -> vector<8x128xf32>
    %73 = arith.addf %66, %72 : vector<8x128xf32>
    %c6 = arith.constant 6 : index
    %c0_65 = arith.constant 0 : index
    %c0_66 = arith.constant 0 : index
    %74 = vector.load %arg3[%c6, %c0_65, %c0_66] : memref<25x8x128xf32, #tpu.memory_space<vmem>>, vector<1x8x128xf32>
    %75 = vector.shape_cast %74 : vector<1x8x128xf32> to vector<8x128xf32>
    %cst_67 = arith.constant dense<0.000000e+00> : vector<8x128xf32>
    %76 = tpu.matmul %75, %32, %cst_67 {dimension_numbers = #tpu.dot_dimension_numbers<[1], [0], [0], [1], [0, 0, 1, 1], [], []>} : vector<8x128xf32>, vector<128x128xf32>, vector<8x128xf32> -> vector<8x128xf32>
    %c6_68 = arith.constant 6 : index
    %c0_69 = arith.constant 0 : index
    %c0_70 = arith.constant 0 : index
    %77 = vector.load %arg4[%c6_68, %c0_69, %c0_70] : memref<25x128x128xf32, #tpu.memory_space<vmem>>, vector<1x128x128xf32>
    %78 = vector.shape_cast %77 : vector<1x128x128xf32> to vector<128x128xf32>
    %cst_71 = arith.constant dense<0.000000e+00> : vector<8x128xf32>
    %79 = tpu.matmul %76, %78, %cst_71 {dimension_numbers = #tpu.dot_dimension_numbers<[1], [0], [0], [1], [0, 0, 1, 1], [], []>} : vector<8x128xf32>, vector<128x128xf32>, vector<8x128xf32> -> vector<8x128xf32>
    %80 = arith.addf %73, %79 : vector<8x128xf32>
    %c7 = arith.constant 7 : index
    %c0_72 = arith.constant 0 : index
    %c0_73 = arith.constant 0 : index
    %81 = vector.load %arg3[%c7, %c0_72, %c0_73] : memref<25x8x128xf32, #tpu.memory_space<vmem>>, vector<1x8x128xf32>
    %82 = vector.shape_cast %81 : vector<1x8x128xf32> to vector<8x128xf32>
    %cst_74 = arith.constant dense<0.000000e+00> : vector<8x128xf32>
    %83 = tpu.matmul %82, %32, %cst_74 {dimension_numbers = #tpu.dot_dimension_numbers<[1], [0], [0], [1], [0, 0, 1, 1], [], []>} : vector<8x128xf32>, vector<128x128xf32>, vector<8x128xf32> -> vector<8x128xf32>
    %c7_75 = arith.constant 7 : index
    %c0_76 = arith.constant 0 : index
    %c0_77 = arith.constant 0 : index
    %84 = vector.load %arg4[%c7_75, %c0_76, %c0_77] : memref<25x128x128xf32, #tpu.memory_space<vmem>>, vector<1x128x128xf32>
    %85 = vector.shape_cast %84 : vector<1x128x128xf32> to vector<128x128xf32>
    %cst_78 = arith.constant dense<0.000000e+00> : vector<8x128xf32>
    %86 = tpu.matmul %83, %85, %cst_78 {dimension_numbers = #tpu.dot_dimension_numbers<[1], [0], [0], [1], [0, 0, 1, 1], [], []>} : vector<8x128xf32>, vector<128x128xf32>, vector<8x128xf32> -> vector<8x128xf32>
    %87 = arith.addf %80, %86 : vector<8x128xf32>
    %c8 = arith.constant 8 : index
    %c0_79 = arith.constant 0 : index
    %c0_80 = arith.constant 0 : index
    %88 = vector.load %arg3[%c8, %c0_79, %c0_80] : memref<25x8x128xf32, #tpu.memory_space<vmem>>, vector<1x8x128xf32>
    %89 = vector.shape_cast %88 : vector<1x8x128xf32> to vector<8x128xf32>
    %cst_81 = arith.constant dense<0.000000e+00> : vector<8x128xf32>
    %90 = tpu.matmul %89, %32, %cst_81 {dimension_numbers = #tpu.dot_dimension_numbers<[1], [0], [0], [1], [0, 0, 1, 1], [], []>} : vector<8x128xf32>, vector<128x128xf32>, vector<8x128xf32> -> vector<8x128xf32>
    %c8_82 = arith.constant 8 : index
    %c0_83 = arith.constant 0 : index
    %c0_84 = arith.constant 0 : index
    %91 = vector.load %arg4[%c8_82, %c0_83, %c0_84] : memref<25x128x128xf32, #tpu.memory_space<vmem>>, vector<1x128x128xf32>
    %92 = vector.shape_cast %91 : vector<1x128x128xf32> to vector<128x128xf32>
    %cst_85 = arith.constant dense<0.000000e+00> : vector<8x128xf32>
    %93 = tpu.matmul %90, %92, %cst_85 {dimension_numbers = #tpu.dot_dimension_numbers<[1], [0], [0], [1], [0, 0, 1, 1], [], []>} : vector<8x128xf32>, vector<128x128xf32>, vector<8x128xf32> -> vector<8x128xf32>
    %94 = arith.addf %87, %93 : vector<8x128xf32>
    %c9 = arith.constant 9 : index
    %c0_86 = arith.constant 0 : index
    %c0_87 = arith.constant 0 : index
    %95 = vector.load %arg3[%c9, %c0_86, %c0_87] : memref<25x8x128xf32, #tpu.memory_space<vmem>>, vector<1x8x128xf32>
    %96 = vector.shape_cast %95 : vector<1x8x128xf32> to vector<8x128xf32>
    %cst_88 = arith.constant dense<0.000000e+00> : vector<8x128xf32>
    %97 = tpu.matmul %96, %32, %cst_88 {dimension_numbers = #tpu.dot_dimension_numbers<[1], [0], [0], [1], [0, 0, 1, 1], [], []>} : vector<8x128xf32>, vector<128x128xf32>, vector<8x128xf32> -> vector<8x128xf32>
    %c9_89 = arith.constant 9 : index
    %c0_90 = arith.constant 0 : index
    %c0_91 = arith.constant 0 : index
    %98 = vector.load %arg4[%c9_89, %c0_90, %c0_91] : memref<25x128x128xf32, #tpu.memory_space<vmem>>, vector<1x128x128xf32>
    %99 = vector.shape_cast %98 : vector<1x128x128xf32> to vector<128x128xf32>
    %cst_92 = arith.constant dense<0.000000e+00> : vector<8x128xf32>
    %100 = tpu.matmul %97, %99, %cst_92 {dimension_numbers = #tpu.dot_dimension_numbers<[1], [0], [0], [1], [0, 0, 1, 1], [], []>} : vector<8x128xf32>, vector<128x128xf32>, vector<8x128xf32> -> vector<8x128xf32>
    %101 = arith.addf %94, %100 : vector<8x128xf32>
    %c10 = arith.constant 10 : index
    %c0_93 = arith.constant 0 : index
    %c0_94 = arith.constant 0 : index
    %102 = vector.load %arg3[%c10, %c0_93, %c0_94] : memref<25x8x128xf32, #tpu.memory_space<vmem>>, vector<1x8x128xf32>
    %103 = vector.shape_cast %102 : vector<1x8x128xf32> to vector<8x128xf32>
    %cst_95 = arith.constant dense<0.000000e+00> : vector<8x128xf32>
    %104 = tpu.matmul %103, %32, %cst_95 {dimension_numbers = #tpu.dot_dimension_numbers<[1], [0], [0], [1], [0, 0, 1, 1], [], []>} : vector<8x128xf32>, vector<128x128xf32>, vector<8x128xf32> -> vector<8x128xf32>
    %c10_96 = arith.constant 10 : index
    %c0_97 = arith.constant 0 : index
    %c0_98 = arith.constant 0 : index
    %105 = vector.load %arg4[%c10_96, %c0_97, %c0_98] : memref<25x128x128xf32, #tpu.memory_space<vmem>>, vector<1x128x128xf32>
    %106 = vector.shape_cast %105 : vector<1x128x128xf32> to vector<128x128xf32>
    %cst_99 = arith.constant dense<0.000000e+00> : vector<8x128xf32>
    %107 = tpu.matmul %104, %106, %cst_99 {dimension_numbers = #tpu.dot_dimension_numbers<[1], [0], [0], [1], [0, 0, 1, 1], [], []>} : vector<8x128xf32>, vector<128x128xf32>, vector<8x128xf32> -> vector<8x128xf32>
    %108 = arith.addf %101, %107 : vector<8x128xf32>
    %c11 = arith.constant 11 : index
    %c0_100 = arith.constant 0 : index
    %c0_101 = arith.constant 0 : index
    %109 = vector.load %arg3[%c11, %c0_100, %c0_101] : memref<25x8x128xf32, #tpu.memory_space<vmem>>, vector<1x8x128xf32>
    %110 = vector.shape_cast %109 : vector<1x8x128xf32> to vector<8x128xf32>
    %cst_102 = arith.constant dense<0.000000e+00> : vector<8x128xf32>
    %111 = tpu.matmul %110, %32, %cst_102 {dimension_numbers = #tpu.dot_dimension_numbers<[1], [0], [0], [1], [0, 0, 1, 1], [], []>} : vector<8x128xf32>, vector<128x128xf32>, vector<8x128xf32> -> vector<8x128xf32>
    %c11_103 = arith.constant 11 : index
    %c0_104 = arith.constant 0 : index
    %c0_105 = arith.constant 0 : index
    %112 = vector.load %arg4[%c11_103, %c0_104, %c0_105] : memref<25x128x128xf32, #tpu.memory_space<vmem>>, vector<1x128x128xf32>
    %113 = vector.shape_cast %112 : vector<1x128x128xf32> to vector<128x128xf32>
    %cst_106 = arith.constant dense<0.000000e+00> : vector<8x128xf32>
    %114 = tpu.matmul %111, %113, %cst_106 {dimension_numbers = #tpu.dot_dimension_numbers<[1], [0], [0], [1], [0, 0, 1, 1], [], []>} : vector<8x128xf32>, vector<128x128xf32>, vector<8x128xf32> -> vector<8x128xf32>
    %115 = arith.addf %108, %114 : vector<8x128xf32>
    %c12 = arith.constant 12 : index
    %c0_107 = arith.constant 0 : index
    %c0_108 = arith.constant 0 : index
    %116 = vector.load %arg3[%c12, %c0_107, %c0_108] : memref<25x8x128xf32, #tpu.memory_space<vmem>>, vector<1x8x128xf32>
    %117 = vector.shape_cast %116 : vector<1x8x128xf32> to vector<8x128xf32>
    %cst_109 = arith.constant dense<0.000000e+00> : vector<8x128xf32>
    %118 = tpu.matmul %117, %32, %cst_109 {dimension_numbers = #tpu.dot_dimension_numbers<[1], [0], [0], [1], [0, 0, 1, 1], [], []>} : vector<8x128xf32>, vector<128x128xf32>, vector<8x128xf32> -> vector<8x128xf32>
    %c12_110 = arith.constant 12 : index
    %c0_111 = arith.constant 0 : index
    %c0_112 = arith.constant 0 : index
    %119 = vector.load %arg4[%c12_110, %c0_111, %c0_112] : memref<25x128x128xf32, #tpu.memory_space<vmem>>, vector<1x128x128xf32>
    %120 = vector.shape_cast %119 : vector<1x128x128xf32> to vector<128x128xf32>
    %cst_113 = arith.constant dense<0.000000e+00> : vector<8x128xf32>
    %121 = tpu.matmul %118, %120, %cst_113 {dimension_numbers = #tpu.dot_dimension_numbers<[1], [0], [0], [1], [0, 0, 1, 1], [], []>} : vector<8x128xf32>, vector<128x128xf32>, vector<8x128xf32> -> vector<8x128xf32>
    %122 = arith.addf %115, %121 : vector<8x128xf32>
    %c13 = arith.constant 13 : index
    %c0_114 = arith.constant 0 : index
    %c0_115 = arith.constant 0 : index
    %123 = vector.load %arg3[%c13, %c0_114, %c0_115] : memref<25x8x128xf32, #tpu.memory_space<vmem>>, vector<1x8x128xf32>
    %124 = vector.shape_cast %123 : vector<1x8x128xf32> to vector<8x128xf32>
    %cst_116 = arith.constant dense<0.000000e+00> : vector<8x128xf32>
    %125 = tpu.matmul %124, %32, %cst_116 {dimension_numbers = #tpu.dot_dimension_numbers<[1], [0], [0], [1], [0, 0, 1, 1], [], []>} : vector<8x128xf32>, vector<128x128xf32>, vector<8x128xf32> -> vector<8x128xf32>
    %c13_117 = arith.constant 13 : index
    %c0_118 = arith.constant 0 : index
    %c0_119 = arith.constant 0 : index
    %126 = vector.load %arg4[%c13_117, %c0_118, %c0_119] : memref<25x128x128xf32, #tpu.memory_space<vmem>>, vector<1x128x128xf32>
    %127 = vector.shape_cast %126 : vector<1x128x128xf32> to vector<128x128xf32>
    %cst_120 = arith.constant dense<0.000000e+00> : vector<8x128xf32>
    %128 = tpu.matmul %125, %127, %cst_120 {dimension_numbers = #tpu.dot_dimension_numbers<[1], [0], [0], [1], [0, 0, 1, 1], [], []>} : vector<8x128xf32>, vector<128x128xf32>, vector<8x128xf32> -> vector<8x128xf32>
    %129 = arith.addf %122, %128 : vector<8x128xf32>
    %c14 = arith.constant 14 : index
    %c0_121 = arith.constant 0 : index
    %c0_122 = arith.constant 0 : index
    %130 = vector.load %arg3[%c14, %c0_121, %c0_122] : memref<25x8x128xf32, #tpu.memory_space<vmem>>, vector<1x8x128xf32>
    %131 = vector.shape_cast %130 : vector<1x8x128xf32> to vector<8x128xf32>
    %cst_123 = arith.constant dense<0.000000e+00> : vector<8x128xf32>
    %132 = tpu.matmul %131, %32, %cst_123 {dimension_numbers = #tpu.dot_dimension_numbers<[1], [0], [0], [1], [0, 0, 1, 1], [], []>} : vector<8x128xf32>, vector<128x128xf32>, vector<8x128xf32> -> vector<8x128xf32>
    %c14_124 = arith.constant 14 : index
    %c0_125 = arith.constant 0 : index
    %c0_126 = arith.constant 0 : index
    %133 = vector.load %arg4[%c14_124, %c0_125, %c0_126] : memref<25x128x128xf32, #tpu.memory_space<vmem>>, vector<1x128x128xf32>
    %134 = vector.shape_cast %133 : vector<1x128x128xf32> to vector<128x128xf32>
    %cst_127 = arith.constant dense<0.000000e+00> : vector<8x128xf32>
    %135 = tpu.matmul %132, %134, %cst_127 {dimension_numbers = #tpu.dot_dimension_numbers<[1], [0], [0], [1], [0, 0, 1, 1], [], []>} : vector<8x128xf32>, vector<128x128xf32>, vector<8x128xf32> -> vector<8x128xf32>
    %136 = arith.addf %129, %135 : vector<8x128xf32>
    %c15 = arith.constant 15 : index
    %c0_128 = arith.constant 0 : index
    %c0_129 = arith.constant 0 : index
    %137 = vector.load %arg3[%c15, %c0_128, %c0_129] : memref<25x8x128xf32, #tpu.memory_space<vmem>>, vector<1x8x128xf32>
    %138 = vector.shape_cast %137 : vector<1x8x128xf32> to vector<8x128xf32>
    %cst_130 = arith.constant dense<0.000000e+00> : vector<8x128xf32>
    %139 = tpu.matmul %138, %32, %cst_130 {dimension_numbers = #tpu.dot_dimension_numbers<[1], [0], [0], [1], [0, 0, 1, 1], [], []>} : vector<8x128xf32>, vector<128x128xf32>, vector<8x128xf32> -> vector<8x128xf32>
    %c15_131 = arith.constant 15 : index
    %c0_132 = arith.constant 0 : index
    %c0_133 = arith.constant 0 : index
    %140 = vector.load %arg4[%c15_131, %c0_132, %c0_133] : memref<25x128x128xf32, #tpu.memory_space<vmem>>, vector<1x128x128xf32>
    %141 = vector.shape_cast %140 : vector<1x128x128xf32> to vector<128x128xf32>
    %cst_134 = arith.constant dense<0.000000e+00> : vector<8x128xf32>
    %142 = tpu.matmul %139, %141, %cst_134 {dimension_numbers = #tpu.dot_dimension_numbers<[1], [0], [0], [1], [0, 0, 1, 1], [], []>} : vector<8x128xf32>, vector<128x128xf32>, vector<8x128xf32> -> vector<8x128xf32>
    %143 = arith.addf %136, %142 : vector<8x128xf32>
    %c16 = arith.constant 16 : index
    %c0_135 = arith.constant 0 : index
    %c0_136 = arith.constant 0 : index
    %144 = vector.load %arg3[%c16, %c0_135, %c0_136] : memref<25x8x128xf32, #tpu.memory_space<vmem>>, vector<1x8x128xf32>
    %145 = vector.shape_cast %144 : vector<1x8x128xf32> to vector<8x128xf32>
    %cst_137 = arith.constant dense<0.000000e+00> : vector<8x128xf32>
    %146 = tpu.matmul %145, %32, %cst_137 {dimension_numbers = #tpu.dot_dimension_numbers<[1], [0], [0], [1], [0, 0, 1, 1], [], []>} : vector<8x128xf32>, vector<128x128xf32>, vector<8x128xf32> -> vector<8x128xf32>
    %c16_138 = arith.constant 16 : index
    %c0_139 = arith.constant 0 : index
    %c0_140 = arith.constant 0 : index
    %147 = vector.load %arg4[%c16_138, %c0_139, %c0_140] : memref<25x128x128xf32, #tpu.memory_space<vmem>>, vector<1x128x128xf32>
    %148 = vector.shape_cast %147 : vector<1x128x128xf32> to vector<128x128xf32>
    %cst_141 = arith.constant dense<0.000000e+00> : vector<8x128xf32>
    %149 = tpu.matmul %146, %148, %cst_141 {dimension_numbers = #tpu.dot_dimension_numbers<[1], [0], [0], [1], [0, 0, 1, 1], [], []>} : vector<8x128xf32>, vector<128x128xf32>, vector<8x128xf32> -> vector<8x128xf32>
    %150 = arith.addf %143, %149 : vector<8x128xf32>
    %c17 = arith.constant 17 : index
    %c0_142 = arith.constant 0 : index
    %c0_143 = arith.constant 0 : index
    %151 = vector.load %arg3[%c17, %c0_142, %c0_143] : memref<25x8x128xf32, #tpu.memory_space<vmem>>, vector<1x8x128xf32>
    %152 = vector.shape_cast %151 : vector<1x8x128xf32> to vector<8x128xf32>
    %cst_144 = arith.constant dense<0.000000e+00> : vector<8x128xf32>
    %153 = tpu.matmul %152, %32, %cst_144 {dimension_numbers = #tpu.dot_dimension_numbers<[1], [0], [0], [1], [0, 0, 1, 1], [], []>} : vector<8x128xf32>, vector<128x128xf32>, vector<8x128xf32> -> vector<8x128xf32>
    %c17_145 = arith.constant 17 : index
    %c0_146 = arith.constant 0 : index
    %c0_147 = arith.constant 0 : index
    %154 = vector.load %arg4[%c17_145, %c0_146, %c0_147] : memref<25x128x128xf32, #tpu.memory_space<vmem>>, vector<1x128x128xf32>
    %155 = vector.shape_cast %154 : vector<1x128x128xf32> to vector<128x128xf32>
    %cst_148 = arith.constant dense<0.000000e+00> : vector<8x128xf32>
    %156 = tpu.matmul %153, %155, %cst_148 {dimension_numbers = #tpu.dot_dimension_numbers<[1], [0], [0], [1], [0, 0, 1, 1], [], []>} : vector<8x128xf32>, vector<128x128xf32>, vector<8x128xf32> -> vector<8x128xf32>
    %157 = arith.addf %150, %156 : vector<8x128xf32>
    %c18 = arith.constant 18 : index
    %c0_149 = arith.constant 0 : index
    %c0_150 = arith.constant 0 : index
    %158 = vector.load %arg3[%c18, %c0_149, %c0_150] : memref<25x8x128xf32, #tpu.memory_space<vmem>>, vector<1x8x128xf32>
    %159 = vector.shape_cast %158 : vector<1x8x128xf32> to vector<8x128xf32>
    %cst_151 = arith.constant dense<0.000000e+00> : vector<8x128xf32>
    %160 = tpu.matmul %159, %32, %cst_151 {dimension_numbers = #tpu.dot_dimension_numbers<[1], [0], [0], [1], [0, 0, 1, 1], [], []>} : vector<8x128xf32>, vector<128x128xf32>, vector<8x128xf32> -> vector<8x128xf32>
    %c18_152 = arith.constant 18 : index
    %c0_153 = arith.constant 0 : index
    %c0_154 = arith.constant 0 : index
    %161 = vector.load %arg4[%c18_152, %c0_153, %c0_154] : memref<25x128x128xf32, #tpu.memory_space<vmem>>, vector<1x128x128xf32>
    %162 = vector.shape_cast %161 : vector<1x128x128xf32> to vector<128x128xf32>
    %cst_155 = arith.constant dense<0.000000e+00> : vector<8x128xf32>
    %163 = tpu.matmul %160, %162, %cst_155 {dimension_numbers = #tpu.dot_dimension_numbers<[1], [0], [0], [1], [0, 0, 1, 1], [], []>} : vector<8x128xf32>, vector<128x128xf32>, vector<8x128xf32> -> vector<8x128xf32>
    %164 = arith.addf %157, %163 : vector<8x128xf32>
    %c19 = arith.constant 19 : index
    %c0_156 = arith.constant 0 : index
    %c0_157 = arith.constant 0 : index
    %165 = vector.load %arg3[%c19, %c0_156, %c0_157] : memref<25x8x128xf32, #tpu.memory_space<vmem>>, vector<1x8x128xf32>
    %166 = vector.shape_cast %165 : vector<1x8x128xf32> to vector<8x128xf32>
    %cst_158 = arith.constant dense<0.000000e+00> : vector<8x128xf32>
    %167 = tpu.matmul %166, %32, %cst_158 {dimension_numbers = #tpu.dot_dimension_numbers<[1], [0], [0], [1], [0, 0, 1, 1], [], []>} : vector<8x128xf32>, vector<128x128xf32>, vector<8x128xf32> -> vector<8x128xf32>
    %c19_159 = arith.constant 19 : index
    %c0_160 = arith.constant 0 : index
    %c0_161 = arith.constant 0 : index
    %168 = vector.load %arg4[%c19_159, %c0_160, %c0_161] : memref<25x128x128xf32, #tpu.memory_space<vmem>>, vector<1x128x128xf32>
    %169 = vector.shape_cast %168 : vector<1x128x128xf32> to vector<128x128xf32>
    %cst_162 = arith.constant dense<0.000000e+00> : vector<8x128xf32>
    %170 = tpu.matmul %167, %169, %cst_162 {dimension_numbers = #tpu.dot_dimension_numbers<[1], [0], [0], [1], [0, 0, 1, 1], [], []>} : vector<8x128xf32>, vector<128x128xf32>, vector<8x128xf32> -> vector<8x128xf32>
    %171 = arith.addf %164, %170 : vector<8x128xf32>
    %c20 = arith.constant 20 : index
    %c0_163 = arith.constant 0 : index
    %c0_164 = arith.constant 0 : index
    %172 = vector.load %arg3[%c20, %c0_163, %c0_164] : memref<25x8x128xf32, #tpu.memory_space<vmem>>, vector<1x8x128xf32>
    %173 = vector.shape_cast %172 : vector<1x8x128xf32> to vector<8x128xf32>
    %cst_165 = arith.constant dense<0.000000e+00> : vector<8x128xf32>
    %174 = tpu.matmul %173, %32, %cst_165 {dimension_numbers = #tpu.dot_dimension_numbers<[1], [0], [0], [1], [0, 0, 1, 1], [], []>} : vector<8x128xf32>, vector<128x128xf32>, vector<8x128xf32> -> vector<8x128xf32>
    %c20_166 = arith.constant 20 : index
    %c0_167 = arith.constant 0 : index
    %c0_168 = arith.constant 0 : index
    %175 = vector.load %arg4[%c20_166, %c0_167, %c0_168] : memref<25x128x128xf32, #tpu.memory_space<vmem>>, vector<1x128x128xf32>
    %176 = vector.shape_cast %175 : vector<1x128x128xf32> to vector<128x128xf32>
    %cst_169 = arith.constant dense<0.000000e+00> : vector<8x128xf32>
    %177 = tpu.matmul %174, %176, %cst_169 {dimension_numbers = #tpu.dot_dimension_numbers<[1], [0], [0], [1], [0, 0, 1, 1], [], []>} : vector<8x128xf32>, vector<128x128xf32>, vector<8x128xf32> -> vector<8x128xf32>
    %178 = arith.addf %171, %177 : vector<8x128xf32>
    %c21 = arith.constant 21 : index
    %c0_170 = arith.constant 0 : index
    %c0_171 = arith.constant 0 : index
    %179 = vector.load %arg3[%c21, %c0_170, %c0_171] : memref<25x8x128xf32, #tpu.memory_space<vmem>>, vector<1x8x128xf32>
    %180 = vector.shape_cast %179 : vector<1x8x128xf32> to vector<8x128xf32>
    %cst_172 = arith.constant dense<0.000000e+00> : vector<8x128xf32>
    %181 = tpu.matmul %180, %32, %cst_172 {dimension_numbers = #tpu.dot_dimension_numbers<[1], [0], [0], [1], [0, 0, 1, 1], [], []>} : vector<8x128xf32>, vector<128x128xf32>, vector<8x128xf32> -> vector<8x128xf32>
    %c21_173 = arith.constant 21 : index
    %c0_174 = arith.constant 0 : index
    %c0_175 = arith.constant 0 : index
    %182 = vector.load %arg4[%c21_173, %c0_174, %c0_175] : memref<25x128x128xf32, #tpu.memory_space<vmem>>, vector<1x128x128xf32>
    %183 = vector.shape_cast %182 : vector<1x128x128xf32> to vector<128x128xf32>
    %cst_176 = arith.constant dense<0.000000e+00> : vector<8x128xf32>
    %184 = tpu.matmul %181, %183, %cst_176 {dimension_numbers = #tpu.dot_dimension_numbers<[1], [0], [0], [1], [0, 0, 1, 1], [], []>} : vector<8x128xf32>, vector<128x128xf32>, vector<8x128xf32> -> vector<8x128xf32>
    %185 = arith.addf %178, %184 : vector<8x128xf32>
    %c22 = arith.constant 22 : index
    %c0_177 = arith.constant 0 : index
    %c0_178 = arith.constant 0 : index
    %186 = vector.load %arg3[%c22, %c0_177, %c0_178] : memref<25x8x128xf32, #tpu.memory_space<vmem>>, vector<1x8x128xf32>
    %187 = vector.shape_cast %186 : vector<1x8x128xf32> to vector<8x128xf32>
    %cst_179 = arith.constant dense<0.000000e+00> : vector<8x128xf32>
    %188 = tpu.matmul %187, %32, %cst_179 {dimension_numbers = #tpu.dot_dimension_numbers<[1], [0], [0], [1], [0, 0, 1, 1], [], []>} : vector<8x128xf32>, vector<128x128xf32>, vector<8x128xf32> -> vector<8x128xf32>
    %c22_180 = arith.constant 22 : index
    %c0_181 = arith.constant 0 : index
    %c0_182 = arith.constant 0 : index
    %189 = vector.load %arg4[%c22_180, %c0_181, %c0_182] : memref<25x128x128xf32, #tpu.memory_space<vmem>>, vector<1x128x128xf32>
    %190 = vector.shape_cast %189 : vector<1x128x128xf32> to vector<128x128xf32>
    %cst_183 = arith.constant dense<0.000000e+00> : vector<8x128xf32>
    %191 = tpu.matmul %188, %190, %cst_183 {dimension_numbers = #tpu.dot_dimension_numbers<[1], [0], [0], [1], [0, 0, 1, 1], [], []>} : vector<8x128xf32>, vector<128x128xf32>, vector<8x128xf32> -> vector<8x128xf32>
    %192 = arith.addf %185, %191 : vector<8x128xf32>
    %c23 = arith.constant 23 : index
    %c0_184 = arith.constant 0 : index
    %c0_185 = arith.constant 0 : index
    %193 = vector.load %arg3[%c23, %c0_184, %c0_185] : memref<25x8x128xf32, #tpu.memory_space<vmem>>, vector<1x8x128xf32>
    %194 = vector.shape_cast %193 : vector<1x8x128xf32> to vector<8x128xf32>
    %cst_186 = arith.constant dense<0.000000e+00> : vector<8x128xf32>
    %195 = tpu.matmul %194, %32, %cst_186 {dimension_numbers = #tpu.dot_dimension_numbers<[1], [0], [0], [1], [0, 0, 1, 1], [], []>} : vector<8x128xf32>, vector<128x128xf32>, vector<8x128xf32> -> vector<8x128xf32>
    %c23_187 = arith.constant 23 : index
    %c0_188 = arith.constant 0 : index
    %c0_189 = arith.constant 0 : index
    %196 = vector.load %arg4[%c23_187, %c0_188, %c0_189] : memref<25x128x128xf32, #tpu.memory_space<vmem>>, vector<1x128x128xf32>
    %197 = vector.shape_cast %196 : vector<1x128x128xf32> to vector<128x128xf32>
    %cst_190 = arith.constant dense<0.000000e+00> : vector<8x128xf32>
    %198 = tpu.matmul %195, %197, %cst_190 {dimension_numbers = #tpu.dot_dimension_numbers<[1], [0], [0], [1], [0, 0, 1, 1], [], []>} : vector<8x128xf32>, vector<128x128xf32>, vector<8x128xf32> -> vector<8x128xf32>
    %199 = arith.addf %192, %198 : vector<8x128xf32>
    %c24 = arith.constant 24 : index
    %c0_191 = arith.constant 0 : index
    %c0_192 = arith.constant 0 : index
    %200 = vector.load %arg3[%c24, %c0_191, %c0_192] : memref<25x8x128xf32, #tpu.memory_space<vmem>>, vector<1x8x128xf32>
    %201 = vector.shape_cast %200 : vector<1x8x128xf32> to vector<8x128xf32>
    %cst_193 = arith.constant dense<0.000000e+00> : vector<8x128xf32>
    %202 = tpu.matmul %201, %32, %cst_193 {dimension_numbers = #tpu.dot_dimension_numbers<[1], [0], [0], [1], [0, 0, 1, 1], [], []>} : vector<8x128xf32>, vector<128x128xf32>, vector<8x128xf32> -> vector<8x128xf32>
    %c24_194 = arith.constant 24 : index
    %c0_195 = arith.constant 0 : index
    %c0_196 = arith.constant 0 : index
    %203 = vector.load %arg4[%c24_194, %c0_195, %c0_196] : memref<25x128x128xf32, #tpu.memory_space<vmem>>, vector<1x128x128xf32>
    %204 = vector.shape_cast %203 : vector<1x128x128xf32> to vector<128x128xf32>
    %cst_197 = arith.constant dense<0.000000e+00> : vector<8x128xf32>
    %205 = tpu.matmul %202, %204, %cst_197 {dimension_numbers = #tpu.dot_dimension_numbers<[1], [0], [0], [1], [0, 0, 1, 1], [], []>} : vector<8x128xf32>, vector<128x128xf32>, vector<8x128xf32> -> vector<8x128xf32>
    %206 = arith.addf %199, %205 : vector<8x128xf32>
    %c0_198 = arith.constant 0 : index
    %c0_199 = arith.constant 0 : index
    %207 = vector.load %arg5[%c0_198, %c0_199] : memref<1x128xf32, #tpu.memory_space<vmem>>, vector<1x128xf32>
    %208 = vector.broadcast %207 : vector<1x128xf32> to vector<8x128xf32>
    %209 = arith.addf %206, %208 : vector<8x128xf32>
    %cst_200 = arith.constant 0.000000e+00 : f32
    %210 = vector.broadcast %cst_200 : f32 to vector<8x128xf32>
    %211 = arith.maximumf %209, %210 : vector<8x128xf32>
    %c0_201 = arith.constant 0 : index
    %c0_202 = arith.constant 0 : index
    %c0_203 = arith.constant 0 : index
    %212 = vector.load %arg6[%c0_201, %c0_202, %c0_203] : memref<4x8x8xf32, #tpu.memory_space<vmem>>, vector<1x8x8xf32>
    %213 = vector.shape_cast %212 : vector<1x8x8xf32> to vector<8x8xf32>
    %cst_204 = arith.constant dense<0.000000e+00> : vector<8x128xf32>
    %214 = tpu.matmul %213, %211, %cst_204 {dimension_numbers = #tpu.dot_dimension_numbers<[1], [0], [0], [1], [0, 0, 1, 1], [], []>} : vector<8x8xf32>, vector<8x128xf32>, vector<8x128xf32> -> vector<8x128xf32>
    %c1_205 = arith.constant 1 : index
    %c0_206 = arith.constant 0 : index
    %c0_207 = arith.constant 0 : index
    %215 = vector.load %arg6[%c1_205, %c0_206, %c0_207] : memref<4x8x8xf32, #tpu.memory_space<vmem>>, vector<1x8x8xf32>
    %216 = vector.shape_cast %215 : vector<1x8x8xf32> to vector<8x8xf32>
    %cst_208 = arith.constant dense<0.000000e+00> : vector<8x128xf32>
    %217 = tpu.matmul %216, %211, %cst_208 {dimension_numbers = #tpu.dot_dimension_numbers<[1], [0], [0], [1], [0, 0, 1, 1], [], []>} : vector<8x8xf32>, vector<8x128xf32>, vector<8x128xf32> -> vector<8x128xf32>
    %218 = arith.maximumf %214, %217 : vector<8x128xf32>
    %c2_209 = arith.constant 2 : index
    %c0_210 = arith.constant 0 : index
    %c0_211 = arith.constant 0 : index
    %219 = vector.load %arg6[%c2_209, %c0_210, %c0_211] : memref<4x8x8xf32, #tpu.memory_space<vmem>>, vector<1x8x8xf32>
    %220 = vector.shape_cast %219 : vector<1x8x8xf32> to vector<8x8xf32>
    %cst_212 = arith.constant dense<0.000000e+00> : vector<8x128xf32>
    %221 = tpu.matmul %220, %211, %cst_212 {dimension_numbers = #tpu.dot_dimension_numbers<[1], [0], [0], [1], [0, 0, 1, 1], [], []>} : vector<8x8xf32>, vector<8x128xf32>, vector<8x128xf32> -> vector<8x128xf32>
    %222 = arith.maximumf %218, %221 : vector<8x128xf32>
    %c3_213 = arith.constant 3 : index
    %c0_214 = arith.constant 0 : index
    %c0_215 = arith.constant 0 : index
    %223 = vector.load %arg6[%c3_213, %c0_214, %c0_215] : memref<4x8x8xf32, #tpu.memory_space<vmem>>, vector<1x8x8xf32>
    %224 = vector.shape_cast %223 : vector<1x8x8xf32> to vector<8x8xf32>
    %cst_216 = arith.constant dense<0.000000e+00> : vector<8x128xf32>
    %225 = tpu.matmul %224, %211, %cst_216 {dimension_numbers = #tpu.dot_dimension_numbers<[1], [0], [0], [1], [0, 0, 1, 1], [], []>} : vector<8x8xf32>, vector<8x128xf32>, vector<8x128xf32> -> vector<8x128xf32>
    %226 = arith.maximumf %222, %225 : vector<8x128xf32>
    %c0_217 = arith.constant 0 : index
    %c0_218 = arith.constant 0 : index
    %c0_219 = arith.constant 0 : index
    %227 = vector.load %arg7[%c0_217, %c0_218, %c0_219] : memref<1x8x8xf32, #tpu.memory_space<vmem>>, vector<1x8x8xf32>
    %228 = vector.shape_cast %227 : vector<1x8x8xf32> to vector<8x8xf32>
    %cst_220 = arith.constant dense<0.000000e+00> : vector<8x128xf32>
    %229 = tpu.matmul %228, %226, %cst_220 {dimension_numbers = #tpu.dot_dimension_numbers<[1], [0], [0], [1], [0, 0, 1, 1], [], []>} : vector<8x8xf32>, vector<8x128xf32>, vector<8x128xf32> -> vector<8x128xf32>
    %c0_221 = arith.constant 0 : index
    %c0_222 = arith.constant 0 : index
    %c0_223 = arith.constant 0 : index
    %230 = vector.load %arg8[%c0_221, %c0_222, %c0_223] : memref<1x128x128xf32, #tpu.memory_space<vmem>>, vector<1x128x128xf32>
    %231 = vector.shape_cast %230 : vector<1x128x128xf32> to vector<128x128xf32>
    %cst_224 = arith.constant dense<0.000000e+00> : vector<8x128xf32>
    %232 = tpu.matmul %229, %231, %cst_224 {dimension_numbers = #tpu.dot_dimension_numbers<[1], [0], [0], [1], [0, 0, 1, 1], [], []>} : vector<8x128xf32>, vector<128x128xf32>, vector<8x128xf32> -> vector<8x128xf32>
    %c0_225 = arith.constant 0 : index
    %c0_226 = arith.constant 0 : index
    %233 = vector.load %arg9[%c0_225, %c0_226] : memref<1x128xf32, #tpu.memory_space<vmem>>, vector<1x128xf32>
    %234 = vector.broadcast %233 : vector<1x128xf32> to vector<8x128xf32>
    %235 = arith.addf %232, %234 : vector<8x128xf32>
    %cst_227 = arith.constant 0.000000e+00 : f32
    %236 = vector.broadcast %cst_227 : f32 to vector<8x128xf32>
    %237 = arith.maximumf %235, %236 : vector<8x128xf32>
    %c0_228 = arith.constant 0 : index
    %c0_229 = arith.constant 0 : index
    %238 = vector.load %arg10[%c0_228, %c0_229] : memref<128x128xf32, #tpu.memory_space<vmem>>, vector<128x128xf32>
    %cst_230 = arith.constant dense<0.000000e+00> : vector<8x128xf32>
    %239 = tpu.matmul %237, %238, %cst_230 {dimension_numbers = #tpu.dot_dimension_numbers<[1], [0], [0], [1], [0, 0, 1, 1], [], []>} : vector<8x128xf32>, vector<128x128xf32>, vector<8x128xf32> -> vector<8x128xf32>
    %c0_231 = arith.constant 0 : index
    %c0_232 = arith.constant 0 : index
    %240 = vector.load %arg11[%c0_231, %c0_232] : memref<1x128xf32, #tpu.memory_space<vmem>>, vector<1x128xf32>
    %241 = vector.broadcast %240 : vector<1x128xf32> to vector<8x128xf32>
    %242 = arith.addf %239, %241 : vector<8x128xf32>
    %cst_233 = arith.constant 0.000000e+00 : f32
    %243 = vector.broadcast %cst_233 : f32 to vector<8x128xf32>
    %244 = arith.maximumf %242, %243 : vector<8x128xf32>
    %c0_234 = arith.constant 0 : index
    %c0_235 = arith.constant 0 : index
    %245 = vector.load %arg12[%c0_234, %c0_235] : memref<128x128xf32, #tpu.memory_space<vmem>>, vector<128x128xf32>
    %cst_236 = arith.constant dense<0.000000e+00> : vector<8x128xf32>
    %246 = tpu.matmul %244, %245, %cst_236 {dimension_numbers = #tpu.dot_dimension_numbers<[1], [0], [0], [1], [0, 0, 1, 1], [], []>} : vector<8x128xf32>, vector<128x128xf32>, vector<8x128xf32> -> vector<8x128xf32>
    %c0_237 = arith.constant 0 : index
    %c0_238 = arith.constant 0 : index
    %247 = vector.load %arg13[%c0_237, %c0_238] : memref<1x128xf32, #tpu.memory_space<vmem>>, vector<1x128xf32>
    %248 = vector.broadcast %247 : vector<1x128xf32> to vector<8x128xf32>
    %249 = arith.addf %246, %248 : vector<8x128xf32>
    %c0_239 = arith.constant 0 : index
    %c0_240 = arith.constant 0 : index
    %250 = vector.load %arg14[%c0_239, %c0_240] : memref<8x128xf32, #tpu.memory_space<vmem>>, vector<8x128xf32>
    tpu.vector_store %arg14[%c0_239, %c0_240], %249 {strides = array<i32>} : memref<8x128xf32, #tpu.memory_space<vmem>>, vector<8x128xf32>,
    return
  }
}

</mosaic_0001>

<bundles_post_ra>
// kernel: lenet_forward.1
= control target key start
LH: loop header
LB: loop body
LE: loop exit
PB: predicated region body
PF: predicated region fallthrough
CT: control target
= control target key end

     0   :  { %vm2009_vm0 = vcmask 64512   ;;  %s5119_s1 = inlined_call_operand.vmem [shape: f32[128,128], index: 1, kind: input, shape index: {}]   ;;  %s5120_s0 = inlined_call_operand.vmem [shape: f32[4,128,128], index: 0, kind: input, shape index: {}]   ;;  %s5121_s2 = inlined_call_operand.vmem [shape: f32[1,128], index: 2, kind: input, shape index: {}]   ;;  %s5122_s4 = inlined_call_operand.vmem [shape: f32[25,128,128], index: 4, kind: input, shape index: {}]   ;;  %s5123_s3 = inlined_call_operand.vmem [shape: f32[25,8,128], index: 3, kind: input, shape index: {}]   ;;  %s5124_s5 = inlined_call_operand.vmem [shape: f32[1,128], index: 5, kind: input, shape index: {}]   ;;  %s5125_s6 = inlined_call_operand.vmem [shape: f32[4,8,8], index: 6, kind: input, shape index: {}]   ;;  %s5126_s8 = inlined_call_operand.vmem [shape: f32[1,128,128], index: 8, kind: input, shape index: {}]   ;;  %s5127_s7 = inlined_call_operand.vmem [shape: f32[1,8,8], index: 7, kind: input, shape index: {}]   ;;  %s5128_s9 = inlined_call_operand.vmem [shape: f32[1,128], index: 9, kind: input, shape index: {}]   ;;  %s5129_s10 = inlined_call_operand.vmem [shape: f32[128,128], index: 10, kind: input, shape index: {}]   ;;  %s5130_s11 = inlined_call_operand.vmem [shape: f32[1,128], index: 11, kind: input, shape index: {}]   ;;  %s5131_s12 = inlined_call_operand.vmem [shape: f32[128,128], index: 12, kind: input, shape index: {}]   ;;  %s5132_s13 = inlined_call_operand.vmem [shape: f32[1,128], index: 13, kind: input, shape index: {}]   ;;  %s5133_s14 = inlined_call_operand.vmem [shape: f32[8,128], index: 14, kind: output, shape index: {}]  }
   0x1   :  { %v62_v0 = vld [vmem:[%s5119_s1 + $0x78] sm:$0xff]  ;;  %v61_v1 = vld [vmem:[%s5119_s1 + $0x70] sm:$0xff]  ;;  %v60_v2 = vld [vmem:[%s5119_s1 + $0x68] sm:$0xff] }
   0x2   :  { %295 = vmatpush.msra.mxu2 %v62_v0  ;;  %409 = vmatpush.msra.mxu3 %v62_v0  ;;  %v59_v3 = vld [vmem:[%s5119_s1 + $0x60] sm:$0xff]  ;;  %v58_v4 = vld [vmem:[%s5119_s1 + $0x58] sm:$0xff]  ;;  %v57_v5 = vld [vmem:[%s5119_s1 + $0x50] sm:$0xff] }
   0x3   :  { %83 = vmatpush.msra.mxu0 %v62_v0  ;;  %181 = vmatpush.msra.mxu1 %v62_v0  ;;  %v56_v6 = vld [vmem:[%s5119_s1 + $0x48] sm:$0xff]  ;;  %v55_v7 = vld [vmem:[%s5119_s1 + $0x40] sm:$0xff]  ;;  %v54_v8 = vld [vmem:[%s5119_s1 + $0x38] sm:$0xff] }
   0x4   :  { %296 = vmatpush.msra.mxu2 %v61_v1  ;;  %410 = vmatpush.msra.mxu3 %v61_v1  ;;  %v53_v9 = vld [vmem:[%s5119_s1 + $0x30] sm:$0xff]  ;;  %v52_v10 = vld [vmem:[%s5119_s1 + $0x28] sm:$0xff]  ;;  %v51_v11 = vld [vmem:[%s5119_s1 + $0x20] sm:$0xff] }
   0x5   :  { %84 = vmatpush.msra.mxu0 %v61_v1  ;;  %182 = vmatpush.msra.mxu1 %v61_v1  ;;  %v50_v12 = vld [vmem:[%s5119_s1 + $0x18] sm:$0xff]  ;;  %v49_v13 = vld [vmem:[%s5119_s1 + $0x10] sm:$0xff]  ;;  %v48_v14 = vld [vmem:[%s5119_s1 + $0x8] sm:$0xff] }
   0x6   :  { %297 = vmatpush.msra.mxu2 %v60_v2  ;;  %411 = vmatpush.msra.mxu3 %v60_v2  ;;  %v47_v15 = vld [vmem:[%s5119_s1] sm:$0xff]  ;;  %v2279_v20 = vld [vmem:[%s5120_s0 + $0x108] sm:$0xff]  ;;  %v2280_v24 = vld [vmem:[%s5120_s0 + $0x110] sm:$0xff] }
   0x7   :  { %85 = vmatpush.msra.mxu0 %v60_v2  ;;  %183 = vmatpush.msra.mxu1 %v60_v2  ;;  %v2278_v16 = vld [vmem:[%s5120_s0 + $0x100] sm:$0xff]  ;;  %v2295_v21 = vld [vmem:[%s5120_s0 + $0x188] sm:$0xff]  ;;  %v2296_v25 = vld [vmem:[%s5120_s0 + $0x190] sm:$0xff] }
   0x8   :  { %298 = vmatpush.msra.mxu2 %v59_v3  ;;  %412 = vmatpush.msra.mxu3 %v59_v3  ;;  %v2294_v17 = vld [vmem:[%s5120_s0 + $0x180] sm:$0xff]  ;;  %v65_v22 = vld [vmem:[%s5120_s0 + $0x8] sm:$0xff]  ;;  %v66_v26 = vld [vmem:[%s5120_s0 + $0x10] sm:$0xff] }
   0x9   :  { %86 = vmatpush.msra.mxu0 %v59_v3  ;;  %184 = vmatpush.msra.mxu1 %v59_v3  ;;  %v64_v18 = vld [vmem:[%s5120_s0] sm:$0xff]  ;;  %v2263_v23 = vld [vmem:[%s5120_s0 + $0x88] sm:$0xff]  ;;  %v2264_v27 = vld [vmem:[%s5120_s0 + $0x90] sm:$0xff] }
   0xa   :  { %299 = vmatpush.msra.mxu2 %v58_v4  ;;  %413 = vmatpush.msra.mxu3 %v58_v4  ;;  %v2262_v19 = vld [vmem:[%s5120_s0 + $0x80] sm:$0xff]  ;;  %v2281_v28 = vld [vmem:[%s5120_s0 + $0x118] sm:$0xff]  ;;  %v2283_v36 = vld [vmem:[%s5120_s0 + $0x128] sm:$0xff] }
   0xb   :  { %87 = vmatpush.msra.mxu0 %v58_v4  ;;  %185 = vmatpush.msra.mxu1 %v58_v4  ;;  %v2297_v29 = vld [vmem:[%s5120_s0 + $0x198] sm:$0xff]  ;;  %v2282_v32 = vld [vmem:[%s5120_s0 + $0x120] sm:$0xff]  ;;  %v2299_v37 = vld [vmem:[%s5120_s0 + $0x1a8] sm:$0xff] }
   0xc   :  { %300 = vmatpush.msra.mxu2 %v57_v5  ;;  %414 = vmatpush.msra.mxu3 %v57_v5  ;;  %v67_v30 = vld [vmem:[%s5120_s0 + $0x18] sm:$0xff]  ;;  %v2298_v33 = vld [vmem:[%s5120_s0 + $0x1a0] sm:$0xff]  ;;  %v69_v38 = vld [vmem:[%s5120_s0 + $0x28] sm:$0xff] }
   0xd   :  { %88 = vmatpush.msra.mxu0 %v57_v5  ;;  %186 = vmatpush.msra.mxu1 %v57_v5  ;;  %v2265_v31 = vld [vmem:[%s5120_s0 + $0x98] sm:$0xff]  ;;  %v68_v34 = vld [vmem:[%s5120_s0 + $0x20] sm:$0xff]  ;;  %v2267_v39 = vld [vmem:[%s5120_s0 + $0xa8] sm:$0xff] }
   0xe   :  { %301 = vmatpush.msra.mxu2 %v56_v6  ;;  %415 = vmatpush.msra.mxu3 %v56_v6  ;;  %v2266_v35 = vld [vmem:[%s5120_s0 + $0xa0] sm:$0xff]  ;;  %v2284_v40 = vld [vmem:[%s5120_s0 + $0x130] sm:$0xff]  ;;  %v2285_v44 = vld [vmem:[%s5120_s0 + $0x138] sm:$0xff] }
   0xf   :  { %89 = vmatpush.msra.mxu0 %v56_v6  ;;  %187 = vmatpush.msra.mxu1 %v56_v6  ;;  %v2300_v41 = vld [vmem:[%s5120_s0 + $0x1b0] sm:$0xff]  ;;  %v2301_v45 = vld [vmem:[%s5120_s0 + $0x1b8] sm:$0xff]  ;;  %v2286_v48 = vld [vmem:[%s5120_s0 + $0x140] sm:$0xff] }
  0x10   :  { %302 = vmatpush.msra.mxu2 %v55_v7  ;;  %416 = vmatpush.msra.mxu3 %v55_v7  ;;  %v70_v42 = vld [vmem:[%s5120_s0 + $0x30] sm:$0xff]  ;;  %v71_v46 = vld [vmem:[%s5120_s0 + $0x38] sm:$0xff]  ;;  %v2302_v49 = vld [vmem:[%s5120_s0 + $0x1c0] sm:$0xff] }
  0x11   :  { %90 = vmatpush.msra.mxu0 %v55_v7  ;;  %188 = vmatpush.msra.mxu1 %v55_v7  ;;  %v2268_v43 = vld [vmem:[%s5120_s0 + $0xb0] sm:$0xff]  ;;  %v2269_v47 = vld [vmem:[%s5120_s0 + $0xb8] sm:$0xff]  ;;  %v72_v50 = vld [vmem:[%s5120_s0 + $0x40] sm:$0xff] }
  0x12   :  { %303 = vmatpush.msra.mxu2 %v54_v8  ;;  %417 = vmatpush.msra.mxu3 %v54_v8  ;;  %v2270_v51 = vld [vmem:[%s5120_s0 + $0xc0] sm:$0xff]  ;;  %v2287_v52 = vld [vmem:[%s5120_s0 + $0x148] sm:$0xff]  ;;  %v2288_v56 = vld [vmem:[%s5120_s0 + $0x150] sm:$0xff] }
  0x13   :  { %91 = vmatpush.msra.mxu0 %v54_v8  ;;  %189 = vmatpush.msra.mxu1 %v54_v8  ;;  %v2303_v53 = vld [vmem:[%s5120_s0 + $0x1c8] sm:$0xff]  ;;  %v2304_v57 = vld [vmem:[%s5120_s0 + $0x1d0] sm:$0xff]  ;;  %v2289_v60 = vld [vmem:[%s5120_s0 + $0x158] sm:$0xff] }
  0x14   :  { %304 = vmatpush.msra.mxu2 %v53_v9  ;;  %418 = vmatpush.msra.mxu3 %v53_v9  ;;  %v73_v54 = vld [vmem:[%s5120_s0 + $0x48] sm:$0xff]  ;;  %v74_v58 = vld [vmem:[%s5120_s0 + $0x50] sm:$0xff]  ;;  %v2305_v61 = vld [vmem:[%s5120_s0 + $0x1d8] sm:$0xff] }
  0x15   :  { %92 = vmatpush.msra.mxu0 %v53_v9  ;;  %190 = vmatpush.msra.mxu1 %v53_v9  ;;  %v2271_v55 = vld [vmem:[%s5120_s0 + $0xc8] sm:$0xff]  ;;  %v2272_v59 = vld [vmem:[%s5120_s0 + $0xd0] sm:$0xff]  ;;  %v75_v62 = vld [vmem:[%s5120_s0 + $0x58] sm:$0xff] }
  0x16   :  { %305 = vmatpush.msra.mxu2 %v52_v10  ;;  %419 = vmatpush.msra.mxu3 %v52_v10  ;;  %v2273_v63 = vld [vmem:[%s5120_s0 + $0xd8] sm:$0xff]  ;;  %v2290_v0 = vld [vmem:[%s5120_s0 + $0x160] sm:$0xff]  ;;  %v2291_v4 = vld [vmem:[%s5120_s0 + $0x168] sm:$0xff] }
  0x17   :  { %93 = vmatpush.msra.mxu0 %v52_v10  ;;  %191 = vmatpush.msra.mxu1 %v52_v10  ;;  %v2306_v1 = vld [vmem:[%s5120_s0 + $0x1e0] sm:$0xff]  ;;  %v2307_v5 = vld [vmem:[%s5120_s0 + $0x1e8] sm:$0xff]  ;;  %v2292_v8 = vld [vmem:[%s5120_s0 + $0x170] sm:$0xff] }
  0x18   :  { %306 = vmatpush.msra.mxu2 %v51_v11  ;;  %420 = vmatpush.msra.mxu3 %v51_v11  ;;  %v76_v2 = vld [vmem:[%s5120_s0 + $0x60] sm:$0xff]  ;;  %v77_v6 = vld [vmem:[%s5120_s0 + $0x68] sm:$0xff]  ;;  %v2308_v9 = vld [vmem:[%s5120_s0 + $0x1f0] sm:$0xff] }
  0x19   :  { %94 = vmatpush.msra.mxu0 %v51_v11  ;;  %192 = vmatpush.msra.mxu1 %v51_v11  ;;  %v2274_v3 = vld [vmem:[%s5120_s0 + $0xe0] sm:$0xff]  ;;  %v2275_v7 = vld [vmem:[%s5120_s0 + $0xe8] sm:$0xff]  ;;  %v78_v10 = vld [vmem:[%s5120_s0 + $0x70] sm:$0xff] }
  0x1a   :  { %307 = vmatpush.msra.mxu2 %v50_v12  ;;  %421 = vmatpush.msra.mxu3 %v50_v12  ;;  %v2276_v11 = vld [vmem:[%s5120_s0 + $0xf0] sm:$0xff] }
  0x1b   :  { %95 = vmatpush.msra.mxu0 %v50_v12  ;;  %193 = vmatpush.msra.mxu1 %v50_v12  ;;  %v2293_v12 = vld [vmem:[%s5120_s0 + $0x178] sm:$0xff] }
  0x1c   :  { %308 = vmatpush.msra.mxu2 %v49_v13  ;;  %422 = vmatpush.msra.mxu3 %v49_v13 }
  0x1d   :  { %96 = vmatpush.msra.mxu0 %v49_v13  ;;  %194 = vmatpush.msra.mxu1 %v49_v13  ;;  %v2309_v13 = vld [vmem:[%s5120_s0 + $0x1f8] sm:$0xff] }
  0x1e   :  { %309 = vmatpush.msra.mxu2 %v48_v14  ;;  %423 = vmatpush.msra.mxu3 %v48_v14 }
  0x1f   :  { %97 = vmatpush.msra.mxu0 %v48_v14  ;;  %195 = vmatpush.msra.mxu1 %v48_v14  ;;  %v79_v14 = vld [vmem:[%s5120_s0 + $0x78] sm:$0xff] }
  0x20   :  { %310 = vmatpush.msra.mxu2 %v47_v15  ;;  %424 = vmatpush.msra.mxu3 %v47_v15 }
  0x21   :  { %311 = vmatmul.f32.vlgmr.msra.gmra.mxu2 %v2278_v16  ;;  %425 = vmatmul.f32.vlgmr.msra.gmra.mxu3 %v2294_v17 }
  0x22   :  { %98 = vmatpush.msra.mxu0 %v47_v15  ;;  %196 = vmatpush.msra.mxu1 %v47_v15  ;;  %v2277_v15 = vld [vmem:[%s5120_s0 + $0xf8] sm:$0xff] }
  0x23   :  { %99 = vmatmul.f32.vlgmr.msra.gmra.mxu0 %v64_v18  ;;  %197 = vmatmul.f32.vlgmr.msra.gmra.mxu1 %v2262_v19 }
  0x29   :  { %314 = vmatmul.f32.gmra.mxu2 %v2279_v20  ;;  %428 = vmatmul.f32.gmra.mxu3 %v2295_v21 }
  0x2b   :  { %102 = vmatmul.f32.gmra.mxu0 %v65_v22  ;;  %200 = vmatmul.f32.gmra.mxu1 %v2263_v23 }
  0x31   :  { %317 = vmatmul.f32.gmra.mxu2 %v2280_v24  ;;  %431 = vmatmul.f32.gmra.mxu3 %v2296_v25 }
  0x33   :  { %105 = vmatmul.f32.gmra.mxu0 %v66_v26  ;;  %203 = vmatmul.f32.gmra.mxu1 %v2264_v27 }
  0x39   :  { %320 = vmatmul.f32.gmra.mxu2 %v2281_v28  ;;  %434 = vmatmul.f32.gmra.mxu3 %v2297_v29 }
  0x3b   :  { %108 = vmatmul.f32.gmra.mxu0 %v67_v30  ;;  %206 = vmatmul.f32.gmra.mxu1 %v2265_v31 }
  0x41   :  { %323 = vmatmul.f32.gmra.mxu2 %v2282_v32  ;;  %437 = vmatmul.f32.gmra.mxu3 %v2298_v33 }
  0x43   :  { %111 = vmatmul.f32.gmra.mxu0 %v68_v34  ;;  %209 = vmatmul.f32.gmra.mxu1 %v2266_v35 }
  0x49   :  { %326 = vmatmul.f32.gmra.mxu2 %v2283_v36  ;;  %440 = vmatmul.f32.gmra.mxu3 %v2299_v37 }
  0x4b   :  { %114 = vmatmul.f32.gmra.mxu0 %v69_v38  ;;  %212 = vmatmul.f32.gmra.mxu1 %v2267_v39 }
  0x51   :  { %329 = vmatmul.f32.gmra.mxu2 %v2284_v40  ;;  %443 = vmatmul.f32.gmra.mxu3 %v2300_v41  ;;  %v3097_v40 = vld [vmem:[%s5121_s2] ss:$0 sm:$0xff] }
  0x53   :  { %117 = vmatmul.f32.gmra.mxu0 %v70_v42  ;;  %215 = vmatmul.f32.gmra.mxu1 %v2268_v43 }
  0x59   :  { %332 = vmatmul.f32.gmra.mxu2 %v2285_v44  ;;  %446 = vmatmul.f32.gmra.mxu3 %v2301_v45 }
  0x5b   :  { %120 = vmatmul.f32.gmra.mxu0 %v71_v46  ;;  %218 = vmatmul.f32.gmra.mxu1 %v2269_v47 }
  0x61   :  { %335 = vmatmul.f32.gmra.mxu2 %v2286_v48  ;;  %449 = vmatmul.f32.gmra.mxu3 %v2302_v49 }
  0x63   :  { %123 = vmatmul.f32.gmra.mxu0 %v72_v50  ;;  %221 = vmatmul.f32.gmra.mxu1 %v2270_v51 }
  0x69   :  { %338 = vmatmul.f32.gmra.mxu2 %v2287_v52  ;;  %452 = vmatmul.f32.gmra.mxu3 %v2303_v53 }
  0x6b   :  { %126 = vmatmul.f32.gmra.mxu0 %v73_v54  ;;  %224 = vmatmul.f32.gmra.mxu1 %v2271_v55 }
  0x71   :  { %341 = vmatmul.f32.gmra.mxu2 %v2288_v56  ;;  %455 = vmatmul.f32.gmra.mxu3 %v2304_v57 }
  0x73   :  { %129 = vmatmul.f32.gmra.mxu0 %v74_v58  ;;  %227 = vmatmul.f32.gmra.mxu1 %v2272_v59 }
  0x79   :  { %344 = vmatmul.f32.gmra.mxu2 %v2289_v60  ;;  %458 = vmatmul.f32.gmra.mxu3 %v2305_v61 }
  0x7b   :  { %132 = vmatmul.f32.gmra.mxu0 %v75_v62  ;;  %230 = vmatmul.f32.gmra.mxu1 %v2273_v63 }
  0x81   :  { %347 = vmatmul.f32.gmra.mxu2 %v2290_v0  ;;  %461 = vmatmul.f32.gmra.mxu3 %v2306_v1 }
  0x83   :  { %135 = vmatmul.f32.gmra.mxu0 %v76_v2  ;;  %233 = vmatmul.f32.gmra.mxu1 %v2274_v3 }
  0x89   :  { %350 = vmatmul.f32.gmra.mxu2 %v2291_v4  ;;  %464 = vmatmul.f32.gmra.mxu3 %v2307_v5 }
  0x8b   :  { %138 = vmatmul.f32.gmra.mxu0 %v77_v6  ;;  %236 = vmatmul.f32.gmra.mxu1 %v2275_v7 }
  0x91   :  { %353 = vmatmul.f32.gmra.mxu2 %v2292_v8  ;;  %467 = vmatmul.f32.gmra.mxu3 %v2308_v9 }
  0x93   :  { %141 = vmatmul.f32.gmra.mxu0 %v78_v10  ;;  %239 = vmatmul.f32.gmra.mxu1 %v2276_v11 }
  0x99   :  { %356 = vmatmul.f32.gmra.mxu2 %v2293_v12  ;;  %470 = vmatmul.f32.gmra.mxu3 %v2309_v13  ;;  %v2326_v12 = vld [vmem:[%s5122_s4 + $0xf8] sm:$0xff] }
  0x9a   :  { %582 = vmatpush.msrb.mxu2 %v2326_v12 }
  0x9b   :  { %144 = vmatmul.f32.gmra.mxu0 %v79_v14  ;;  %242 = vmatmul.f32.gmra.mxu1 %v2277_v15  ;;  %v2325_v15 = vld [vmem:[%s5122_s4 + $0xf0] sm:$0xff] }
  0x9c   :  { %583 = vmatpush.msrb.mxu2 %v2325_v15 }
  0xa0   :  { %v3046_v16 = vpop.f32.mrf.mxu0  ;;  %v3048_v17 = vpop.f32.mrf.mxu1 }
  0xa4   :  { %v3050_v18 = vpop.f32.mrf.mxu2  ;;  %v3052_v19 = vpop.f32.mrf.mxu3 }
  0xa5   :  { %5136 = vst [vmem:[#allocation2_spill] sm:$0xff] %v3050_v18 }
  0xa6   :  { %5137 = vst [vmem:[#allocation3_spill] sm:$0xff] %v3052_v19 }
  0xa8   :  { %v3054_v20 = vpop.f32.mrf.mxu0  ;;  %v3056_v21 = vpop.f32.mrf.mxu1 }
  0xac   :  { %v3058_v22 = vpop.f32.mrf.mxu2  ;;  %v3060_v23 = vpop.f32.mrf.mxu3 }
  0xad   :  { %5138 = vst [vmem:[#allocation4_spill] sm:$0xff] %v3058_v22 }
  0xae   :  { %5139 = vst [vmem:[#allocation5_spill] sm:$0xff] %v3060_v23 }
  0xb0   :  { %v3062_v24 = vpop.f32.mrf.mxu0  ;;  %v3064_v25 = vpop.f32.mrf.mxu1 }
  0xb4   :  { %v3066_v26 = vpop.f32.mrf.mxu2  ;;  %v3068_v27 = vpop.f32.mrf.mxu3 }
  0xb5   :  { %5140 = vst [vmem:[#allocation6_spill] sm:$0xff] %v3068_v27 }
  0xb8   :  { %v3070_v28 = vpop.f32.mrf.mxu0  ;;  %v3072_v29 = vpop.f32.mrf.mxu1 }
  0xbc   :  { %v3074_v30 = vpop.f32.mrf.mxu2  ;;  %v3076_v31 = vpop.f32.mrf.mxu3 }
  0xbd   :  { %5141 = vst [vmem:[#allocation7_spill] sm:$0xff] %v3076_v31 }
  0xc0   :  { %v3078_v32 = vpop.f32.mrf.mxu0  ;;  %v3080_v33 = vpop.f32.mrf.mxu1 }
  0xc4   :  { %v3082_v34 = vpop.f32.mrf.mxu2  ;;  %v3084_v35 = vpop.f32.mrf.mxu3 }
  0xc8   :  { %v3086_v36 = vpop.f32.mrf.mxu0  ;;  %v3088_v37 = vpop.f32.mrf.mxu1 }
  0xcc   :  { %v3090_v38 = vpop.f32.mrf.mxu2  ;;  %v3092_v39 = vpop.f32.mrf.mxu3 }
  0xd0   :  { %v118_v41 = vpop.f32.mrf.mxu0  ;;  %v216_v42 = vpop.f32.mrf.mxu1 }
  0xd1   :  { %v119_v43 = vadd.f32 %v3097_v40, %v118_v41  ;;  %v217_v44 = vadd.f32 %v3097_v40, %v216_v42 }
  0xd3   :  { %v154_v45 = vmax.f32 %v119_v43, 0.0  ;;  %v252_v46 = vmax.f32 %v217_v44, 0.0  ;;  %v2324_v44 = vld [vmem:[%s5122_s4 + $0xe8] sm:$0xff] }
  0xd4   :  { %v3101_v47 = vpop.f32.mrf.mxu2  ;;  %v3103_v48 = vpop.f32.mrf.mxu3  ;;  %584 = vmatpush.msrb.mxu2 %v2324_v44 }
  0xd5   :  { %v3105_v49 = vmax.f32 %v154_v45, %v252_v46  ;;  %v2323_v46 = vld [vmem:[%s5122_s4 + $0xe0] sm:$0xff] }
  0xd6   :  { %585 = vmatpush.msrb.mxu2 %v2323_v46 }
  0xd8   :  { %v121_v50 = vpop.f32.mrf.mxu0  ;;  %v219_v51 = vpop.f32.mrf.mxu1 }
  0xd9   :  { %v122_v52 = vadd.f32 %v3097_v40, %v121_v50  ;;  %v220_v53 = vadd.f32 %v3097_v40, %v219_v51 }
  0xdb   :  { %v155_v54 = vmax.f32 %v122_v52, 0.0  ;;  %v253_v55 = vmax.f32 %v220_v53, 0.0  ;;  %v2322_v52 = vld [vmem:[%s5122_s4 + $0xd8] sm:$0xff]  ;;  %v2321_v53 = vld [vmem:[%s5122_s4 + $0xd0] sm:$0xff] }
  0xdc   :  { %v333_v56 = vpop.f32.mrf.mxu2  ;;  %v447_v57 = vpop.f32.mrf.mxu3  ;;  %586 = vmatpush.msrb.mxu2 %v2322_v52 }
  0xdd   :  { %v269_v58 = vmax.f32 %v155_v54, %v253_v55  ;;  %v334_v59 = vadd.f32 %v3097_v40, %v333_v56  ;;  %v448_v60 = vadd.f32 %v3097_v40, %v447_v57  ;;  %v2320_v56 = vld [vmem:[%s5122_s4 + $0xc8] sm:$0xff]  ;;  %v2319_v57 = vld [vmem:[%s5122_s4 + $0xc0] sm:$0xff] }
  0xde   :  { %587 = vmatpush.msrb.mxu2 %v2321_v53 }
  0xdf   :  { %v367_v61 = vmax.f32 %v334_v59, 0.0  ;;  %v481_v62 = vmax.f32 %v448_v60, 0.0  ;;  %v2318_v60 = vld [vmem:[%s5122_s4 + $0xb8] sm:$0xff] }
  0xe0   :  { %v124_v63 = vpop.f32.mrf.mxu0  ;;  %v222_v0 = vpop.f32.mrf.mxu1  ;;  %588 = vmatpush.msrb.mxu2 %v2320_v56 }
  0xe1   :  { %v383_v1 = vmax.f32 %v269_v58, %v367_v61  ;;  %v125_v2 = vadd.f32 %v3097_v40, %v124_v63  ;;  %v223_v3 = vadd.f32 %v3097_v40, %v222_v0  ;;  %v2317_v61 = vld [vmem:[%s5122_s4 + $0xb0] sm:$0xff]  ;;  %v2316_v0 = vld [vmem:[%s5122_s4 + $0xa8] sm:$0xff] }
  0xe2   :  { %589 = vmatpush.msrb.mxu2 %v2319_v57 }
  0xe3   :  { %v3113_v4 = vmax.f32 %v383_v1, %v481_v62  ;;  %v156_v5 = vmax.f32 %v125_v2, 0.0  ;;  %v254_v6 = vmax.f32 %v223_v3, 0.0  ;;  %v2315_v1 = vld [vmem:[%s5122_s4 + $0xa0] sm:$0xff] }
  0xe4   :  { %v336_v7 = vpop.f32.mrf.mxu2  ;;  %v450_v8 = vpop.f32.mrf.mxu3  ;;  %590 = vmatpush.msrb.mxu2 %v2318_v60 }
  0xe5   :  { %5142 = vst [vmem:[#allocation8_spill] sm:$0xff] %v3113_v4  ;;  %v270_v9 = vmax.f32 %v156_v5, %v254_v6  ;;  %v337_v10 = vadd.f32 %v3097_v40, %v336_v7  ;;  %v451_v11 = vadd.f32 %v3097_v40, %v450_v8  ;;  %v2314_v5 = vld [vmem:[%s5122_s4 + $0x98] sm:$0xff]  ;;  %v2313_v6 = vld [vmem:[%s5122_s4 + $0x90] sm:$0xff] }
  0xe6   :  { %591 = vmatpush.msrb.mxu2 %v2317_v61 }
  0xe7   :  { %v368_v13 = vmax.f32 %v337_v10, 0.0  ;;  %v482_v14 = vmax.f32 %v451_v11, 0.0  ;;  %v2311_v10 = vld [vmem:[%s5122_s4 + $0x80] sm:$0xff] }
  0xe8   :  { %v127_v41 = vpop.f32.mrf.mxu0  ;;  %v225_v42 = vpop.f32.mrf.mxu1  ;;  %592 = vmatpush.msrb.mxu2 %v2316_v0 }
  0xe9   :  { %v384_v43 = vmax.f32 %v270_v9, %v368_v13  ;;  %v2312_v9 = vld [vmem:[%s5122_s4 + $0x88] sm:$0xff]  ;;  %v3178_v52 = vadd.f32 %v3097_v40, %v127_v41 }
  0xea   :  { %593 = vmatpush.msrb.mxu2 %v2315_v1 }
  0xeb   :  { %v3126_v45 = vmax.f32 %v384_v43, %v482_v14 }
  0xec   :  { %v3131_v50 = vpop.f32.mrf.mxu2  ;;  %v3133_v51 = vpop.f32.mrf.mxu3  ;;  %594 = vmatpush.msrb.mxu2 %v2314_v5 }
  0xed   :  { %5143 = vst [vmem:[#allocation9_spill] sm:$0xff] %v3126_v45 }
  0xee   :  { %595 = vmatpush.msrb.mxu2 %v2313_v6  ;;  %v3187_v6 = vadd.f32 %v3097_v40, %v225_v42 }
  0xf0   :  { %v130_v54 = vpop.f32.mrf.mxu0  ;;  %v228_v55 = vpop.f32.mrf.mxu1  ;;  %596 = vmatpush.msrb.mxu2 %v2312_v9 }
  0xf1   :  { %v131_v61 = vadd.f32 %v3097_v40, %v130_v54  ;;  %v229_v9 = vadd.f32 %v3097_v40, %v228_v55 }
  0xf2   :  { %597 = vmatpush.msrb.mxu2 %v2311_v10 }
  0xf3   :  { %v158_v54 = vmax.f32 %v131_v61, 0.0 }
  0xf4   :  { %v3147_v58 = vpop.f32.mrf.mxu2  ;;  %v3149_v59 = vpop.f32.mrf.mxu3 }
  0xf8   :  { %v133_v62 = vpop.f32.mrf.mxu0  ;;  %v231_v63 = vpop.f32.mrf.mxu1 }
  0xf9   :  { %v134_v42 = vadd.f32 %v3097_v40, %v133_v62  ;;  %v232_v4 = vadd.f32 %v3097_v40, %v231_v63 }
  0xfc   :  { %v345_v2 = vpop.f32.mrf.mxu2  ;;  %v3163_v3 = vpop.f32.mrf.mxu3 }
 0x100   :  { %v136_v7 = vpop.f32.mrf.mxu0  ;;  %v234_v8 = vpop.f32.mrf.mxu1 }
 0x101   :  { %v137_v41 = vadd.f32 %v3097_v40, %v136_v7  ;;  %v235_v10 = vadd.f32 %v3097_v40, %v234_v8 }
 0x103   :  { %v160_v55 = vmax.f32 %v137_v41, 0.0  ;;  %v258_v18 = vmax.f32 %v235_v10, 0.0 }
 0x104   :  { %v348_v11 = vpop.f32.mrf.mxu2  ;;  %v462_v12 = vpop.f32.mrf.mxu3 }
 0x105   :  { %v349_v61 = vadd.f32 %v3097_v40, %v348_v11 }
 0x108   :  { %v139_v13 = vpop.f32.mrf.mxu0  ;;  %v237_v14 = vpop.f32.mrf.mxu1 }
 0x109   :  { %v140_v0 = vadd.f32 %v3097_v40, %v139_v13  ;;  %v238_v1 = vadd.f32 %v3097_v40, %v237_v14 }
 0x10b   :  { %v161_v7 = vmax.f32 %v140_v0, 0.0  ;;  %v259_v27 = vmax.f32 %v238_v1, 0.0  ;;  %v159_v0 = vmax.f32 %v134_v42, 0.0  ;;  %v257_v1 = vmax.f32 %v232_v4, 0.0 }
 0x10c   :  { %v351_v15 = vpop.f32.mrf.mxu2  ;;  %v465_v43 = vpop.f32.mrf.mxu3  ;;  %v255_v4 = vmax.f32 %v3187_v6, 0.0 }
 0x10d   :  { %v352_v8 = vadd.f32 %v3097_v40, %v351_v15  ;;  %v346_v15 = vadd.f32 %v3097_v40, %v345_v2  ;;  %v275_v41 = vmax.f32 %v161_v7, %v259_v27  ;;  %v466_v10 = vadd.f32 %v3097_v40, %v465_v43 }
 0x10e   :  { %v340_v27 = vadd.f32 %v3097_v40, %v3131_v50  ;;  %v273_v2 = vmax.f32 %v159_v0, %v257_v1  ;;  %v460_v43 = vadd.f32 %v3097_v40, %v3163_v3  ;;  %v457_v50 = vadd.f32 %v3097_v40, %v3149_v59 }
 0x10f   :  { %v454_v59 = vadd.f32 %v3097_v40, %v3133_v51  ;;  %v113_v51 = vadd.f32 %v3097_v40, %v3078_v32  ;;  %v208_v32 = vadd.f32 %v3097_v40, %v3072_v29  ;;  %v205_v29 = vadd.f32 %v3097_v40, %v3064_v25 }
 0x110   :  { %v142_v44 = vpop.f32.mrf.mxu0  ;;  %v240_v46 = vpop.f32.mrf.mxu1  ;;  %v484_v1 = vmax.f32 %v457_v50, 0.0 }
 0x111   :  { %v143_v53 = vadd.f32 %v3097_v40, %v142_v44  ;;  %v241_v56 = vadd.f32 %v3097_v40, %v240_v46 }
 0x113   :  { %v162_v44 = vmax.f32 %v143_v53, 0.0  ;;  %v260_v46 = vmax.f32 %v241_v56, 0.0 }
 0x114   :  { %v354_v57 = vpop.f32.mrf.mxu2  ;;  %v468_v60 = vpop.f32.mrf.mxu3 }
 0x115   :  { %v355_v13 = vadd.f32 %v3097_v40, %v354_v57  ;;  %v276_v45 = vmax.f32 %v162_v44, %v260_v46  ;;  %v469_v57 = vadd.f32 %v3097_v40, %v468_v60  ;;  %v256_v46 = vmax.f32 %v229_v9, 0.0 }
 0x116   :  { %v343_v60 = vadd.f32 %v3097_v40, %v3147_v58  ;;  %v371_v9 = vmax.f32 %v346_v15, 0.0 }
 0x118   :  { %v145_v19 = vpop.f32.mrf.mxu0  ;;  %v243_v23 = vpop.f32.mrf.mxu1 }
 0x119   :  { %v146_v14 = vadd.f32 %v3097_v40, %v145_v19  ;;  %v244_v5 = vadd.f32 %v3097_v40, %v243_v23  ;;  %v374_v23 = vmax.f32 %v355_v13, 0.0  ;;  %v274_v13 = vmax.f32 %v160_v55, %v258_v18 }
 0x11a   :  { %v3216_v18 = vadd.f32 %v3097_v40, %v3046_v16  ;;  %v116_v16 = vadd.f32 %v3097_v40, %v3086_v36 }
 0x11b   :  { %v163_v53 = vmax.f32 %v146_v14, 0.0  ;;  %v261_v56 = vmax.f32 %v244_v5, 0.0  ;;  %v373_v5 = vmax.f32 %v352_v8, 0.0  ;;  %v463_v14 = vadd.f32 %v3097_v40, %v462_v12 }
 0x11c   :  { %v357_v19 = vpop.f32.mrf.mxu2  ;;  %v471_v31 = vpop.f32.mrf.mxu3  ;;  %v487_v8 = vmax.f32 %v466_v10, 0.0  ;;  %v370_v12 = vmax.f32 %v343_v60, 0.0  ;;  %v148_v36 = vmax.f32 %v3216_v18, 0.0  ;;  %v483_v10 = vmax.f32 %v454_v59, 0.0 }
 0x11d   :  { %v277_v22 = vmax.f32 %v163_v53, %v261_v56  ;;  %v358_v62 = vadd.f32 %v3097_v40, %v357_v19  ;;  %v472_v63 = vadd.f32 %v3097_v40, %v471_v31  ;;  %v372_v53 = vmax.f32 %v349_v61, 0.0 }
 0x11e   :  { %v390_v56 = vmax.f32 %v276_v45, %v374_v23  ;;  %v488_v31 = vmax.f32 %v469_v57, 0.0  ;;  %v389_v7 = vmax.f32 %v275_v41, %v373_v5  ;;  %v272_v45 = vmax.f32 %v158_v54, %v256_v46 }
 0x11f   :  { %v375_v11 = vmax.f32 %v358_v62, 0.0  ;;  %v489_v44 = vmax.f32 %v472_v63, 0.0  ;;  %v388_v6 = vmax.f32 %v274_v13, %v372_v53  ;;  %v486_v3 = vmax.f32 %v463_v14, 0.0 }
 0x120   :  { %v3224_v55 = vmax.f32 %v390_v56, %v488_v31  ;;  %v5144_v54 = vmax.f32 %v3178_v52, 0.0  ;;  %v369_v57 = vmax.f32 %v340_v27, 0.0  ;;  %v387_v19 = vmax.f32 %v273_v2, %v371_v9 }
 0x121   :  { %v391_v42 = vmax.f32 %v277_v22, %v375_v11  ;;  %v3220_v22 = vadd.f32 %v3097_v40, %v3048_v17  ;;  %v214_v17 = vadd.f32 %v3097_v40, %v3088_v37  ;;  %v485_v23 = vmax.f32 %v460_v43, 0.0 }
 0x122   :  { %v271_v61 = vmax.f32 %v5144_v54, %v255_v4  ;;  %v3237_v62 = vmax.f32 %v389_v7, %v487_v8  ;;  %v3244_v37 = vadd.f32 %v3097_v40, %v3054_v20  ;;  %v211_v52 = vadd.f32 %v3097_v40, %v3080_v33  ;;  %v5148_v54 = vld [vmem:[#allocation2_spill] sm:$0xff] }
 0x123   :  { %v3212_v58 = vmax.f32 %v391_v42, %v489_v44  ;;  %v331_v63 = vadd.f32 %v3097_v40, %v3101_v47  ;;  %v386_v0 = vmax.f32 %v272_v45, %v370_v12  ;;  %v3253_v15 = vmax.f32 %v388_v6, %v486_v3  ;;  %v5145_v45 = vld [vmem:[#allocation4_spill] sm:$0xff]  ;;  %v5146_v6 = vld [vmem:[#allocation7_spill] sm:$0xff] }
 0x124   :  { %v110_v20 = vadd.f32 %v3097_v40, %v3070_v28  ;;  %v153_v33 = vmax.f32 %v116_v16, 0.0  ;;  %v251_v41 = vmax.f32 %v214_v17, 0.0  ;;  %v328_v47 = vadd.f32 %v3097_v40, %v3090_v38  ;;  %v5147_v16 = vld [vmem:[#allocation9_spill] sm:$0xff] }
 0x125   :  { %507 = vmatpush.msrb.mxu0 %v3212_v58  ;;  %545 = vmatpush.msrb.mxu1 %v3212_v58  ;;  %v385_v5 = vmax.f32 %v271_v61, %v369_v57  ;;  %v3264_v11 = vmax.f32 %v387_v19, %v485_v23  ;;  %v107_v28 = vadd.f32 %v3097_v40, %v3062_v24  ;;  %v152_v44 = vmax.f32 %v113_v51, 0.0  ;;  %v5149_v57 = vld [vmem:[#allocation6_spill] sm:$0xff] }
 0x126   :  { %684 = vmatpush.msra.mxu2 %v3212_v58  ;;  %v250_v46 = vmax.f32 %v211_v52, 0.0  ;;  %v325_v38 = vadd.f32 %v3097_v40, %v3082_v34  ;;  %v366_v60 = vmax.f32 %v331_v63, 0.0  ;;  %v445_v13 = vadd.f32 %v3097_v40, %v3103_v48  ;;  %v5150_v63 = vld [vmem:[#allocation8_spill] sm:$0xff] }
 0x127   :  { %508 = vmatpush.msrb.mxu0 %v3224_v55  ;;  %546 = vmatpush.msrb.mxu1 %v3224_v55  ;;  %v3277_v14 = vmax.f32 %v386_v0, %v484_v1  ;;  %v202_v24 = vadd.f32 %v3097_v40, %v3056_v21  ;;  %v151_v25 = vmax.f32 %v110_v20, 0.0  ;;  %v249_v53 = vmax.f32 %v208_v32, 0.0 }
 0x128   :  { %685 = vmatpush.msra.mxu2 %v3224_v55  ;;  %v322_v56 = vadd.f32 %v3097_v40, %v3074_v30  ;;  %v267_v34 = vmax.f32 %v153_v33, %v251_v41  ;;  %v365_v31 = vmax.f32 %v328_v47, 0.0  ;;  %v442_v48 = vadd.f32 %v3097_v40, %v3092_v39 }
 0x129   :  { %509 = vmatpush.msrb.mxu0 %v3237_v62  ;;  %547 = vmatpush.msrb.mxu1 %v3237_v62  ;;  %v3288_v42 = vmax.f32 %v385_v5, %v483_v10  ;;  %v150_v4 = vmax.f32 %v107_v28, 0.0  ;;  %v248_v21 = vmax.f32 %v205_v29, 0.0  ;;  %v319_v27 = vadd.f32 %v3097_v40, %v3066_v26  ;;  %v5152_v5 = vld [vmem:[#allocation3_spill] sm:$0xff] }
 0x12a   :  { %686 = vmatpush.msra.mxu2 %v3237_v62  ;;  %v266_v2 = vmax.f32 %v152_v44, %v250_v46  ;;  %v364_v30 = vmax.f32 %v325_v38, 0.0  ;;  %v439_v43 = vadd.f32 %v3097_v40, %v3084_v35  ;;  %v382_v39 = vmax.f32 %v3105_v49, %v366_v60 }
 0x12b   :  { %510 = vmatpush.msrb.mxu0 %v3253_v15  ;;  %548 = vmatpush.msrb.mxu1 %v3253_v15  ;;  %v480_v9 = vmax.f32 %v445_v13, 0.0  ;;  %v149_v7 = vmax.f32 %v3244_v37, 0.0  ;;  %v247_v8 = vmax.f32 %v202_v24, 0.0  ;;  %v316_v26 = vadd.f32 %v3097_v40, %v5145_v45  ;;  %v531_v45 = vld [vmem:[%s5122_s4 + $0x20] sm:$0xff] }
 0x12c   :  { %687 = vmatpush.msra.mxu2 %v3253_v15  ;;  %v265_v50 = vmax.f32 %v151_v25, %v249_v53  ;;  %v363_v12 = vmax.f32 %v322_v56, 0.0  ;;  %v436_v35 = vadd.f32 %v3097_v40, %v5146_v6  ;;  %v381_v3 = vmax.f32 %v267_v34, %v365_v31  ;;  %v506_v53 = vld [vmem:[%s5123_s3] sm:$0xff]  ;;  %v2310_v56 = vld [vmem:[%s5123_s3 + $0x8] sm:$0xff]  ;;  %v2327_v34 = vld [vmem:[%s5123_s3 + $0x10] sm:$0xff] }
 0x12d   :  { %511 = vmatpush.msrb.mxu0 %v3264_v11  ;;  %549 = vmatpush.msrb.mxu1 %v3264_v11  ;;  %v479_v49 = vmax.f32 %v442_v48, 0.0  ;;  %v246_v17 = vmax.f32 %v3220_v22, 0.0  ;;  %v313_v61 = vadd.f32 %v3097_v40, %v5148_v54  ;;  %v264_v59 = vmax.f32 %v150_v4, %v248_v21  ;;  %v5151_v22 = vld [vmem:[#allocation5_spill] sm:$0xff]  ;;  %v2361_v31 = vld [vmem:[%s5123_s3 + $0x20] sm:$0xff]  ;;  %v541_v4 = vld [vmem:[%s5122_s4 + $0x70] sm:$0xff] }
 0x12e   :  { %688 = vmatpush.msra.mxu2 %v3264_v11  ;;  %v433_v19 = vadd.f32 %v3097_v40, %v5149_v57  ;;  %v362_v23 = vmax.f32 %v319_v27, 0.0  ;;  %v380_v37 = vmax.f32 %v266_v2, %v364_v30  ;;  %v478_v51 = vmax.f32 %v439_v43, 0.0  ;;  %v542_v48 = vld [vmem:[%s5122_s4 + $0x78] sm:$0xff]  ;;  %v540_v21 = vld [vmem:[%s5122_s4 + $0x68] sm:$0xff]  ;;  %v539_v27 = vld [vmem:[%s5122_s4 + $0x60] sm:$0xff] }
 0x12f   :  { %512 = vmatpush.msrb.mxu0 %v3277_v14  ;;  %550 = vmatpush.msrb.mxu1 %v3277_v14  ;;  %v3314_v52 = vmax.f32 %v382_v39, %v480_v9  ;;  %v263_v0 = vmax.f32 %v149_v7, %v247_v8  ;;  %v430_v1 = vadd.f32 %v3097_v40, %v5151_v22  ;;  %v361_v20 = vmax.f32 %v316_v26, 0.0  ;;  %v538_v2 = vld [vmem:[%s5122_s4 + $0x58] sm:$0xff]  ;;  %v537_v30 = vld [vmem:[%s5122_s4 + $0x50] sm:$0xff]  ;;  %v536_v43 = vld [vmem:[%s5122_s4 + $0x48] sm:$0xff] }
 0x130   :  { %689 = vmatpush.msra.mxu2 %v3277_v14  ;;  %v379_v32 = vmax.f32 %v265_v50, %v363_v12  ;;  %v477_v33 = vmax.f32 %v436_v35, 0.0  ;;  %v3321_v41 = vmax.f32 %v381_v3, %v479_v49  ;;  %v262_v47 = vmax.f32 %v148_v36, %v246_v17  ;;  %602 = vmatpush.msrb.mxu3 %v542_v48  ;;  %v535_v39 = vld [vmem:[%s5122_s4 + $0x40] sm:$0xff]  ;;  %v534_v9 = vld [vmem:[%s5122_s4 + $0x38] sm:$0xff]  ;;  %v533_v7 = vld [vmem:[%s5122_s4 + $0x30] sm:$0xff] }
 0x131   :  { %513 = vmatpush.msrb.mxu0 %v3288_v42  ;;  %551 = vmatpush.msrb.mxu1 %v3288_v42  ;;  %v427_v10 = vadd.f32 %v3097_v40, %v5152_v5  ;;  %v360_v28 = vmax.f32 %v313_v61, 0.0  ;;  %v378_v29 = vmax.f32 %v264_v59, %v362_v23  ;;  %v476_v44 = vmax.f32 %v433_v19, 0.0  ;;  %v532_v8 = vld [vmem:[%s5122_s4 + $0x28] sm:$0xff]  ;;  %v530_v26 = vld [vmem:[%s5122_s4 + $0x18] sm:$0xff]  ;;  %v529_v50 = vld [vmem:[%s5122_s4 + $0x10] sm:$0xff] }
 0x132   :  { %690 = vmatpush.msra.mxu2 %v3288_v42  ;;  %v3330_v46 = vmax.f32 %v380_v37, %v478_v51  ;;  %v377_v38 = vmax.f32 %v263_v0, %v361_v20  ;;  %v475_v60 = vmax.f32 %v430_v1, 0.0  ;;  %v3335_v18 = vmax.f32 %v379_v32, %v477_v33  ;;  %603 = vmatpush.msrb.mxu3 %v541_v4  ;;  %v528_v12 = vld [vmem:[%s5122_s4 + $0x8] sm:$0xff]  ;;  %v2395_v6 = vld [vmem:[%s5123_s3 + $0x30] sm:$0xff]  ;;  %v527_v35 = vld [vmem:[%s5122_s4] sm:$0xff] }
 0x133   :  { %514 = vmatpush.msrb.mxu0 %v5147_v16  ;;  %552 = vmatpush.msrb.mxu1 %v5147_v16  ;;  %v376_v40 = vmax.f32 %v262_v47, %v360_v28  ;;  %v474_v36 = vmax.f32 %v427_v10, 0.0  ;;  %v3340_v13 = vmax.f32 %v378_v29, %v476_v44  ;;  %v2343_v3 = vld [vmem:[%s5122_s4 + $0x178] sm:$0xff]  ;;  %v2342_v49 = vld [vmem:[%s5122_s4 + $0x170] sm:$0xff]  ;;  %v2341_v17 = vld [vmem:[%s5122_s4 + $0x168] sm:$0xff] }
 0x134   :  { %691 = vmatpush.msra.mxu2 %v5147_v16  ;;  %v3345_v24 = vmax.f32 %v377_v38, %v475_v60  ;;  %604 = vmatpush.msrb.mxu3 %v540_v21  ;;  %v2340_v54 = vld [vmem:[%s5122_s4 + $0x160] sm:$0xff]  ;;  %v2339_v61 = vld [vmem:[%s5122_s4 + $0x158] sm:$0xff]  ;;  %v2338_v59 = vld [vmem:[%s5122_s4 + $0x150] sm:$0xff] }
 0x135   :  { %515 = vmatpush.msrb.mxu0 %v5150_v63  ;;  %553 = vmatpush.msrb.mxu1 %v5150_v63  ;;  %v3350_v25 = vmax.f32 %v376_v40, %v474_v36  ;;  %v2337_v57 = vld [vmem:[%s5122_s4 + $0x148] sm:$0xff]  ;;  %v2336_v19 = vld [vmem:[%s5122_s4 + $0x140] sm:$0xff]  ;;  %v2335_v23 = vld [vmem:[%s5122_s4 + $0x138] sm:$0xff] }
 0x136   :  { %692 = vmatpush.msra.mxu2 %v5150_v63  ;;  %605 = vmatpush.msrb.mxu3 %v539_v27  ;;  %v2334_v37 = vld [vmem:[%s5122_s4 + $0x130] sm:$0xff]  ;;  %v2333_v51 = vld [vmem:[%s5122_s4 + $0x128] sm:$0xff]  ;;  %v2332_v0 = vld [vmem:[%s5122_s4 + $0x120] sm:$0xff] }
 0x137   :  { %516 = vmatpush.msrb.mxu0 %v3314_v52  ;;  %554 = vmatpush.msrb.mxu1 %v3314_v52  ;;  %v2331_v22 = vld [vmem:[%s5122_s4 + $0x118] sm:$0xff]  ;;  %v2330_v1 = vld [vmem:[%s5122_s4 + $0x110] sm:$0xff]  ;;  %v2329_v20 = vld [vmem:[%s5122_s4 + $0x108] sm:$0xff] }
 0x138   :  { %693 = vmatpush.msra.mxu2 %v3314_v52  ;;  %606 = vmatpush.msrb.mxu3 %v538_v2  ;;  %v2429_v32 = vld [vmem:[%s5123_s3 + $0x40] sm:$0xff]  ;;  %v2344_v10 = vld [vmem:[%s5123_s3 + $0x18] sm:$0xff]  ;;  %v2378_v28 = vld [vmem:[%s5123_s3 + $0x28] sm:$0xff] }
 0x139   :  { %517 = vmatpush.msrb.mxu0 %v3321_v41  ;;  %555 = vmatpush.msrb.mxu1 %v3321_v41  ;;  %v2328_v5 = vld [vmem:[%s5122_s4 + $0x100] sm:$0xff]  ;;  %v2463_v44 = vld [vmem:[%s5123_s3 + $0x50] sm:$0xff]  ;;  %v2412_v38 = vld [vmem:[%s5123_s3 + $0x38] sm:$0xff] }
 0x13a   :  { %694 = vmatpush.msra.mxu2 %v3321_v41  ;;  %607 = vmatpush.msrb.mxu3 %v537_v30  ;;  %v2497_v60 = vld [vmem:[%s5123_s3 + $0x60] sm:$0xff]  ;;  %v2360_v40 = vld [vmem:[%s5122_s4 + $0x1f8] sm:$0xff]  ;;  %v2359_v36 = vld [vmem:[%s5122_s4 + $0x1f0] sm:$0xff] }
 0x13b   :  { %518 = vmatpush.msrb.mxu0 %v3330_v46  ;;  %556 = vmatpush.msrb.mxu1 %v3330_v46  ;;  %v2355_v48 = vld [vmem:[%s5122_s4 + $0x1d0] sm:$0xff]  ;;  %v2354_v21 = vld [vmem:[%s5122_s4 + $0x1c8] sm:$0xff]  ;;  %v2353_v2 = vld [vmem:[%s5122_s4 + $0x1c0] sm:$0xff] }
 0x13c   :  { %695 = vmatpush.msra.mxu2 %v3330_v46  ;;  %608 = vmatpush.msrb.mxu3 %v536_v43  ;;  %v2376_v4 = vld [vmem:[%s5122_s4 + $0x270] sm:$0xff]  ;;  %v2375_v27 = vld [vmem:[%s5122_s4 + $0x268] sm:$0xff]  ;;  %v2374_v30 = vld [vmem:[%s5122_s4 + $0x260] sm:$0xff] }
 0x13d   :  { %519 = vmatpush.msrb.mxu0 %v3335_v18  ;;  %557 = vmatpush.msrb.mxu1 %v3335_v18  ;;  %v2352_v43 = vld [vmem:[%s5122_s4 + $0x1b8] sm:$0xff] }
 0x13e   :  { %696 = vmatpush.msra.mxu2 %v3335_v18  ;;  %609 = vmatpush.msrb.mxu3 %v535_v39  ;;  %v2373_v39 = vld [vmem:[%s5122_s4 + $0x258] sm:$0xff] }
 0x13f   :  { %520 = vmatpush.msrb.mxu0 %v3340_v13  ;;  %558 = vmatpush.msrb.mxu1 %v3340_v13 }
 0x140   :  { %697 = vmatpush.msra.mxu2 %v3340_v13  ;;  %610 = vmatpush.msrb.mxu3 %v534_v9  ;;  %v2351_v9 = vld [vmem:[%s5122_s4 + $0x1b0] sm:$0xff] }
 0x141   :  { %521 = vmatpush.msrb.mxu0 %v3345_v24  ;;  %559 = vmatpush.msrb.mxu1 %v3345_v24 }
 0x142   :  { %698 = vmatpush.msra.mxu2 %v3345_v24  ;;  %611 = vmatpush.msrb.mxu3 %v533_v7  ;;  %v2372_v7 = vld [vmem:[%s5122_s4 + $0x250] sm:$0xff] }
 0x143   :  { %522 = vmatpush.msrb.mxu0 %v3350_v25  ;;  %560 = vmatpush.msrb.mxu1 %v3350_v25 }
 0x144   :  { %699 = vmatpush.msra.mxu2 %v3350_v25  ;;  %523 = vmatmul.f32.vlgmr.msrb.gmra.mxu0 %v506_v53  ;;  %v2358_v53 = vld [vmem:[%s5122_s4 + $0x1e8] sm:$0xff] }
 0x145   :  { %561 = vmatmul.f32.vlgmr.msrb.gmra.mxu1 %v2310_v56  ;;  %624 = vmatpush.msra.mxu0 %v3212_v58  ;;  %v2357_v56 = vld [vmem:[%s5122_s4 + $0x1e0] sm:$0xff] }
 0x146   :  { %612 = vmatpush.msrb.mxu3 %v532_v8  ;;  %661 = vmatpush.msra.mxu1 %v2343_v3  ;;  %v2350_v8 = vld [vmem:[%s5122_s4 + $0x1a8] sm:$0xff]  ;;  %v2369_v3 = vld [vmem:[%s5122_s4 + $0x238] sm:$0xff] }
 0x147   :  { %625 = vmatpush.msra.mxu0 %v3224_v55 }
 0x148   :  { %613 = vmatpush.msrb.mxu3 %v531_v45  ;;  %662 = vmatpush.msra.mxu1 %v2342_v49  ;;  %v2371_v45 = vld [vmem:[%s5122_s4 + $0x248] sm:$0xff]  ;;  %v2347_v49 = vld [vmem:[%s5122_s4 + $0x190] sm:$0xff] }
 0x149   :  { %626 = vmatpush.msra.mxu0 %v3237_v62 }
 0x14a   :  { %614 = vmatpush.msrb.mxu3 %v530_v26  ;;  %663 = vmatpush.msra.mxu1 %v2341_v17  ;;  %v2446_v26 = vld [vmem:[%s5123_s3 + $0x48] sm:$0xff]  ;;  %v2368_v17 = vld [vmem:[%s5122_s4 + $0x230] sm:$0xff] }
 0x14b   :  { %627 = vmatpush.msra.mxu0 %v3253_v15 }
 0x14c   :  { %615 = vmatpush.msrb.mxu3 %v529_v50  ;;  %664 = vmatpush.msra.mxu1 %v2340_v54  ;;  %v2531_v50 = vld [vmem:[%s5123_s3 + $0x70] sm:$0xff]  ;;  %v2346_v54 = vld [vmem:[%s5122_s4 + $0x188] sm:$0xff] }
 0x14d   :  { %628 = vmatpush.msra.mxu0 %v3264_v11 }
 0x14e   :  { %616 = vmatpush.msrb.mxu3 %v528_v12  ;;  %665 = vmatpush.msra.mxu1 %v2339_v61  ;;  %v2349_v12 = vld [vmem:[%s5122_s4 + $0x1a0] sm:$0xff]  ;;  %v2367_v61 = vld [vmem:[%s5122_s4 + $0x228] sm:$0xff] }
 0x14f   :  { %629 = vmatpush.msra.mxu0 %v3277_v14 }
 0x150   :  { %617 = vmatpush.msrb.mxu3 %v527_v35  ;;  %666 = vmatpush.msra.mxu1 %v2338_v59  ;;  %v2348_v35 = vld [vmem:[%s5122_s4 + $0x198] sm:$0xff]  ;;  %v2345_v59 = vld [vmem:[%s5122_s4 + $0x180] sm:$0xff] }
 0x151   :  { %630 = vmatpush.msra.mxu0 %v3288_v42 }
 0x152   :  { %667 = vmatpush.msra.mxu1 %v2337_v57  ;;  %721 = vmatpush.msra.mxu3 %v2360_v40  ;;  %v2366_v57 = vld [vmem:[%s5122_s4 + $0x220] sm:$0xff]  ;;  %v2407_v40 = vld [vmem:[%s5122_s4 + $0x358] sm:$0xff] }
 0x153   :  { %631 = vmatpush.msra.mxu0 %v5147_v16 }
 0x154   :  { %668 = vmatpush.msra.mxu1 %v2336_v19  ;;  %722 = vmatpush.msra.mxu3 %v2359_v36  ;;  %v2394_v19 = vld [vmem:[%s5122_s4 + $0x2f8] sm:$0xff]  ;;  %v2385_v36 = vld [vmem:[%s5122_s4 + $0x2b0] sm:$0xff] }
 0x155   :  { %632 = vmatpush.msra.mxu0 %v5150_v63 }
 0x156   :  { %669 = vmatpush.msra.mxu1 %v2335_v23  ;;  %723 = vmatpush.msra.mxu3 %v2358_v53  ;;  %v2365_v23 = vld [vmem:[%s5122_s4 + $0x218] sm:$0xff]  ;;  %v2406_v53 = vld [vmem:[%s5122_s4 + $0x350] sm:$0xff] }
 0x157   :  { %633 = vmatpush.msra.mxu0 %v3314_v52 }
 0x158   :  { %670 = vmatpush.msra.mxu1 %v2334_v37  ;;  %724 = vmatpush.msra.mxu3 %v2357_v56  ;;  %v2393_v37 = vld [vmem:[%s5122_s4 + $0x2f0] sm:$0xff]  ;;  %v2480_v56 = vld [vmem:[%s5123_s3 + $0x58] sm:$0xff] }
 0x159   :  { %634 = vmatpush.msra.mxu0 %v3321_v41 }
 0x15a   :  { %671 = vmatpush.msra.mxu1 %v2333_v51  ;;  %v2364_v51 = vld [vmem:[%s5122_s4 + $0x210] sm:$0xff] }
 0x15b   :  { %635 = vmatpush.msra.mxu0 %v3330_v46 }
 0x15c   :  { %672 = vmatpush.msra.mxu1 %v2332_v0  ;;  %v2392_v0 = vld [vmem:[%s5122_s4 + $0x2e8] sm:$0xff] }
 0x15d   :  { %636 = vmatpush.msra.mxu0 %v3335_v18 }
 0x15e   :  { %673 = vmatpush.msra.mxu1 %v2331_v22  ;;  %v2363_v22 = vld [vmem:[%s5122_s4 + $0x208] sm:$0xff] }
 0x15f   :  { %637 = vmatpush.msra.mxu0 %v3340_v13 }
 0x160   :  { %674 = vmatpush.msra.mxu1 %v2330_v1  ;;  %v2391_v1 = vld [vmem:[%s5122_s4 + $0x2e0] sm:$0xff] }
 0x161   :  { %638 = vmatpush.msra.mxu0 %v3345_v24 }
 0x162   :  { %675 = vmatpush.msra.mxu1 %v2329_v20  ;;  %v2362_v20 = vld [vmem:[%s5122_s4 + $0x200] sm:$0xff] }
 0x163   :  { %639 = vmatpush.msra.mxu0 %v3350_v25 }
 0x164   :  { %640 = vmatmul.f32.vlgmr.msra.gmra.mxu0 %v2327_v34  ;;  %676 = vmatpush.msra.mxu1 %v2328_v5  ;;  %v2356_v34 = vld [vmem:[%s5122_s4 + $0x1d8] sm:$0xff]  ;;  %v2410_v5 = vld [vmem:[%s5122_s4 + $0x370] sm:$0xff] }
 0x165   :  { %744 = vmatpush.msrb.mxu0 %v3212_v58  ;;  %725 = vmatpush.msra.mxu3 %v2356_v34  ;;  %v2384_v34 = vld [vmem:[%s5122_s4 + $0x2a8] sm:$0xff] }
 0x167   :  { %745 = vmatpush.msrb.mxu0 %v3224_v55  ;;  %726 = vmatpush.msra.mxu3 %v2355_v48  ;;  %v2565_v48 = vld [vmem:[%s5123_s3 + $0x80] sm:$0xff] }
 0x169   :  { %746 = vmatpush.msrb.mxu0 %v3237_v62  ;;  %727 = vmatpush.msra.mxu3 %v2354_v21  ;;  %v2404_v21 = vld [vmem:[%s5122_s4 + $0x340] sm:$0xff] }
 0x16b   :  { %747 = vmatpush.msrb.mxu0 %v3253_v15  ;;  %728 = vmatpush.msra.mxu3 %v2353_v2  ;;  %v2382_v2 = vld [vmem:[%s5122_s4 + $0x298] sm:$0xff] }
 0x16d   :  { %748 = vmatpush.msrb.mxu0 %v3264_v11  ;;  %729 = vmatpush.msra.mxu3 %v2352_v43  ;;  %v2381_v43 = vld [vmem:[%s5122_s4 + $0x290] sm:$0xff] }
 0x16f   :  { %749 = vmatpush.msrb.mxu0 %v3277_v14  ;;  %730 = vmatpush.msra.mxu3 %v2351_v9  ;;  %v2380_v9 = vld [vmem:[%s5122_s4 + $0x288] sm:$0xff] }
 0x171   :  { %750 = vmatpush.msrb.mxu0 %v3288_v42  ;;  %731 = vmatpush.msra.mxu3 %v2350_v8  ;;  %v2400_v8 = vld [vmem:[%s5122_s4 + $0x320] sm:$0xff] }
 0x173   :  { %751 = vmatpush.msrb.mxu0 %v5147_v16  ;;  %732 = vmatpush.msra.mxu3 %v2349_v12  ;;  %v2428_v12 = vld [vmem:[%s5122_s4 + $0x3f8] sm:$0xff] }
 0x175   :  { %752 = vmatpush.msrb.mxu0 %v5150_v63  ;;  %733 = vmatpush.msra.mxu3 %v2348_v35  ;;  %v2427_v35 = vld [vmem:[%s5122_s4 + $0x3f0] sm:$0xff] }
 0x177   :  { %753 = vmatpush.msrb.mxu0 %v3314_v52  ;;  %734 = vmatpush.msra.mxu3 %v2347_v49  ;;  %v2426_v49 = vld [vmem:[%s5122_s4 + $0x3e8] sm:$0xff] }
 0x179   :  { %754 = vmatpush.msrb.mxu0 %v3321_v41  ;;  %735 = vmatpush.msra.mxu3 %v2346_v54  ;;  %v2425_v54 = vld [vmem:[%s5122_s4 + $0x3e0] sm:$0xff] }
 0x17b   :  { %755 = vmatpush.msrb.mxu0 %v3330_v46  ;;  %736 = vmatpush.msra.mxu3 %v2345_v59  ;;  %v2424_v59 = vld [vmem:[%s5122_s4 + $0x3d8] sm:$0xff] }
 0x17d   :  { %756 = vmatpush.msrb.mxu0 %v3335_v18 }
 0x17f   :  { %757 = vmatpush.msrb.mxu0 %v3340_v13 }
 0x181   :  { %758 = vmatpush.msrb.mxu0 %v3345_v24 }
 0x183   :  { %759 = vmatpush.msrb.mxu0 %v3350_v25 }
 0x184   :  { %760 = vmatmul.f32.vlgmr.msrb.gmra.mxu0 %v2361_v31  ;;  %v2377_v31 = vld [vmem:[%s5122_s4 + $0x278] sm:$0xff] }
 0x185   :  { %864 = vmatpush.msra.mxu0 %v3212_v58  ;;  %781 = vmatpush.msrb.mxu1 %v2377_v31  ;;  %v2405_v31 = vld [vmem:[%s5122_s4 + $0x348] sm:$0xff] }
 0x187   :  { %865 = vmatpush.msra.mxu0 %v3224_v55  ;;  %782 = vmatpush.msrb.mxu1 %v2376_v4  ;;  %v2383_v4 = vld [vmem:[%s5122_s4 + $0x2a0] sm:$0xff] }
 0x189   :  { %866 = vmatpush.msra.mxu0 %v3237_v62  ;;  %783 = vmatpush.msrb.mxu1 %v2375_v27 }
 0x18b   :  { %867 = vmatpush.msra.mxu0 %v3253_v15  ;;  %784 = vmatpush.msrb.mxu1 %v2374_v30  ;;  %v2403_v30 = vld [vmem:[%s5122_s4 + $0x338] sm:$0xff] }
 0x18d   :  { %868 = vmatpush.msra.mxu0 %v3264_v11  ;;  %785 = vmatpush.msrb.mxu1 %v2373_v39  ;;  %v2402_v39 = vld [vmem:[%s5122_s4 + $0x330] sm:$0xff] }
 0x18f   :  { %869 = vmatpush.msra.mxu0 %v3277_v14  ;;  %786 = vmatpush.msrb.mxu1 %v2372_v7  ;;  %v2401_v7 = vld [vmem:[%s5122_s4 + $0x328] sm:$0xff] }
 0x191   :  { %870 = vmatpush.msra.mxu0 %v3288_v42  ;;  %787 = vmatpush.msrb.mxu1 %v2371_v45 }
 0x193   :  { %871 = vmatpush.msra.mxu0 %v5147_v16 }
 0x195   :  { %872 = vmatpush.msra.mxu0 %v5150_v63 }
 0x197   :  { %873 = vmatpush.msra.mxu0 %v3314_v52 }
 0x199   :  { %874 = vmatpush.msra.mxu0 %v3321_v41 }
 0x19b   :  { %875 = vmatpush.msra.mxu0 %v3330_v46 }
 0x19d   :  { %876 = vmatpush.msra.mxu0 %v3335_v18 }
 0x19f   :  { %877 = vmatpush.msra.mxu0 %v3340_v13 }
 0x1a1   :  { %878 = vmatpush.msra.mxu0 %v3345_v24 }
 0x1a3   :  { %879 = vmatpush.msra.mxu0 %v3350_v25 }
 0x1a4   :  { %880 = vmatmul.f32.vlgmr.msra.gmra.mxu0 %v2395_v6  ;;  %v2370_v6 = vld [vmem:[%s5122_s4 + $0x240] sm:$0xff] }
 0x1a5   :  { %984 = vmatpush.msrb.mxu0 %v3212_v58  ;;  %788 = vmatpush.msrb.mxu1 %v2370_v6  ;;  %v2398_v6 = vld [vmem:[%s5122_s4 + $0x310] sm:$0xff] }
 0x1a7   :  { %985 = vmatpush.msrb.mxu0 %v3224_v55  ;;  %789 = vmatpush.msrb.mxu1 %v2369_v3  ;;  %v2397_v3 = vld [vmem:[%s5122_s4 + $0x308] sm:$0xff] }
 0x1a9   :  { %986 = vmatpush.msrb.mxu0 %v3237_v62  ;;  %790 = vmatpush.msrb.mxu1 %v2368_v17  ;;  %v2396_v17 = vld [vmem:[%s5122_s4 + $0x300] sm:$0xff] }
 0x1ab   :  { %987 = vmatpush.msrb.mxu0 %v3253_v15  ;;  %791 = vmatpush.msrb.mxu1 %v2367_v61 }
 0x1ad   :  { %988 = vmatpush.msrb.mxu0 %v3264_v11  ;;  %792 = vmatpush.msrb.mxu1 %v2366_v57  ;;  %v2445_v57 = vld [vmem:[%s5122_s4 + $0x478] sm:$0xff] }
 0x1af   :  { %989 = vmatpush.msrb.mxu0 %v3277_v14  ;;  %793 = vmatpush.msrb.mxu1 %v2365_v23  ;;  %v2444_v23 = vld [vmem:[%s5122_s4 + $0x470] sm:$0xff] }
 0x1b1   :  { %990 = vmatpush.msrb.mxu0 %v3288_v42  ;;  %794 = vmatpush.msrb.mxu1 %v2364_v51  ;;  %v2443_v51 = vld [vmem:[%s5122_s4 + $0x468] sm:$0xff] }
 0x1b3   :  { %991 = vmatpush.msrb.mxu0 %v5147_v16  ;;  %795 = vmatpush.msrb.mxu1 %v2363_v22  ;;  %v2442_v22 = vld [vmem:[%s5122_s4 + $0x460] sm:$0xff] }
 0x1b5   :  { %992 = vmatpush.msrb.mxu0 %v5150_v63  ;;  %796 = vmatpush.msrb.mxu1 %v2362_v20  ;;  %v2420_v20 = vld [vmem:[%s5122_s4 + $0x3b8] sm:$0xff] }
 0x1b7   :  { %993 = vmatpush.msrb.mxu0 %v3314_v52 }
 0x1b9   :  { %994 = vmatpush.msrb.mxu0 %v3321_v41 }
 0x1bb   :  { %995 = vmatpush.msrb.mxu0 %v3330_v46 }
 0x1bd   :  { %996 = vmatpush.msrb.mxu0 %v3335_v18 }
 0x1bf   :  { %997 = vmatpush.msrb.mxu0 %v3340_v13 }
 0x1c1   :  { %998 = vmatpush.msrb.mxu0 %v3345_v24  ;;  %v524_v33 = vpop.f32.mrf.mxu0 }
 0x1c2   :  { %v562_v47 = vpop.f32.mrf.mxu1  ;;  %618 = vmatmul.f32.vlgmr.msrb.gmra.mxu3 %v524_v33  ;;  %v2411_v33 = vld [vmem:[%s5122_s4 + $0x378] sm:$0xff] }
 0x1c3   :  { %999 = vmatpush.msrb.mxu0 %v3350_v25  ;;  %598 = vmatmul.f32.vlgmr.msrb.gmra.mxu2 %v562_v47  ;;  %v2389_v47 = vld [vmem:[%s5122_s4 + $0x2d0] sm:$0xff] }
 0x1c4   :  { %1000 = vmatmul.f32.vlgmr.msrb.gmra.mxu0 %v2429_v32  ;;  %804 = vmatpush.msrb.mxu2 %v3212_v58  ;;  %v2390_v32 = vld [vmem:[%s5122_s4 + $0x2d8] sm:$0xff] }
 0x1c5   :  { %1104 = vmatpush.msra.mxu0 %v3212_v58  ;;  %841 = vmatpush.msrb.mxu3 %v2394_v19  ;;  %v2423_v19 = vld [vmem:[%s5122_s4 + $0x3d0] sm:$0xff] }
 0x1c6   :  { %805 = vmatpush.msrb.mxu2 %v3224_v55 }
 0x1c7   :  { %1105 = vmatpush.msra.mxu0 %v3224_v55  ;;  %842 = vmatpush.msrb.mxu3 %v2393_v37  ;;  %v2422_v37 = vld [vmem:[%s5122_s4 + $0x3c8] sm:$0xff] }
 0x1c8   :  { %806 = vmatpush.msrb.mxu2 %v3237_v62 }
 0x1c9   :  { %1106 = vmatpush.msra.mxu0 %v3237_v62  ;;  %843 = vmatpush.msrb.mxu3 %v2392_v0  ;;  %v2421_v0 = vld [vmem:[%s5122_s4 + $0x3c0] sm:$0xff] }
 0x1ca   :  { %807 = vmatpush.msrb.mxu2 %v3253_v15 }
 0x1cb   :  { %1107 = vmatpush.msra.mxu0 %v3253_v15  ;;  %700 = vmatmul.f32.vlgmr.msra.gmra.mxu2 %v2344_v10  ;;  %v2388_v10 = vld [vmem:[%s5122_s4 + $0x2c8] sm:$0xff] }
 0x1cc   :  { %808 = vmatpush.msrb.mxu2 %v3264_v11  ;;  %844 = vmatpush.msrb.mxu3 %v2391_v1  ;;  %v2514_v1 = vld [vmem:[%s5123_s3 + $0x68] sm:$0xff] }
 0x1cd   :  { %1108 = vmatpush.msra.mxu0 %v3264_v11 }
 0x1ce   :  { %809 = vmatpush.msrb.mxu2 %v3277_v14  ;;  %845 = vmatpush.msrb.mxu3 %v2390_v32  ;;  %v2441_v32 = vld [vmem:[%s5122_s4 + $0x458] sm:$0xff] }
 0x1cf   :  { %1109 = vmatpush.msra.mxu0 %v3277_v14 }
 0x1d0   :  { %810 = vmatpush.msrb.mxu2 %v3288_v42  ;;  %846 = vmatpush.msrb.mxu3 %v2389_v47  ;;  %v2440_v47 = vld [vmem:[%s5122_s4 + $0x450] sm:$0xff] }
 0x1d1   :  { %1110 = vmatpush.msra.mxu0 %v3288_v42 }
 0x1d2   :  { %811 = vmatpush.msrb.mxu2 %v5147_v16  ;;  %847 = vmatpush.msrb.mxu3 %v2388_v10  ;;  %v2418_v10 = vld [vmem:[%s5122_s4 + $0x3a8] sm:$0xff] }
 0x1d3   :  { %1111 = vmatpush.msra.mxu0 %v5147_v16 }
 0x1d4   :  { %812 = vmatpush.msrb.mxu2 %v5150_v63 }
 0x1d5   :  { %1112 = vmatpush.msra.mxu0 %v5150_v63 }
 0x1d6   :  { %813 = vmatpush.msrb.mxu2 %v3314_v52 }
 0x1d7   :  { %1113 = vmatpush.msra.mxu0 %v3314_v52 }
 0x1d8   :  { %814 = vmatpush.msrb.mxu2 %v3321_v41 }
 0x1d9   :  { %1114 = vmatpush.msra.mxu0 %v3321_v41 }
 0x1da   :  { %815 = vmatpush.msrb.mxu2 %v3330_v46 }
 0x1db   :  { %1115 = vmatpush.msra.mxu0 %v3330_v46 }
 0x1dc   :  { %816 = vmatpush.msrb.mxu2 %v3335_v18 }
 0x1dd   :  { %1116 = vmatpush.msra.mxu0 %v3335_v18 }
 0x1de   :  { %817 = vmatpush.msrb.mxu2 %v3340_v13 }
 0x1df   :  { %1117 = vmatpush.msra.mxu0 %v3340_v13 }
 0x1e0   :  { %818 = vmatpush.msrb.mxu2 %v3345_v24 }
 0x1e1   :  { %1118 = vmatpush.msra.mxu0 %v3345_v24  ;;  %v641_v29 = vpop.f32.mrf.mxu0 }
 0x1e2   :  { %819 = vmatpush.msrb.mxu2 %v3350_v25  ;;  %677 = vmatmul.f32.vlgmr.msra.gmra.mxu1 %v641_v29  ;;  %v2387_v29 = vld [vmem:[%s5122_s4 + $0x2c0] sm:$0xff] }
 0x1e3   :  { %1119 = vmatpush.msra.mxu0 %v3350_v25  ;;  %820 = vmatmul.f32.vlgmr.msrb.gmra.mxu2 %v2378_v28  ;;  %v2409_v28 = vld [vmem:[%s5122_s4 + $0x368] sm:$0xff] }
 0x1e4   :  { %924 = vmatpush.msra.mxu2 %v3212_v58  ;;  %1120 = vmatmul.f32.vlgmr.msra.gmra.mxu0 %v2463_v44  ;;  %v2408_v44 = vld [vmem:[%s5122_s4 + $0x360] sm:$0xff] }
 0x1e5   :  { %1224 = vmatpush.msrb.mxu0 %v3212_v58  ;;  %901 = vmatpush.msra.mxu1 %v2411_v33  ;;  %v2419_v33 = vld [vmem:[%s5122_s4 + $0x3b0] sm:$0xff] }
 0x1e6   :  { %925 = vmatpush.msra.mxu2 %v3224_v55  ;;  %848 = vmatpush.msrb.mxu3 %v2387_v29  ;;  %v2417_v29 = vld [vmem:[%s5122_s4 + $0x3a0] sm:$0xff] }
 0x1e7   :  { %1225 = vmatpush.msrb.mxu0 %v3224_v55  ;;  %902 = vmatpush.msra.mxu1 %v2410_v5 }
 0x1e8   :  { %926 = vmatpush.msra.mxu2 %v3237_v62 }
 0x1e9   :  { %1226 = vmatpush.msrb.mxu0 %v3237_v62  ;;  %903 = vmatpush.msra.mxu1 %v2409_v28  ;;  %v2439_v28 = vld [vmem:[%s5122_s4 + $0x448] sm:$0xff] }
 0x1ea   :  { %927 = vmatpush.msra.mxu2 %v3253_v15 }
 0x1eb   :  { %1227 = vmatpush.msrb.mxu0 %v3253_v15  ;;  %904 = vmatpush.msra.mxu1 %v2408_v44  ;;  %v2599_v44 = vld [vmem:[%s5123_s3 + $0x90] sm:$0xff] }
 0x1ec   :  { %928 = vmatpush.msra.mxu2 %v3264_v11 }
 0x1ed   :  { %1228 = vmatpush.msrb.mxu0 %v3264_v11  ;;  %905 = vmatpush.msra.mxu1 %v2407_v40  ;;  %v2437_v40 = vld [vmem:[%s5122_s4 + $0x438] sm:$0xff] }
 0x1ee   :  { %929 = vmatpush.msra.mxu2 %v3277_v14 }
 0x1ef   :  { %1229 = vmatpush.msrb.mxu0 %v3277_v14  ;;  %906 = vmatpush.msra.mxu1 %v2406_v53  ;;  %v2436_v53 = vld [vmem:[%s5122_s4 + $0x430] sm:$0xff] }
 0x1f0   :  { %930 = vmatpush.msra.mxu2 %v3288_v42 }
 0x1f1   :  { %1230 = vmatpush.msrb.mxu0 %v3288_v42  ;;  %907 = vmatpush.msra.mxu1 %v2405_v31  ;;  %v2413_v31 = vld [vmem:[%s5122_s4 + $0x380] sm:$0xff] }
 0x1f2   :  { %931 = vmatpush.msra.mxu2 %v5147_v16 }
 0x1f3   :  { %1231 = vmatpush.msrb.mxu0 %v5147_v16  ;;  %908 = vmatpush.msra.mxu1 %v2404_v21  ;;  %v2433_v21 = vld [vmem:[%s5122_s4 + $0x418] sm:$0xff] }
 0x1f4   :  { %932 = vmatpush.msra.mxu2 %v5150_v63 }
 0x1f5   :  { %1232 = vmatpush.msrb.mxu0 %v5150_v63  ;;  %909 = vmatpush.msra.mxu1 %v2403_v30  ;;  %v2432_v30 = vld [vmem:[%s5122_s4 + $0x410] sm:$0xff] }
 0x1f6   :  { %933 = vmatpush.msra.mxu2 %v3314_v52 }
 0x1f7   :  { %1233 = vmatpush.msrb.mxu0 %v3314_v52  ;;  %910 = vmatpush.msra.mxu1 %v2402_v39  ;;  %v2431_v39 = vld [vmem:[%s5122_s4 + $0x408] sm:$0xff] }
 0x1f8   :  { %934 = vmatpush.msra.mxu2 %v3321_v41 }
 0x1f9   :  { %1234 = vmatpush.msrb.mxu0 %v3321_v41  ;;  %911 = vmatpush.msra.mxu1 %v2401_v7  ;;  %v2430_v7 = vld [vmem:[%s5122_s4 + $0x400] sm:$0xff] }
 0x1fa   :  { %935 = vmatpush.msra.mxu2 %v3330_v46 }
 0x1fb   :  { %1235 = vmatpush.msrb.mxu0 %v3330_v46  ;;  %912 = vmatpush.msra.mxu1 %v2400_v8 }
 0x1fc   :  { %936 = vmatpush.msra.mxu2 %v3335_v18 }
 0x1fd   :  { %1236 = vmatpush.msrb.mxu0 %v3335_v18 }
 0x1fe   :  { %937 = vmatpush.msra.mxu2 %v3340_v13 }
 0x1ff   :  { %1237 = vmatpush.msrb.mxu0 %v3340_v13 }
 0x200   :  { %938 = vmatpush.msra.mxu2 %v3345_v24 }
 0x201   :  { %1238 = vmatpush.msrb.mxu0 %v3345_v24 }
 0x202   :  { %939 = vmatpush.msra.mxu2 %v3350_v25 }
 0x203   :  { %1239 = vmatpush.msrb.mxu0 %v3350_v25  ;;  %940 = vmatmul.f32.vlgmr.msra.gmra.mxu2 %v2412_v38  ;;  %v761_v38 = vpop.f32.mrf.mxu0 }
 0x204   :  { %1240 = vmatmul.f32.vlgmr.msrb.gmra.mxu0 %v2497_v60  ;;  %1044 = vmatpush.msrb.mxu2 %v3212_v58  ;;  %v2386_v60 = vld [vmem:[%s5122_s4 + $0x2b8] sm:$0xff] }
 0x205   :  { %1344 = vmatpush.msra.mxu0 %v3212_v58  ;;  %797 = vmatmul.f32.vlgmr.msrb.gmra.mxu1 %v761_v38  ;;  %v2438_v38 = vld [vmem:[%s5122_s4 + $0x440] sm:$0xff] }
 0x206   :  { %1045 = vmatpush.msrb.mxu2 %v3224_v55  ;;  %849 = vmatpush.msrb.mxu3 %v2386_v60  ;;  %v2416_v60 = vld [vmem:[%s5122_s4 + $0x398] sm:$0xff] }
 0x207   :  { %1345 = vmatpush.msra.mxu0 %v3224_v55 }
 0x208   :  { %1046 = vmatpush.msrb.mxu2 %v3237_v62  ;;  %850 = vmatpush.msrb.mxu3 %v2385_v36  ;;  %v2415_v36 = vld [vmem:[%s5122_s4 + $0x390] sm:$0xff] }
 0x209   :  { %1346 = vmatpush.msra.mxu0 %v3237_v62 }
 0x20a   :  { %1047 = vmatpush.msrb.mxu2 %v3253_v15  ;;  %851 = vmatpush.msrb.mxu3 %v2384_v34  ;;  %v2435_v34 = vld [vmem:[%s5122_s4 + $0x428] sm:$0xff] }
 0x20b   :  { %1347 = vmatpush.msra.mxu0 %v3253_v15 }
 0x20c   :  { %1048 = vmatpush.msrb.mxu2 %v3264_v11  ;;  %852 = vmatpush.msrb.mxu3 %v2383_v4  ;;  %v2462_v4 = vld [vmem:[%s5122_s4 + $0x4f8] sm:$0xff] }
 0x20d   :  { %1348 = vmatpush.msra.mxu0 %v3264_v11 }
 0x20e   :  { %1049 = vmatpush.msrb.mxu2 %v3277_v14  ;;  %853 = vmatpush.msrb.mxu3 %v2382_v2  ;;  %v2461_v2 = vld [vmem:[%s5122_s4 + $0x4f0] sm:$0xff] }
 0x20f   :  { %1349 = vmatpush.msra.mxu0 %v3277_v14 }
 0x210   :  { %1050 = vmatpush.msrb.mxu2 %v3288_v42  ;;  %854 = vmatpush.msrb.mxu3 %v2381_v43  ;;  %v2460_v43 = vld [vmem:[%s5122_s4 + $0x4e8] sm:$0xff] }
 0x211   :  { %1350 = vmatpush.msra.mxu0 %v3288_v42 }
 0x212   :  { %1051 = vmatpush.msrb.mxu2 %v5147_v16  ;;  %855 = vmatpush.msrb.mxu3 %v2380_v9  ;;  %v2459_v9 = vld [vmem:[%s5122_s4 + $0x4e0] sm:$0xff] }
 0x213   :  { %1351 = vmatpush.msra.mxu0 %v5147_v16 }
 0x214   :  { %1052 = vmatpush.msrb.mxu2 %v5150_v63 }
 0x215   :  { %1352 = vmatpush.msra.mxu0 %v5150_v63 }
 0x216   :  { %1053 = vmatpush.msrb.mxu2 %v3314_v52 }
 0x217   :  { %1353 = vmatpush.msra.mxu0 %v3314_v52 }
 0x218   :  { %1054 = vmatpush.msrb.mxu2 %v3321_v41 }
 0x219   :  { %1354 = vmatpush.msra.mxu0 %v3321_v41 }
 0x21a   :  { %1055 = vmatpush.msrb.mxu2 %v3330_v46 }
 0x21b   :  { %1355 = vmatpush.msra.mxu0 %v3330_v46 }
 0x21c   :  { %1056 = vmatpush.msrb.mxu2 %v3335_v18 }
 0x21d   :  { %1356 = vmatpush.msra.mxu0 %v3335_v18 }
 0x21e   :  { %1057 = vmatpush.msrb.mxu2 %v3340_v13 }
 0x21f   :  { %1357 = vmatpush.msra.mxu0 %v3340_v13 }
 0x220   :  { %1058 = vmatpush.msrb.mxu2 %v3345_v24 }
 0x221   :  { %1358 = vmatpush.msra.mxu0 %v3345_v24  ;;  %v881_v61 = vpop.f32.mrf.mxu0 }
 0x222   :  { %1059 = vmatpush.msrb.mxu2 %v3350_v25 }
 0x223   :  { %1359 = vmatpush.msra.mxu0 %v3350_v25  ;;  %1060 = vmatmul.f32.vlgmr.msrb.gmra.mxu2 %v2446_v26  ;;  %v2379_v26 = vld [vmem:[%s5122_s4 + $0x280] sm:$0xff] }
 0x224   :  { %1360 = vmatmul.f32.vlgmr.msra.gmra.mxu0 %v2531_v50  ;;  %1164 = vmatpush.msra.mxu2 %v3212_v58  ;;  %v2399_v50 = vld [vmem:[%s5122_s4 + $0x318] sm:$0xff] }
 0x225   :  { %1464 = vmatpush.msrb.mxu0 %v3212_v58  ;;  %856 = vmatpush.msrb.mxu3 %v2379_v26  ;;  %v2479_v26 = vld [vmem:[%s5122_s4 + $0x578] sm:$0xff] }
 0x226   :  { %1165 = vmatpush.msra.mxu2 %v3224_v55  ;;  %913 = vmatpush.msra.mxu1 %v2399_v50  ;;  %v2457_v50 = vld [vmem:[%s5122_s4 + $0x4d0] sm:$0xff] }
 0x227   :  { %1465 = vmatpush.msrb.mxu0 %v3224_v55 }
 0x228   :  { %1166 = vmatpush.msra.mxu2 %v3237_v62  ;;  %914 = vmatpush.msra.mxu1 %v2398_v6  ;;  %v2478_v6 = vld [vmem:[%s5122_s4 + $0x570] sm:$0xff] }
 0x229   :  { %1466 = vmatpush.msrb.mxu0 %v3237_v62 }
 0x22a   :  { %1167 = vmatpush.msra.mxu2 %v3253_v15  ;;  %915 = vmatpush.msra.mxu1 %v2397_v3  ;;  %v2477_v3 = vld [vmem:[%s5122_s4 + $0x568] sm:$0xff] }
 0x22b   :  { %1467 = vmatpush.msrb.mxu0 %v3253_v15 }
 0x22c   :  { %1168 = vmatpush.msra.mxu2 %v3264_v11  ;;  %916 = vmatpush.msra.mxu1 %v2396_v17 }
 0x22d   :  { %1468 = vmatpush.msrb.mxu0 %v3264_v11  ;;  %917 = vmatmul.f32.vlgmr.msra.gmra.mxu1 %v881_v61  ;;  %v2475_v61 = vld [vmem:[%s5122_s4 + $0x558] sm:$0xff] }
 0x22e   :  { %1169 = vmatpush.msra.mxu2 %v3277_v14  ;;  %1021 = vmatpush.msrb.mxu1 %v2445_v57  ;;  %v2474_v57 = vld [vmem:[%s5122_s4 + $0x550] sm:$0xff] }
 0x22f   :  { %1469 = vmatpush.msrb.mxu0 %v3277_v14 }
 0x230   :  { %1170 = vmatpush.msra.mxu2 %v3288_v42  ;;  %1022 = vmatpush.msrb.mxu1 %v2444_v23  ;;  %v2473_v23 = vld [vmem:[%s5122_s4 + $0x548] sm:$0xff] }
 0x231   :  { %1470 = vmatpush.msrb.mxu0 %v3288_v42 }
 0x232   :  { %1171 = vmatpush.msra.mxu2 %v5147_v16  ;;  %1023 = vmatpush.msrb.mxu1 %v2443_v51  ;;  %v2633_v51 = vld [vmem:[%s5123_s3 + $0xa0] sm:$0xff] }
 0x233   :  { %1471 = vmatpush.msrb.mxu0 %v5147_v16 }
 0x234   :  { %1172 = vmatpush.msra.mxu2 %v5150_v63  ;;  %1024 = vmatpush.msrb.mxu1 %v2442_v22  ;;  %v2472_v22 = vld [vmem:[%s5122_s4 + $0x540] sm:$0xff] }
 0x235   :  { %1472 = vmatpush.msrb.mxu0 %v5150_v63 }
 0x236   :  { %1173 = vmatpush.msra.mxu2 %v3314_v52  ;;  %1025 = vmatpush.msrb.mxu1 %v2441_v32  ;;  %v2449_v32 = vld [vmem:[%s5122_s4 + $0x490] sm:$0xff] }
 0x237   :  { %1473 = vmatpush.msrb.mxu0 %v3314_v52 }
 0x238   :  { %1174 = vmatpush.msra.mxu2 %v3321_v41  ;;  %1026 = vmatpush.msrb.mxu1 %v2440_v47  ;;  %v2448_v47 = vld [vmem:[%s5122_s4 + $0x488] sm:$0xff] }
 0x239   :  { %1474 = vmatpush.msrb.mxu0 %v3321_v41 }
 0x23a   :  { %1175 = vmatpush.msra.mxu2 %v3330_v46  ;;  %1027 = vmatpush.msrb.mxu1 %v2439_v28  ;;  %v2468_v28 = vld [vmem:[%s5122_s4 + $0x520] sm:$0xff] }
 0x23b   :  { %1475 = vmatpush.msrb.mxu0 %v3330_v46 }
 0x23c   :  { %1176 = vmatpush.msra.mxu2 %v3335_v18  ;;  %1028 = vmatpush.msrb.mxu1 %v2438_v38  ;;  %v2495_v38 = vld [vmem:[%s5122_s4 + $0x5f0] sm:$0xff] }
 0x23d   :  { %1476 = vmatpush.msrb.mxu0 %v3335_v18 }
 0x23e   :  { %1177 = vmatpush.msra.mxu2 %v3340_v13  ;;  %1029 = vmatpush.msrb.mxu1 %v2437_v40  ;;  %v2494_v40 = vld [vmem:[%s5122_s4 + $0x5e8] sm:$0xff] }
 0x23f   :  { %1477 = vmatpush.msrb.mxu0 %v3340_v13 }
 0x240   :  { %1178 = vmatpush.msra.mxu2 %v3345_v24  ;;  %1030 = vmatpush.msrb.mxu1 %v2436_v53  ;;  %v2493_v53 = vld [vmem:[%s5122_s4 + $0x5e0] sm:$0xff] }
 0x241   :  { %1478 = vmatpush.msrb.mxu0 %v3345_v24  ;;  %v1001_v8 = vpop.f32.mrf.mxu0 }
 0x242   :  { %1179 = vmatpush.msra.mxu2 %v3350_v25  ;;  %1031 = vmatpush.msrb.mxu1 %v2435_v34  ;;  %v2582_v34 = vld [vmem:[%s5123_s3 + $0x88] sm:$0xff] }
 0x243   :  { %1479 = vmatpush.msrb.mxu0 %v3350_v25  ;;  %1180 = vmatmul.f32.vlgmr.msra.gmra.mxu2 %v2480_v56  ;;  %v2414_v56 = vld [vmem:[%s5122_s4 + $0x388] sm:$0xff] }
 0x244   :  { %1284 = vmatpush.msrb.mxu2 %v3212_v58  ;;  %1480 = vmatmul.f32.vlgmr.msrb.gmra.mxu0 %v2565_v48  ;;  %v2434_v48 = vld [vmem:[%s5122_s4 + $0x420] sm:$0xff] }
 0x245   :  { %1584 = vmatpush.msra.mxu0 %v3212_v58  ;;  %1032 = vmatpush.msrb.mxu1 %v2434_v48  ;;  %v2492_v48 = vld [vmem:[%s5122_s4 + $0x5d8] sm:$0xff] }
 0x246   :  { %1285 = vmatpush.msrb.mxu2 %v3224_v55  ;;  %v3854_v27 = vpop.f32.mrf.mxu2 }
 0x247   :  { %1585 = vmatpush.msra.mxu0 %v3224_v55  ;;  %1033 = vmatpush.msrb.mxu1 %v2433_v21  ;;  %v2491_v21 = vld [vmem:[%s5122_s4 + $0x5d0] sm:$0xff] }
 0x248   :  { %1286 = vmatpush.msrb.mxu2 %v3237_v62 }
 0x249   :  { %1586 = vmatpush.msra.mxu0 %v3237_v62  ;;  %1034 = vmatpush.msrb.mxu1 %v2432_v30  ;;  %v2512_v30 = vld [vmem:[%s5122_s4 + $0x670] sm:$0xff] }
 0x24a   :  { %1287 = vmatpush.msrb.mxu2 %v3253_v15 }
 0x24b   :  { %1587 = vmatpush.msra.mxu0 %v3253_v15  ;;  %1035 = vmatpush.msrb.mxu1 %v2431_v39  ;;  %v2511_v39 = vld [vmem:[%s5122_s4 + $0x668] sm:$0xff] }
 0x24c   :  { %1288 = vmatpush.msrb.mxu2 %v3264_v11 }
 0x24d   :  { %1588 = vmatpush.msra.mxu0 %v3264_v11  ;;  %1036 = vmatpush.msrb.mxu1 %v2430_v7  ;;  %v2510_v7 = vld [vmem:[%s5122_s4 + $0x660] sm:$0xff] }
 0x24e   :  { %1289 = vmatpush.msrb.mxu2 %v3277_v14  ;;  %v701_v45 = vpop.f32.mrf.mxu2  ;;  %1037 = vmatmul.f32.vlgmr.msrb.gmra.mxu1 %v1001_v8  ;;  %v2488_v8 = vld [vmem:[%s5122_s4 + $0x5b8] sm:$0xff] }
 0x24f   :  { %1589 = vmatpush.msra.mxu0 %v3277_v14  ;;  %737 = vmatmul.f32.vlgmr.msra.gmra.mxu3 %v701_v45  ;;  %v2458_v45 = vld [vmem:[%s5122_s4 + $0x4d8] sm:$0xff] }
 0x250   :  { %1290 = vmatpush.msrb.mxu2 %v3288_v42  ;;  %961 = vmatpush.msra.mxu3 %v2428_v12  ;;  %v2548_v12 = vld [vmem:[%s5123_s3 + $0x78] sm:$0xff] }
 0x251   :  { %1590 = vmatpush.msra.mxu0 %v3288_v42  ;;  %1141 = vmatpush.msra.mxu1 %v2479_v26  ;;  %v2487_v26 = vld [vmem:[%s5122_s4 + $0x5b0] sm:$0xff] }
 0x252   :  { %1291 = vmatpush.msrb.mxu2 %v5147_v16  ;;  %962 = vmatpush.msra.mxu3 %v2427_v35  ;;  %v2456_v35 = vld [vmem:[%s5122_s4 + $0x4c8] sm:$0xff] }
 0x253   :  { %1591 = vmatpush.msra.mxu0 %v5147_v16  ;;  %1142 = vmatpush.msra.mxu1 %v2478_v6  ;;  %v2507_v6 = vld [vmem:[%s5122_s4 + $0x648] sm:$0xff] }
 0x254   :  { %1292 = vmatpush.msrb.mxu2 %v5150_v63  ;;  %963 = vmatpush.msra.mxu3 %v2426_v49  ;;  %v2476_v49 = vld [vmem:[%s5122_s4 + $0x560] sm:$0xff] }
 0x255   :  { %1592 = vmatpush.msra.mxu0 %v5150_v63  ;;  %1143 = vmatpush.msra.mxu1 %v2477_v3  ;;  %v2506_v3 = vld [vmem:[%s5122_s4 + $0x640] sm:$0xff] }
 0x256   :  { %1293 = vmatpush.msrb.mxu2 %v3314_v52  ;;  %964 = vmatpush.msra.mxu3 %v2425_v54  ;;  %v2455_v54 = vld [vmem:[%s5122_s4 + $0x4c0] sm:$0xff] }
 0x257   :  { %1593 = vmatpush.msra.mxu0 %v3314_v52  ;;  %1144 = vmatpush.msra.mxu1 %v2476_v49  ;;  %v2484_v49 = vld [vmem:[%s5122_s4 + $0x598] sm:$0xff] }
 0x258   :  { %1294 = vmatpush.msrb.mxu2 %v3321_v41  ;;  %965 = vmatpush.msra.mxu3 %v2424_v59  ;;  %v2454_v59 = vld [vmem:[%s5122_s4 + $0x4b8] sm:$0xff] }
 0x259   :  { %1594 = vmatpush.msra.mxu0 %v3321_v41  ;;  %1145 = vmatpush.msra.mxu1 %v2475_v61  ;;  %v2504_v61 = vld [vmem:[%s5122_s4 + $0x630] sm:$0xff] }
 0x25a   :  { %1295 = vmatpush.msrb.mxu2 %v3330_v46  ;;  %966 = vmatpush.msra.mxu3 %v2423_v19  ;;  %v2453_v19 = vld [vmem:[%s5122_s4 + $0x4b0] sm:$0xff] }
 0x25b   :  { %1595 = vmatpush.msra.mxu0 %v3330_v46  ;;  %1146 = vmatpush.msra.mxu1 %v2474_v57  ;;  %v2503_v57 = vld [vmem:[%s5122_s4 + $0x628] sm:$0xff] }
 0x25c   :  { %1296 = vmatpush.msrb.mxu2 %v3335_v18  ;;  %967 = vmatpush.msra.mxu3 %v2422_v37  ;;  %v2452_v37 = vld [vmem:[%s5122_s4 + $0x4a8] sm:$0xff] }
 0x25d   :  { %1596 = vmatpush.msra.mxu0 %v3335_v18  ;;  %1147 = vmatpush.msra.mxu1 %v2473_v23  ;;  %v2502_v23 = vld [vmem:[%s5122_s4 + $0x620] sm:$0xff] }
 0x25e   :  { %1297 = vmatpush.msrb.mxu2 %v3340_v13  ;;  %968 = vmatpush.msra.mxu3 %v2421_v0  ;;  %v2451_v0 = vld [vmem:[%s5122_s4 + $0x4a0] sm:$0xff] }
 0x25f   :  { %1597 = vmatpush.msra.mxu0 %v3340_v13  ;;  %1148 = vmatpush.msra.mxu1 %v2472_v22  ;;  %v2500_v22 = vld [vmem:[%s5122_s4 + $0x610] sm:$0xff] }
 0x260   :  { %1298 = vmatpush.msrb.mxu2 %v3345_v24  ;;  %969 = vmatpush.msra.mxu3 %v2420_v20  ;;  %v2471_v20 = vld [vmem:[%s5122_s4 + $0x538] sm:$0xff] }
 0x261   :  { %1598 = vmatpush.msra.mxu0 %v3345_v24  ;;  %1149 = vmatpush.msra.mxu1 %v2471_v20  ;;  %v2616_v20 = vld [vmem:[%s5123_s3 + $0x98] sm:$0xff] }
 0x262   :  { %1299 = vmatpush.msrb.mxu2 %v3350_v25  ;;  %970 = vmatpush.msra.mxu3 %v2419_v33  ;;  %v2470_v33 = vld [vmem:[%s5122_s4 + $0x530] sm:$0xff] }
 0x263   :  { %1599 = vmatpush.msra.mxu0 %v3350_v25  ;;  %1300 = vmatmul.f32.vlgmr.msrb.gmra.mxu2 %v2514_v1  ;;  %v2450_v1 = vld [vmem:[%s5122_s4 + $0x498] sm:$0xff] }
 0x264   :  { %1404 = vmatpush.msra.mxu2 %v3212_v58  ;;  %971 = vmatpush.msra.mxu3 %v2418_v10  ;;  %v2447_v10 = vld [vmem:[%s5122_s4 + $0x480] sm:$0xff] }
 0x265   :  { %1704 = vmatpush.msrb.mxu0 %v3212_v58  ;;  %1150 = vmatpush.msra.mxu1 %v2470_v33  ;;  %v2527_v33 = vld [vmem:[%s5122_s4 + $0x6e0] sm:$0xff] }
 0x266   :  { %1405 = vmatpush.msra.mxu2 %v3224_v55  ;;  %v821_v5 = vpop.f32.mrf.mxu2  ;;  %972 = vmatpush.msra.mxu3 %v2417_v29  ;;  %v2496_v29 = vld [vmem:[%s5122_s4 + $0x5f8] sm:$0xff] }
 0x267   :  { %1705 = vmatpush.msrb.mxu0 %v3224_v55  ;;  %857 = vmatmul.f32.vlgmr.msrb.gmra.mxu3 %v821_v5  ;;  %v2469_v5 = vld [vmem:[%s5122_s4 + $0x528] sm:$0xff] }
 0x268   :  { %1406 = vmatpush.msra.mxu2 %v3237_v62  ;;  %1600 = vmatmul.f32.vlgmr.msra.gmra.mxu0 %v2599_v44  ;;  %v2467_v44 = vld [vmem:[%s5122_s4 + $0x518] sm:$0xff] }
 0x269   :  { %1706 = vmatpush.msrb.mxu0 %v3237_v62  ;;  %973 = vmatpush.msra.mxu3 %v2416_v60  ;;  %v2466_v60 = vld [vmem:[%s5122_s4 + $0x510] sm:$0xff] }
 0x26a   :  { %1407 = vmatpush.msra.mxu2 %v3253_v15  ;;  %1151 = vmatpush.msra.mxu1 %v2469_v5 }
 0x26b   :  { %1707 = vmatpush.msrb.mxu0 %v3253_v15  ;;  %974 = vmatpush.msra.mxu3 %v2415_v36  ;;  %v2465_v36 = vld [vmem:[%s5122_s4 + $0x508] sm:$0xff] }
 0x26c   :  { %1408 = vmatpush.msra.mxu2 %v3264_v11  ;;  %1152 = vmatpush.msra.mxu1 %v2468_v28  ;;  %v2526_v28 = vld [vmem:[%s5122_s4 + $0x6d8] sm:$0xff] }
 0x26d   :  { %1708 = vmatpush.msrb.mxu0 %v3264_v11  ;;  %975 = vmatpush.msra.mxu3 %v2414_v56  ;;  %v2464_v56 = vld [vmem:[%s5122_s4 + $0x500] sm:$0xff] }
 0x26e   :  { %1409 = vmatpush.msra.mxu2 %v3277_v14  ;;  %1153 = vmatpush.msra.mxu1 %v2467_v44  ;;  %v2546_v44 = vld [vmem:[%s5122_s4 + $0x770] sm:$0xff] }
 0x26f   :  { %1709 = vmatpush.msrb.mxu0 %v3277_v14  ;;  %976 = vmatpush.msra.mxu3 %v2413_v31  ;;  %v1121_v31 = vpop.f32.mrf.mxu0 }
 0x270   :  { %1410 = vmatpush.msra.mxu2 %v3288_v42  ;;  %1154 = vmatpush.msra.mxu1 %v2466_v60  ;;  %v2545_v60 = vld [vmem:[%s5122_s4 + $0x768] sm:$0xff] }
 0x271   :  { %1710 = vmatpush.msrb.mxu0 %v3288_v42  ;;  %1081 = vmatpush.msrb.mxu3 %v2462_v4  ;;  %v2513_v4 = vld [vmem:[%s5122_s4 + $0x678] sm:$0xff] }
 0x272   :  { %1411 = vmatpush.msra.mxu2 %v5147_v16  ;;  %1155 = vmatpush.msra.mxu1 %v2465_v36  ;;  %v2544_v36 = vld [vmem:[%s5122_s4 + $0x760] sm:$0xff] }
 0x273   :  { %1711 = vmatpush.msrb.mxu0 %v5147_v16  ;;  %1082 = vmatpush.msrb.mxu3 %v2461_v2 }
 0x274   :  { %1412 = vmatpush.msra.mxu2 %v5150_v63  ;;  %1156 = vmatpush.msra.mxu1 %v2464_v56  ;;  %v2543_v56 = vld [vmem:[%s5122_s4 + $0x758] sm:$0xff] }
 0x275   :  { %1712 = vmatpush.msrb.mxu0 %v5150_v63  ;;  %1083 = vmatpush.msrb.mxu3 %v2460_v43  ;;  %v2490_v43 = vld [vmem:[%s5122_s4 + $0x5c8] sm:$0xff] }
 0x276   :  { %1413 = vmatpush.msra.mxu2 %v3314_v52  ;;  %1157 = vmatmul.f32.vlgmr.msra.gmra.mxu1 %v1121_v31  ;;  %v2542_v31 = vld [vmem:[%s5122_s4 + $0x750] sm:$0xff] }
 0x277   :  { %1713 = vmatpush.msrb.mxu0 %v3314_v52  ;;  %1084 = vmatpush.msrb.mxu3 %v2459_v9  ;;  %v2489_v9 = vld [vmem:[%s5122_s4 + $0x5c0] sm:$0xff] }
 0x278   :  { %1414 = vmatpush.msra.mxu2 %v3321_v41  ;;  %1261 = vmatpush.msrb.mxu1 %v2513_v4  ;;  %v2541_v4 = vld [vmem:[%s5122_s4 + $0x748] sm:$0xff] }
 0x279   :  { %1714 = vmatpush.msrb.mxu0 %v3321_v41  ;;  %1085 = vmatpush.msrb.mxu3 %v2458_v45  ;;  %v2509_v45 = vld [vmem:[%s5122_s4 + $0x658] sm:$0xff] }
 0x27a   :  { %1415 = vmatpush.msra.mxu2 %v3330_v46  ;;  %1262 = vmatpush.msrb.mxu1 %v2512_v30  ;;  %v2540_v30 = vld [vmem:[%s5122_s4 + $0x740] sm:$0xff] }
 0x27b   :  { %1715 = vmatpush.msrb.mxu0 %v3330_v46  ;;  %1086 = vmatpush.msrb.mxu3 %v2457_v50  ;;  %v2508_v50 = vld [vmem:[%s5122_s4 + $0x650] sm:$0xff] }
 0x27c   :  { %1416 = vmatpush.msra.mxu2 %v3335_v18  ;;  %1263 = vmatpush.msrb.mxu1 %v2511_v39  ;;  %v2539_v39 = vld [vmem:[%s5122_s4 + $0x738] sm:$0xff] }
 0x27d   :  { %1716 = vmatpush.msrb.mxu0 %v3335_v18  ;;  %1087 = vmatpush.msrb.mxu3 %v2456_v35  ;;  %v2485_v35 = vld [vmem:[%s5122_s4 + $0x5a0] sm:$0xff] }
 0x27e   :  { %1417 = vmatpush.msra.mxu2 %v3340_v13  ;;  %1264 = vmatpush.msrb.mxu1 %v2510_v7  ;;  %v2538_v7 = vld [vmem:[%s5122_s4 + $0x730] sm:$0xff] }
 0x27f   :  { %1717 = vmatpush.msrb.mxu0 %v3340_v13  ;;  %1088 = vmatpush.msrb.mxu3 %v2455_v54  ;;  %v2483_v54 = vld [vmem:[%s5122_s4 + $0x590] sm:$0xff] }
 0x280   :  { %1418 = vmatpush.msra.mxu2 %v3345_v24  ;;  %1265 = vmatpush.msrb.mxu1 %v2509_v45  ;;  %v2537_v45 = vld [vmem:[%s5122_s4 + $0x728] sm:$0xff] }
 0x281   :  { %1718 = vmatpush.msrb.mxu0 %v3345_v24  ;;  %1089 = vmatpush.msrb.mxu3 %v2454_v59  ;;  %v2482_v59 = vld [vmem:[%s5122_s4 + $0x588] sm:$0xff]  ;;  %v1241_v5 = vpop.f32.mrf.mxu0 }
 0x282   :  { %1419 = vmatpush.msra.mxu2 %v3350_v25  ;;  %1266 = vmatpush.msrb.mxu1 %v2508_v50  ;;  %v2536_v50 = vld [vmem:[%s5122_s4 + $0x720] sm:$0xff] }
 0x283   :  { %1719 = vmatpush.msrb.mxu0 %v3350_v25  ;;  %1420 = vmatmul.f32.vlgmr.msra.gmra.mxu2 %v2548_v12  ;;  %v2486_v12 = vld [vmem:[%s5122_s4 + $0x5a8] sm:$0xff] }
 0x284   :  { %1524 = vmatpush.msrb.mxu2 %v3212_v58  ;;  %1090 = vmatpush.msrb.mxu3 %v2453_v19  ;;  %v2481_v19 = vld [vmem:[%s5122_s4 + $0x580] sm:$0xff] }
 0x285   :  { %1824 = vmatpush.msra.mxu0 %v3212_v58  ;;  %1267 = vmatpush.msrb.mxu1 %v2507_v6  ;;  %v2564_v6 = vld [vmem:[%s5122_s4 + $0x7f8] sm:$0xff] }
 0x286   :  { %1525 = vmatpush.msrb.mxu2 %v3224_v55  ;;  %v941_v17 = vpop.f32.mrf.mxu2  ;;  %1091 = vmatpush.msrb.mxu3 %v2452_v37  ;;  %v2530_v37 = vld [vmem:[%s5122_s4 + $0x6f8] sm:$0xff] }
 0x287   :  { %1825 = vmatpush.msra.mxu0 %v3224_v55  ;;  %977 = vmatmul.f32.vlgmr.msra.gmra.mxu3 %v941_v17  ;;  %v2505_v17 = vld [vmem:[%s5122_s4 + $0x638] sm:$0xff] }
 0x288   :  { %1526 = vmatpush.msrb.mxu2 %v3237_v62  ;;  %1720 = vmatmul.f32.vlgmr.msrb.gmra.mxu0 %v2633_v51  ;;  %v2501_v51 = vld [vmem:[%s5122_s4 + $0x618] sm:$0xff] }
 0x289   :  { %1826 = vmatpush.msra.mxu0 %v3237_v62  ;;  %1092 = vmatpush.msrb.mxu3 %v2451_v0  ;;  %v2529_v0 = vld [vmem:[%s5122_s4 + $0x6f0] sm:$0xff] }
 0x28a   :  { %1527 = vmatpush.msrb.mxu2 %v3253_v15  ;;  %1268 = vmatpush.msrb.mxu1 %v2506_v3  ;;  %v2563_v3 = vld [vmem:[%s5122_s4 + $0x7f0] sm:$0xff] }
 0x28b   :  { %1827 = vmatpush.msra.mxu0 %v3253_v15  ;;  %1093 = vmatpush.msrb.mxu3 %v2450_v1  ;;  %v2528_v1 = vld [vmem:[%s5122_s4 + $0x6e8] sm:$0xff] }
 0x28c   :  { %1528 = vmatpush.msrb.mxu2 %v3264_v11  ;;  %1269 = vmatpush.msrb.mxu1 %v2505_v17  ;;  %v2650_v17 = vld [vmem:[%s5123_s3 + $0xa8] sm:$0xff] }
 0x28d   :  { %1828 = vmatpush.msra.mxu0 %v3264_v11  ;;  %1094 = vmatpush.msrb.mxu3 %v2449_v32  ;;  %v2499_v32 = vld [vmem:[%s5122_s4 + $0x608] sm:$0xff] }
 0x28e   :  { %1529 = vmatpush.msrb.mxu2 %v3277_v14  ;;  %1270 = vmatpush.msrb.mxu1 %v2504_v61  ;;  %v2533_v61 = vld [vmem:[%s5122_s4 + $0x708] sm:$0xff] }
 0x28f   :  { %1829 = vmatpush.msra.mxu0 %v3277_v14  ;;  %1095 = vmatpush.msrb.mxu3 %v2448_v47  ;;  %v2498_v47 = vld [vmem:[%s5122_s4 + $0x600] sm:$0xff] }
 0x290   :  { %1530 = vmatpush.msrb.mxu2 %v3288_v42  ;;  %1271 = vmatpush.msrb.mxu1 %v2503_v57  ;;  %v2532_v57 = vld [vmem:[%s5122_s4 + $0x700] sm:$0xff] }
 0x291   :  { %1830 = vmatpush.msra.mxu0 %v3288_v42  ;;  %1096 = vmatpush.msrb.mxu3 %v2447_v10  ;;  %v2547_v10 = vld [vmem:[%s5122_s4 + $0x778] sm:$0xff] }
 0x292   :  { %1531 = vmatpush.msrb.mxu2 %v5147_v16  ;;  %1272 = vmatpush.msrb.mxu1 %v2502_v23  ;;  %v2560_v23 = vld [vmem:[%s5122_s4 + $0x7d8] sm:$0xff] }
 0x293   :  { %1831 = vmatpush.msra.mxu0 %v5147_v16  ;;  %1201 = vmatpush.msra.mxu3 %v2496_v29 }
 0x294   :  { %1532 = vmatpush.msrb.mxu2 %v5150_v63  ;;  %1273 = vmatpush.msrb.mxu1 %v2501_v51  ;;  %v2581_v51 = vld [vmem:[%s5122_s4 + $0x878] sm:$0xff] }
 0x295   :  { %1832 = vmatpush.msra.mxu0 %v5150_v63  ;;  %1202 = vmatpush.msra.mxu3 %v2495_v38  ;;  %v2525_v38 = vld [vmem:[%s5122_s4 + $0x6d0] sm:$0xff] }
 0x296   :  { %1533 = vmatpush.msrb.mxu2 %v3314_v52  ;;  %1274 = vmatpush.msrb.mxu1 %v2500_v22  ;;  %v2701_v22 = vld [vmem:[%s5123_s3 + $0xc0] sm:$0xff] }
 0x297   :  { %1833 = vmatpush.msra.mxu0 %v3314_v52  ;;  %1203 = vmatpush.msra.mxu3 %v2494_v40  ;;  %v2524_v40 = vld [vmem:[%s5122_s4 + $0x6c8] sm:$0xff] }
 0x298   :  { %1534 = vmatpush.msrb.mxu2 %v3321_v41  ;;  %1275 = vmatpush.msrb.mxu1 %v2499_v32  ;;  %v2577_v32 = vld [vmem:[%s5122_s4 + $0x858] sm:$0xff] }
 0x299   :  { %1834 = vmatpush.msra.mxu0 %v3321_v41  ;;  %1204 = vmatpush.msra.mxu3 %v2493_v53  ;;  %v2523_v53 = vld [vmem:[%s5122_s4 + $0x6c0] sm:$0xff] }
 0x29a   :  { %1535 = vmatpush.msrb.mxu2 %v3330_v46  ;;  %1276 = vmatpush.msrb.mxu1 %v2498_v47  ;;  %v2575_v47 = vld [vmem:[%s5122_s4 + $0x848] sm:$0xff] }
 0x29b   :  { %1835 = vmatpush.msra.mxu0 %v3330_v46  ;;  %1205 = vmatpush.msra.mxu3 %v2492_v48  ;;  %v2521_v48 = vld [vmem:[%s5122_s4 + $0x6b0] sm:$0xff] }
 0x29c   :  { %1536 = vmatpush.msrb.mxu2 %v3335_v18  ;;  %1277 = vmatmul.f32.vlgmr.msrb.gmra.mxu1 %v1241_v5  ;;  %v2574_v5 = vld [vmem:[%s5122_s4 + $0x840] sm:$0xff] }
 0x29d   :  { %1836 = vmatpush.msra.mxu0 %v3335_v18  ;;  %1206 = vmatpush.msra.mxu3 %v2491_v21  ;;  %v2667_v21 = vld [vmem:[%s5123_s3 + $0xb0] sm:$0xff] }
 0x29e   :  { %1537 = vmatpush.msrb.mxu2 %v3340_v13  ;;  %1381 = vmatpush.msra.mxu1 %v2547_v10  ;;  %v2573_v10 = vld [vmem:[%s5122_s4 + $0x838] sm:$0xff] }
 0x29f   :  { %1837 = vmatpush.msra.mxu0 %v3340_v13  ;;  %1207 = vmatpush.msra.mxu3 %v2490_v43  ;;  %v2519_v43 = vld [vmem:[%s5122_s4 + $0x6a0] sm:$0xff] }
 0x2a0   :  { %1538 = vmatpush.msrb.mxu2 %v3345_v24  ;;  %1382 = vmatpush.msra.mxu1 %v2546_v44  ;;  %v2570_v44 = vld [vmem:[%s5122_s4 + $0x820] sm:$0xff] }
 0x2a1   :  { %1838 = vmatpush.msra.mxu0 %v3345_v24  ;;  %1208 = vmatpush.msra.mxu3 %v2489_v9  ;;  %v2518_v9 = vld [vmem:[%s5122_s4 + $0x698] sm:$0xff] }
 0x2a2   :  { %1539 = vmatpush.msrb.mxu2 %v3350_v25  ;;  %1383 = vmatpush.msra.mxu1 %v2545_v60  ;;  %v2684_v60 = vld [vmem:[%s5123_s3 + $0xb8] sm:$0xff] }
 0x2a3   :  { %1839 = vmatpush.msra.mxu0 %v3350_v25  ;;  %1540 = vmatmul.f32.vlgmr.msrb.gmra.mxu2 %v2582_v34  ;;  %v2522_v34 = vld [vmem:[%s5122_s4 + $0x6b8] sm:$0xff] }
 0x2a4   :  { %1644 = vmatpush.msra.mxu2 %v3212_v58  ;;  %1209 = vmatpush.msra.mxu3 %v2488_v8  ;;  %v2517_v8 = vld [vmem:[%s5122_s4 + $0x690] sm:$0xff] }
 0x2a5   :  { %1944 = vmatpush.msrb.mxu0 %v3212_v58  ;;  %1384 = vmatpush.msra.mxu1 %v2544_v36  ;;  %v2595_v36 = vld [vmem:[%s5122_s4 + $0x8e0] sm:$0xff] }
 0x2a6   :  { %1645 = vmatpush.msra.mxu2 %v3224_v55  ;;  %v1061_v2 = vpop.f32.mrf.mxu2  ;;  %1210 = vmatpush.msra.mxu3 %v2487_v26  ;;  %v2516_v26 = vld [vmem:[%s5122_s4 + $0x688] sm:$0xff] }
 0x2a7   :  { %1945 = vmatpush.msrb.mxu0 %v3224_v55  ;;  %1097 = vmatmul.f32.vlgmr.msrb.gmra.mxu3 %v1061_v2  ;;  %v2520_v2 = vld [vmem:[%s5122_s4 + $0x6a8] sm:$0xff] }
 0x2a8   :  { %1646 = vmatpush.msra.mxu2 %v3237_v62  ;;  %1211 = vmatpush.msra.mxu3 %v2486_v12  ;;  %v2515_v12 = vld [vmem:[%s5122_s4 + $0x680] sm:$0xff] }
 0x2a9   :  { %1946 = vmatpush.msrb.mxu0 %v3237_v62  ;;  %1385 = vmatpush.msra.mxu1 %v2543_v56 }
 0x2aa   :  { %1647 = vmatpush.msra.mxu2 %v3253_v15  ;;  %1212 = vmatpush.msra.mxu3 %v2485_v35  ;;  %v2535_v35 = vld [vmem:[%s5122_s4 + $0x718] sm:$0xff] }
 0x2ab   :  { %1947 = vmatpush.msrb.mxu0 %v3253_v15  ;;  %1386 = vmatpush.msra.mxu1 %v2542_v31  ;;  %v2615_v31 = vld [vmem:[%s5122_s4 + $0x978] sm:$0xff] }
 0x2ac   :  { %1648 = vmatpush.msra.mxu2 %v3264_v11  ;;  %1213 = vmatpush.msra.mxu3 %v2484_v49  ;;  %v2534_v49 = vld [vmem:[%s5122_s4 + $0x710] sm:$0xff] }
 0x2ad   :  { %1948 = vmatpush.msrb.mxu0 %v3264_v11  ;;  %1387 = vmatpush.msra.mxu1 %v2541_v4  ;;  %v2614_v4 = vld [vmem:[%s5122_s4 + $0x970] sm:$0xff] }
 0x2ae   :  { %1649 = vmatpush.msra.mxu2 %v3277_v14  ;;  %1214 = vmatpush.msra.mxu3 %v2483_v54  ;;  %v2562_v54 = vld [vmem:[%s5122_s4 + $0x7e8] sm:$0xff] }
 0x2af   :  { %1949 = vmatpush.msrb.mxu0 %v3277_v14  ;;  %1388 = vmatpush.msra.mxu1 %v2540_v30  ;;  %v2591_v30 = vld [vmem:[%s5122_s4 + $0x8c0] sm:$0xff] }
 0x2b0   :  { %1650 = vmatpush.msra.mxu2 %v3288_v42  ;;  %1215 = vmatpush.msra.mxu3 %v2482_v59  ;;  %v2561_v59 = vld [vmem:[%s5122_s4 + $0x7e0] sm:$0xff] }
 0x2b1   :  { %1950 = vmatpush.msrb.mxu0 %v3288_v42  ;;  %1389 = vmatpush.msra.mxu1 %v2539_v39  ;;  %v2590_v39 = vld [vmem:[%s5122_s4 + $0x8b8] sm:$0xff] }
 0x2b2   :  { %1651 = vmatpush.msra.mxu2 %v5147_v16  ;;  %1216 = vmatpush.msra.mxu3 %v2481_v19  ;;  %v1361_v19 = vpop.f32.mrf.mxu0 }
 0x2b3   :  { %1951 = vmatpush.msrb.mxu0 %v5147_v16  ;;  %1390 = vmatpush.msra.mxu1 %v2538_v7  ;;  %v2589_v7 = vld [vmem:[%s5122_s4 + $0x8b0] sm:$0xff] }
 0x2b4   :  { %1652 = vmatpush.msra.mxu2 %v5150_v63  ;;  %1321 = vmatpush.msrb.mxu3 %v2530_v37 }
 0x2b5   :  { %1952 = vmatpush.msrb.mxu0 %v5150_v63  ;;  %1391 = vmatpush.msra.mxu1 %v2537_v45  ;;  %v2588_v45 = vld [vmem:[%s5122_s4 + $0x8a8] sm:$0xff] }
 0x2b6   :  { %1653 = vmatpush.msra.mxu2 %v3314_v52  ;;  %1322 = vmatpush.msrb.mxu3 %v2529_v0  ;;  %v2580_v0 = vld [vmem:[%s5122_s4 + $0x870] sm:$0xff] }
 0x2b7   :  { %1953 = vmatpush.msrb.mxu0 %v3314_v52  ;;  %1392 = vmatpush.msra.mxu1 %v2536_v50  ;;  %v2587_v50 = vld [vmem:[%s5122_s4 + $0x8a0] sm:$0xff] }
 0x2b8   :  { %1654 = vmatpush.msra.mxu2 %v3321_v41  ;;  %1323 = vmatpush.msrb.mxu3 %v2528_v1  ;;  %v2557_v1 = vld [vmem:[%s5122_s4 + $0x7c0] sm:$0xff] }
 0x2b9   :  { %1954 = vmatpush.msrb.mxu0 %v3321_v41  ;;  %1393 = vmatpush.msra.mxu1 %v2535_v35  ;;  %v2607_v35 = vld [vmem:[%s5122_s4 + $0x938] sm:$0xff] }
 0x2ba   :  { %1655 = vmatpush.msra.mxu2 %v3330_v46  ;;  %1324 = vmatpush.msrb.mxu3 %v2527_v33  ;;  %v2576_v33 = vld [vmem:[%s5122_s4 + $0x850] sm:$0xff] }
 0x2bb   :  { %1955 = vmatpush.msrb.mxu0 %v3330_v46  ;;  %1394 = vmatpush.msra.mxu1 %v2534_v49  ;;  %v2606_v49 = vld [vmem:[%s5122_s4 + $0x930] sm:$0xff] }
 0x2bc   :  { %1656 = vmatpush.msra.mxu2 %v3335_v18  ;;  %1325 = vmatpush.msrb.mxu3 %v2526_v28  ;;  %v2572_v28 = vld [vmem:[%s5122_s4 + $0x830] sm:$0xff] }
 0x2bd   :  { %1956 = vmatpush.msrb.mxu0 %v3335_v18  ;;  %1395 = vmatpush.msra.mxu1 %v2533_v61  ;;  %v2583_v61 = vld [vmem:[%s5122_s4 + $0x880] sm:$0xff] }
 0x2be   :  { %1657 = vmatpush.msra.mxu2 %v3340_v13  ;;  %1326 = vmatpush.msrb.mxu3 %v2525_v38  ;;  %v2569_v38 = vld [vmem:[%s5122_s4 + $0x818] sm:$0xff] }
 0x2bf   :  { %1957 = vmatpush.msrb.mxu0 %v3340_v13  ;;  %1396 = vmatpush.msra.mxu1 %v2532_v57  ;;  %v2632_v57 = vld [vmem:[%s5122_s4 + $0x9f8] sm:$0xff] }
 0x2c0   :  { %1658 = vmatpush.msra.mxu2 %v3345_v24  ;;  %1327 = vmatpush.msrb.mxu3 %v2524_v40  ;;  %v2596_v40 = vld [vmem:[%s5122_s4 + $0x8e8] sm:$0xff] }
 0x2c1   :  { %1958 = vmatpush.msrb.mxu0 %v3345_v24  ;;  %1397 = vmatmul.f32.vlgmr.msra.gmra.mxu1 %v1361_v19  ;;  %v1481_v56 = vpop.f32.mrf.mxu0  ;;  %v2603_v19 = vld [vmem:[%s5122_s4 + $0x918] sm:$0xff] }
 0x2c2   :  { %1659 = vmatpush.msra.mxu2 %v3350_v25  ;;  %1328 = vmatpush.msrb.mxu3 %v2523_v53  ;;  %v2566_v53 = vld [vmem:[%s5122_s4 + $0x800] sm:$0xff] }
 0x2c3   :  { %1959 = vmatpush.msrb.mxu0 %v3350_v25  ;;  %1660 = vmatmul.f32.vlgmr.msra.gmra.mxu2 %v2616_v20  ;;  %v2578_v20 = vld [vmem:[%s5122_s4 + $0x860] sm:$0xff] }
 0x2c4   :  { %1764 = vmatpush.msrb.mxu2 %v3212_v58  ;;  %1329 = vmatpush.msrb.mxu3 %v2522_v34 }
 0x2c5   :  { %1840 = vmatmul.f32.vlgmr.msra.gmra.mxu0 %v2667_v21  ;;  %1501 = vmatpush.msrb.mxu1 %v2581_v51  ;;  %v2592_v21 = vld [vmem:[%s5122_s4 + $0x8c8] sm:$0xff] }
 0x2c6   :  { %1765 = vmatpush.msrb.mxu2 %v3224_v55  ;;  %v1181_v29 = vpop.f32.mrf.mxu2  ;;  %1330 = vmatpush.msrb.mxu3 %v2521_v48  ;;  %v2593_v48 = vld [vmem:[%s5122_s4 + $0x8d0] sm:$0xff]  ;;  %v2630_v51 = vld [vmem:[%s5122_s4 + $0x9e8] sm:$0xff] }
 0x2c7   :  { %1217 = vmatmul.f32.vlgmr.msra.gmra.mxu3 %v1181_v29  ;;  %1502 = vmatpush.msrb.mxu1 %v2580_v0  ;;  %v2571_v29 = vld [vmem:[%s5122_s4 + $0x828] sm:$0xff]  ;;  %v2629_v0 = vld [vmem:[%s5122_s4 + $0x9e0] sm:$0xff] }
 0x2c8   :  { %1766 = vmatpush.msrb.mxu2 %v3237_v62  ;;  %1331 = vmatpush.msrb.mxu3 %v2520_v2  ;;  %v2613_v2 = vld [vmem:[%s5122_s4 + $0x968] sm:$0xff] }
 0x2ca   :  { %1767 = vmatpush.msrb.mxu2 %v3253_v15  ;;  %1332 = vmatpush.msrb.mxu3 %v2519_v43  ;;  %v2612_v43 = vld [vmem:[%s5122_s4 + $0x960] sm:$0xff] }
 0x2cc   :  { %1768 = vmatpush.msrb.mxu2 %v3264_v11  ;;  %1333 = vmatpush.msrb.mxu3 %v2518_v9  ;;  %v2611_v9 = vld [vmem:[%s5122_s4 + $0x958] sm:$0xff] }
 0x2cd   :  { %1960 = vmatmul.f32.vlgmr.msrb.gmra.mxu0 %v2701_v22 }
 0x2ce   :  { %1769 = vmatpush.msrb.mxu2 %v3277_v14  ;;  %1334 = vmatpush.msrb.mxu3 %v2517_v8  ;;  %v2610_v8 = vld [vmem:[%s5122_s4 + $0x950] sm:$0xff] }
 0x2d0   :  { %1770 = vmatpush.msrb.mxu2 %v3288_v42  ;;  %1335 = vmatpush.msrb.mxu3 %v2516_v26  ;;  %v2609_v26 = vld [vmem:[%s5122_s4 + $0x948] sm:$0xff] }
 0x2d2   :  { %1771 = vmatpush.msrb.mxu2 %v5147_v16  ;;  %1336 = vmatpush.msrb.mxu3 %v2515_v12  ;;  %v2608_v12 = vld [vmem:[%s5122_s4 + $0x940] sm:$0xff] }
 0x2d4   :  { %1772 = vmatpush.msrb.mxu2 %v5150_v63  ;;  %1441 = vmatpush.msra.mxu3 %v2564_v6  ;;  %v2586_v6 = vld [vmem:[%s5122_s4 + $0x898] sm:$0xff] }
 0x2d6   :  { %1773 = vmatpush.msrb.mxu2 %v3314_v52  ;;  %1442 = vmatpush.msra.mxu3 %v2563_v3  ;;  %v2585_v3 = vld [vmem:[%s5122_s4 + $0x890] sm:$0xff] }
 0x2d8   :  { %1774 = vmatpush.msrb.mxu2 %v3321_v41  ;;  %1443 = vmatpush.msra.mxu3 %v2562_v54  ;;  %v2605_v54 = vld [vmem:[%s5122_s4 + $0x928] sm:$0xff] }
 0x2da   :  { %1775 = vmatpush.msrb.mxu2 %v3330_v46  ;;  %1444 = vmatpush.msra.mxu3 %v2561_v59  ;;  %v2604_v59 = vld [vmem:[%s5122_s4 + $0x920] sm:$0xff] }
 0x2dc   :  { %1776 = vmatpush.msrb.mxu2 %v3335_v18  ;;  %1445 = vmatpush.msra.mxu3 %v2560_v23  ;;  %v2631_v23 = vld [vmem:[%s5122_s4 + $0x9f0] sm:$0xff] }
 0x2de   :  { %1777 = vmatpush.msrb.mxu2 %v3340_v13 }
 0x2e0   :  { %1778 = vmatpush.msrb.mxu2 %v3345_v24 }
 0x2e2   :  { %1779 = vmatpush.msrb.mxu2 %v3350_v25 }
 0x2e3   :  { %1780 = vmatmul.f32.vlgmr.msrb.gmra.mxu2 %v2650_v17  ;;  %v2584_v17 = vld [vmem:[%s5122_s4 + $0x888] sm:$0xff] }
 0x2e4   :  { %1884 = vmatpush.msra.mxu2 %v3212_v58  ;;  %v2559_v58 = vld [vmem:[%s5122_s4 + $0x7d0] sm:$0xff] }
 0x2e5   :  { %1446 = vmatpush.msra.mxu3 %v2559_v58  ;;  %v2601_v58 = vld [vmem:[%s5122_s4 + $0x908] sm:$0xff]  ;;  %v1601_v22 = vpop.f32.mrf.mxu0 }
 0x2e6   :  { %1885 = vmatpush.msra.mxu2 %v3224_v55  ;;  %v1301_v37 = vpop.f32.mrf.mxu2  ;;  %v2558_v55 = vld [vmem:[%s5122_s4 + $0x7c8] sm:$0xff] }
 0x2e7   :  { %1337 = vmatmul.f32.vlgmr.msrb.gmra.mxu3 %v1301_v37  ;;  %v2602_v37 = vld [vmem:[%s5122_s4 + $0x910] sm:$0xff] }
 0x2e8   :  { %1886 = vmatpush.msra.mxu2 %v3237_v62  ;;  %v2579_v62 = vld [vmem:[%s5122_s4 + $0x868] sm:$0xff]  ;;  %1447 = vmatpush.msra.mxu3 %v2558_v55  ;;  %v2600_v55 = vld [vmem:[%s5122_s4 + $0x900] sm:$0xff] }
 0x2e9   :  { %1503 = vmatpush.msrb.mxu1 %v2579_v62  ;;  %v2628_v62 = vld [vmem:[%s5122_s4 + $0x9d8] sm:$0xff] }
 0x2ea   :  { %1887 = vmatpush.msra.mxu2 %v3253_v15  ;;  %v2556_v15 = vld [vmem:[%s5122_s4 + $0x7b8] sm:$0xff]  ;;  %1448 = vmatpush.msra.mxu3 %v2557_v1 }
 0x2eb   :  { %1504 = vmatpush.msrb.mxu1 %v2578_v20  ;;  %v2649_v20 = vld [vmem:[%s5122_s4 + $0xa78] sm:$0xff] }
 0x2ec   :  { %1888 = vmatpush.msra.mxu2 %v3264_v11  ;;  %v2555_v11 = vld [vmem:[%s5122_s4 + $0x7b0] sm:$0xff]  ;;  %1449 = vmatpush.msra.mxu3 %v2556_v15 }
 0x2ed   :  { %1505 = vmatpush.msrb.mxu1 %v2577_v32  ;;  %v2627_v15 = vld [vmem:[%s5122_s4 + $0x9d0] sm:$0xff] }
 0x2ee   :  { %1889 = vmatpush.msra.mxu2 %v3277_v14  ;;  %v2554_v14 = vld [vmem:[%s5122_s4 + $0x7a8] sm:$0xff]  ;;  %1450 = vmatpush.msra.mxu3 %v2555_v11  ;;  %v2648_v32 = vld [vmem:[%s5122_s4 + $0xa70] sm:$0xff] }
 0x2ef   :  { %1506 = vmatpush.msrb.mxu1 %v2576_v33  ;;  %v2626_v11 = vld [vmem:[%s5122_s4 + $0x9c8] sm:$0xff] }
 0x2f0   :  { %1890 = vmatpush.msra.mxu2 %v3288_v42  ;;  %v2553_v42 = vld [vmem:[%s5122_s4 + $0x7a0] sm:$0xff]  ;;  %1451 = vmatpush.msra.mxu3 %v2554_v14  ;;  %v2647_v33 = vld [vmem:[%s5122_s4 + $0xa68] sm:$0xff] }
 0x2f1   :  { %1507 = vmatpush.msrb.mxu1 %v2575_v47  ;;  %v2625_v14 = vld [vmem:[%s5122_s4 + $0x9c0] sm:$0xff] }
 0x2f2   :  { %1891 = vmatpush.msra.mxu2 %v5147_v16  ;;  %v2552_v16 = vld [vmem:[%s5122_s4 + $0x798] sm:$0xff]  ;;  %1452 = vmatpush.msra.mxu3 %v2553_v42  ;;  %v2646_v47 = vld [vmem:[%s5122_s4 + $0xa60] sm:$0xff] }
 0x2f3   :  { %1508 = vmatpush.msrb.mxu1 %v2574_v5  ;;  %v2624_v42 = vld [vmem:[%s5122_s4 + $0x9b8] sm:$0xff] }
 0x2f4   :  { %1892 = vmatpush.msra.mxu2 %v5150_v63  ;;  %v2551_v63 = vld [vmem:[%s5122_s4 + $0x790] sm:$0xff]  ;;  %1453 = vmatpush.msra.mxu3 %v2552_v16  ;;  %v2645_v5 = vld [vmem:[%s5122_s4 + $0xa58] sm:$0xff] }
 0x2f5   :  { %1509 = vmatpush.msrb.mxu1 %v2573_v10  ;;  %v2623_v16 = vld [vmem:[%s5122_s4 + $0x9b0] sm:$0xff] }
 0x2f6   :  { %1893 = vmatpush.msra.mxu2 %v3314_v52  ;;  %v2550_v52 = vld [vmem:[%s5122_s4 + $0x788] sm:$0xff]  ;;  %1454 = vmatpush.msra.mxu3 %v2551_v63  ;;  %v2644_v10 = vld [vmem:[%s5122_s4 + $0xa50] sm:$0xff] }
 0x2f7   :  { %1510 = vmatpush.msrb.mxu1 %v2572_v28  ;;  %v2622_v63 = vld [vmem:[%s5122_s4 + $0x9a8] sm:$0xff] }
 0x2f8   :  { %1894 = vmatpush.msra.mxu2 %v3321_v41  ;;  %v2549_v41 = vld [vmem:[%s5122_s4 + $0x780] sm:$0xff]  ;;  %1455 = vmatpush.msra.mxu3 %v2550_v52  ;;  %v2643_v28 = vld [vmem:[%s5122_s4 + $0xa48] sm:$0xff] }
 0x2f9   :  { %1511 = vmatpush.msrb.mxu1 %v2571_v29  ;;  %v2621_v52 = vld [vmem:[%s5122_s4 + $0x9a0] sm:$0xff] }
 0x2fa   :  { %1895 = vmatpush.msra.mxu2 %v3330_v46  ;;  %v2598_v46 = vld [vmem:[%s5122_s4 + $0x8f8] sm:$0xff]  ;;  %1456 = vmatpush.msra.mxu3 %v2549_v41  ;;  %v2642_v29 = vld [vmem:[%s5122_s4 + $0xa40] sm:$0xff] }
 0x2fb   :  { %1512 = vmatpush.msrb.mxu1 %v2570_v44  ;;  %v2620_v41 = vld [vmem:[%s5122_s4 + $0x998] sm:$0xff] }
 0x2fc   :  { %1896 = vmatpush.msra.mxu2 %v3335_v18  ;;  %v2597_v18 = vld [vmem:[%s5122_s4 + $0x8f0] sm:$0xff]  ;;  %1561 = vmatpush.msrb.mxu3 %v2598_v46  ;;  %v2641_v44 = vld [vmem:[%s5122_s4 + $0xa38] sm:$0xff] }
 0x2fd   :  { %1513 = vmatpush.msrb.mxu1 %v2569_v38  ;;  %v2619_v46 = vld [vmem:[%s5122_s4 + $0x990] sm:$0xff] }
 0x2fe   :  { %1897 = vmatpush.msra.mxu2 %v3340_v13  ;;  %v2568_v13 = vld [vmem:[%s5122_s4 + $0x810] sm:$0xff]  ;;  %1562 = vmatpush.msrb.mxu3 %v2597_v18  ;;  %v2618_v18 = vld [vmem:[%s5122_s4 + $0x988] sm:$0xff] }
 0x2ff   :  { %1514 = vmatpush.msrb.mxu1 %v2568_v13  ;;  %v2640_v38 = vld [vmem:[%s5122_s4 + $0xa30] sm:$0xff]  ;;  %v2617_v13 = vld [vmem:[%s5122_s4 + $0x980] sm:$0xff] }
 0x300   :  { %1898 = vmatpush.msra.mxu2 %v3345_v24  ;;  %v2567_v24 = vld [vmem:[%s5122_s4 + $0x808] sm:$0xff]  ;;  %1563 = vmatpush.msrb.mxu3 %v2596_v40  ;;  %v2638_v40 = vld [vmem:[%s5122_s4 + $0xa20] sm:$0xff] }
 0x301   :  { %1515 = vmatpush.msrb.mxu1 %v2567_v24  ;;  %v2666_v24 = vld [vmem:[%s5122_s4 + $0xaf8] sm:$0xff] }
 0x302   :  { %1899 = vmatpush.msra.mxu2 %v3350_v25  ;;  %v2594_v25 = vld [vmem:[%s5122_s4 + $0x8d8] sm:$0xff]  ;;  %1564 = vmatpush.msrb.mxu3 %v2595_v36 }
 0x303   :  { %1900 = vmatmul.f32.vlgmr.msra.gmra.mxu2 %v2684_v60  ;;  %1516 = vmatpush.msrb.mxu1 %v2566_v53  ;;  %v2639_v60 = vld [vmem:[%s5122_s4 + $0xa28] sm:$0xff]  ;;  %v2637_v36 = vld [vmem:[%s5122_s4 + $0xa18] sm:$0xff]  ;;  %v2665_v53 = vld [vmem:[%s5122_s4 + $0xaf0] sm:$0xff] }
 0x304   :  { %1517 = vmatmul.f32.vlgmr.msrb.gmra.mxu1 %v1481_v56  ;;  %1565 = vmatpush.msrb.mxu3 %v2594_v25  ;;  %v2636_v56 = vld [vmem:[%s5122_s4 + $0xa10] sm:$0xff]  ;;  %v2664_v25 = vld [vmem:[%s5122_s4 + $0xae8] sm:$0xff] }
 0x305   :  { %1621 = vmatpush.msra.mxu1 %v2615_v31  ;;  %v2663_v31 = vld [vmem:[%s5122_s4 + $0xae0] sm:$0xff] }
 0x306   :  { %v1421_v34 = vpop.f32.mrf.mxu2  ;;  %1566 = vmatpush.msrb.mxu3 %v2593_v48  ;;  %v2634_v48 = vld [vmem:[%s5122_s4 + $0xa00] sm:$0xff] }
 0x307   :  { %1457 = vmatmul.f32.vlgmr.msra.gmra.mxu3 %v1421_v34  ;;  %1622 = vmatpush.msra.mxu1 %v2614_v4  ;;  %v2635_v34 = vld [vmem:[%s5122_s4 + $0xa08] sm:$0xff]  ;;  %v1721_v4 = vpop.f32.mrf.mxu0 }
 0x308   :  { %1567 = vmatpush.msrb.mxu3 %v2592_v21  ;;  %v2662_v21 = vld [vmem:[%s5122_s4 + $0xad8] sm:$0xff] }
 0x309   :  { %1623 = vmatpush.msra.mxu1 %v2613_v2 }
 0x30a   :  { %1568 = vmatpush.msrb.mxu3 %v2591_v30  ;;  %v2683_v30 = vld [vmem:[%s5122_s4 + $0xb78] sm:$0xff] }
 0x30b   :  { %1624 = vmatpush.msra.mxu1 %v2612_v43  ;;  %v2661_v43 = vld [vmem:[%s5122_s4 + $0xad0] sm:$0xff] }
 0x30c   :  { %1569 = vmatpush.msrb.mxu3 %v2590_v39  ;;  %v2682_v39 = vld [vmem:[%s5122_s4 + $0xb70] sm:$0xff] }
 0x30d   :  { %1625 = vmatpush.msra.mxu1 %v2611_v9  ;;  %v2660_v9 = vld [vmem:[%s5122_s4 + $0xac8] sm:$0xff] }
 0x30e   :  { %1570 = vmatpush.msrb.mxu3 %v2589_v7  ;;  %v2681_v7 = vld [vmem:[%s5122_s4 + $0xb68] sm:$0xff] }
 0x30f   :  { %1626 = vmatpush.msra.mxu1 %v2610_v8  ;;  %v2659_v8 = vld [vmem:[%s5122_s4 + $0xac0] sm:$0xff] }
 0x310   :  { %1571 = vmatpush.msrb.mxu3 %v2588_v45  ;;  %v2680_v45 = vld [vmem:[%s5122_s4 + $0xb60] sm:$0xff] }
 0x311   :  { %1627 = vmatpush.msra.mxu1 %v2609_v26  ;;  %v2658_v26 = vld [vmem:[%s5122_s4 + $0xab8] sm:$0xff] }
 0x312   :  { %1572 = vmatpush.msrb.mxu3 %v2587_v50  ;;  %v2679_v50 = vld [vmem:[%s5122_s4 + $0xb58] sm:$0xff] }
 0x313   :  { %1628 = vmatpush.msra.mxu1 %v2608_v12  ;;  %v2657_v12 = vld [vmem:[%s5122_s4 + $0xab0] sm:$0xff] }
 0x314   :  { %1573 = vmatpush.msrb.mxu3 %v2586_v6  ;;  %v2678_v6 = vld [vmem:[%s5122_s4 + $0xb50] sm:$0xff] }
 0x315   :  { %1629 = vmatpush.msra.mxu1 %v2607_v35  ;;  %v2656_v35 = vld [vmem:[%s5122_s4 + $0xaa8] sm:$0xff] }
 0x316   :  { %1574 = vmatpush.msrb.mxu3 %v2585_v3  ;;  %v2677_v3 = vld [vmem:[%s5122_s4 + $0xb48] sm:$0xff] }
 0x317   :  { %1630 = vmatpush.msra.mxu1 %v2606_v49  ;;  %v2655_v49 = vld [vmem:[%s5122_s4 + $0xaa0] sm:$0xff] }
 0x318   :  { %1575 = vmatpush.msrb.mxu3 %v2584_v17  ;;  %v2676_v17 = vld [vmem:[%s5122_s4 + $0xb40] sm:$0xff] }
 0x319   :  { %1631 = vmatpush.msra.mxu1 %v2605_v54  ;;  %v2654_v54 = vld [vmem:[%s5122_s4 + $0xa98] sm:$0xff] }
 0x31a   :  { %1576 = vmatpush.msrb.mxu3 %v2583_v61  ;;  %v2675_v61 = vld [vmem:[%s5122_s4 + $0xb38] sm:$0xff] }
 0x31b   :  { %1632 = vmatpush.msra.mxu1 %v2604_v59  ;;  %v2653_v59 = vld [vmem:[%s5122_s4 + $0xa90] sm:$0xff] }
 0x31c   :  { %1681 = vmatpush.msra.mxu3 %v2632_v57  ;;  %v2674_v57 = vld [vmem:[%s5122_s4 + $0xb30] sm:$0xff] }
 0x31d   :  { %1633 = vmatpush.msra.mxu1 %v2603_v19  ;;  %v2652_v19 = vld [vmem:[%s5122_s4 + $0xa88] sm:$0xff] }
 0x31e   :  { %1682 = vmatpush.msra.mxu3 %v2631_v23  ;;  %v2673_v23 = vld [vmem:[%s5122_s4 + $0xb28] sm:$0xff] }
 0x31f   :  { %1634 = vmatpush.msra.mxu1 %v2602_v37  ;;  %v2651_v37 = vld [vmem:[%s5122_s4 + $0xa80] sm:$0xff] }
 0x320   :  { %1683 = vmatpush.msra.mxu3 %v2630_v51  ;;  %v2672_v51 = vld [vmem:[%s5122_s4 + $0xb20] sm:$0xff] }
 0x321   :  { %1635 = vmatpush.msra.mxu1 %v2601_v58  ;;  %v2700_v58 = vld [vmem:[%s5122_s4 + $0xbf8] sm:$0xff] }
 0x322   :  { %1684 = vmatpush.msra.mxu3 %v2629_v0  ;;  %v2671_v0 = vld [vmem:[%s5122_s4 + $0xb18] sm:$0xff] }
 0x323   :  { %1636 = vmatpush.msra.mxu1 %v2600_v55  ;;  %v2699_v55 = vld [vmem:[%s5122_s4 + $0xbf0] sm:$0xff] }
 0x324   :  { %1637 = vmatmul.f32.vlgmr.msra.gmra.mxu1 %v1601_v22  ;;  %1685 = vmatpush.msra.mxu3 %v2628_v62  ;;  %v2670_v22 = vld [vmem:[%s5122_s4 + $0xb10] sm:$0xff]  ;;  %v2698_v62 = vld [vmem:[%s5122_s4 + $0xbe8] sm:$0xff] }
 0x325   :  { %1741 = vmatpush.msrb.mxu1 %v2649_v20  ;;  %v2697_v20 = vld [vmem:[%s5122_s4 + $0xbe0] sm:$0xff] }
 0x326   :  { %v1541_v1 = vpop.f32.mrf.mxu2  ;;  %1686 = vmatpush.msra.mxu3 %v2627_v15  ;;  %v2668_v15 = vld [vmem:[%s5122_s4 + $0xb00] sm:$0xff] }
 0x327   :  { %1577 = vmatmul.f32.vlgmr.msrb.gmra.mxu3 %v1541_v1  ;;  %1742 = vmatpush.msrb.mxu1 %v2648_v32  ;;  %v2669_v1 = vld [vmem:[%s5122_s4 + $0xb08] sm:$0xff] }
 0x328   :  { %1687 = vmatpush.msra.mxu3 %v2626_v11  ;;  %v2696_v11 = vld [vmem:[%s5122_s4 + $0xbd8] sm:$0xff] }
 0x329   :  { %1743 = vmatpush.msrb.mxu1 %v2647_v33 }
 0x32a   :  { %1688 = vmatpush.msra.mxu3 %v2625_v14  ;;  %v2717_v14 = vld [vmem:[%s5122_s4 + $0xc78] sm:$0xff] }
 0x32b   :  { %1744 = vmatpush.msrb.mxu1 %v2646_v47  ;;  %v2695_v47 = vld [vmem:[%s5122_s4 + $0xbd0] sm:$0xff] }
 0x32c   :  { %1689 = vmatpush.msra.mxu3 %v2624_v42  ;;  %v2716_v42 = vld [vmem:[%s5122_s4 + $0xc70] sm:$0xff] }
 0x32d   :  { %1745 = vmatpush.msrb.mxu1 %v2645_v5  ;;  %v2694_v5 = vld [vmem:[%s5122_s4 + $0xbc8] sm:$0xff] }
 0x32e   :  { %1690 = vmatpush.msra.mxu3 %v2623_v16  ;;  %v2715_v16 = vld [vmem:[%s5122_s4 + $0xc68] sm:$0xff] }
 0x32f   :  { %1746 = vmatpush.msrb.mxu1 %v2644_v10  ;;  %v2693_v10 = vld [vmem:[%s5122_s4 + $0xbc0] sm:$0xff] }
 0x330   :  { %1691 = vmatpush.msra.mxu3 %v2622_v63  ;;  %v2714_v63 = vld [vmem:[%s5122_s4 + $0xc60] sm:$0xff] }
 0x331   :  { %1747 = vmatpush.msrb.mxu1 %v2643_v28  ;;  %v2692_v28 = vld [vmem:[%s5122_s4 + $0xbb8] sm:$0xff] }
 0x332   :  { %1692 = vmatpush.msra.mxu3 %v2621_v52  ;;  %v2713_v52 = vld [vmem:[%s5122_s4 + $0xc58] sm:$0xff] }
 0x333   :  { %1748 = vmatpush.msrb.mxu1 %v2642_v29  ;;  %v2691_v29 = vld [vmem:[%s5122_s4 + $0xbb0] sm:$0xff] }
 0x334   :  { %1693 = vmatpush.msra.mxu3 %v2620_v41  ;;  %v2712_v41 = vld [vmem:[%s5122_s4 + $0xc50] sm:$0xff] }
 0x335   :  { %1749 = vmatpush.msrb.mxu1 %v2641_v44  ;;  %v2690_v44 = vld [vmem:[%s5122_s4 + $0xba8] sm:$0xff] }
 0x336   :  { %1694 = vmatpush.msra.mxu3 %v2619_v46  ;;  %v2711_v46 = vld [vmem:[%s5122_s4 + $0xc48] sm:$0xff] }
 0x337   :  { %1750 = vmatpush.msrb.mxu1 %v2640_v38  ;;  %v2689_v38 = vld [vmem:[%s5122_s4 + $0xba0] sm:$0xff] }
 0x338   :  { %1695 = vmatpush.msra.mxu3 %v2618_v18  ;;  %v2710_v18 = vld [vmem:[%s5122_s4 + $0xc40] sm:$0xff] }
 0x339   :  { %1751 = vmatpush.msrb.mxu1 %v2639_v60  ;;  %v2688_v60 = vld [vmem:[%s5122_s4 + $0xb98] sm:$0xff] }
 0x33a   :  { %1696 = vmatpush.msra.mxu3 %v2617_v13  ;;  %v2709_v13 = vld [vmem:[%s5122_s4 + $0xc38] sm:$0xff] }
 0x33b   :  { %1752 = vmatpush.msrb.mxu1 %v2638_v40  ;;  %v2687_v40 = vld [vmem:[%s5122_s4 + $0xb90] sm:$0xff] }
 0x33c   :  { %1801 = vmatpush.msrb.mxu3 %v2666_v24  ;;  %v2708_v24 = vld [vmem:[%s5122_s4 + $0xc30] sm:$0xff] }
 0x33d   :  { %1753 = vmatpush.msrb.mxu1 %v2637_v36  ;;  %v2686_v36 = vld [vmem:[%s5122_s4 + $0xb88] sm:$0xff] }
 0x33e   :  { %1802 = vmatpush.msrb.mxu3 %v2665_v53  ;;  %v2707_v53 = vld [vmem:[%s5122_s4 + $0xc28] sm:$0xff] }
 0x33f   :  { %1754 = vmatpush.msrb.mxu1 %v2636_v56  ;;  %v2685_v56 = vld [vmem:[%s5122_s4 + $0xb80] sm:$0xff] }
 0x340   :  { %1803 = vmatpush.msrb.mxu3 %v2664_v25  ;;  %v2706_v25 = vld [vmem:[%s5122_s4 + $0xc20] sm:$0xff] }
 0x341   :  { %1755 = vmatpush.msrb.mxu1 %v2635_v34  ;;  %v2705_v34 = vld [vmem:[%s5122_s4 + $0xc18] sm:$0xff] }
 0x342   :  { %1804 = vmatpush.msrb.mxu3 %v2663_v31  ;;  %v1841_v32 = vpop.f32.mrf.mxu0  ;;  %v2704_v31 = vld [vmem:[%s5122_s4 + $0xc10] sm:$0xff] }
 0x343   :  { %1756 = vmatpush.msrb.mxu1 %v2634_v48  ;;  %v2703_v48 = vld [vmem:[%s5122_s4 + $0xc08] sm:$0xff] }
 0x344   :  { %1757 = vmatmul.f32.vlgmr.msrb.gmra.mxu1 %v1721_v4  ;;  %1805 = vmatpush.msrb.mxu3 %v2662_v21  ;;  %v2702_v4 = vld [vmem:[%s5122_s4 + $0xc00] sm:$0xff] }
 0x345   :  { %1861 = vmatpush.msra.mxu1 %v2683_v30  ;;  %v619_v30 = vpop.f32.mrf.mxu3 }
 0x346   :  { %v1661_v2 = vpop.f32.mrf.mxu2  ;;  %1806 = vmatpush.msrb.mxu3 %v2661_v43  ;;  %v678_v43 = vpop.f32.mrf.mxu1 }
 0x347   :  { %1697 = vmatmul.f32.vlgmr.msra.gmra.mxu3 %v1661_v2  ;;  %1862 = vmatpush.msra.mxu1 %v2682_v39 }
 0x348   :  { %1807 = vmatpush.msrb.mxu3 %v2660_v9 }
 0x349   :  { %1863 = vmatpush.msra.mxu1 %v2681_v7 }
 0x34a   :  { %1808 = vmatpush.msrb.mxu3 %v2659_v8  ;;  %v1961_v21 = vpop.f32.mrf.mxu0 }
 0x34b   :  { %1864 = vmatpush.msra.mxu1 %v2680_v45 }
 0x34c   :  { %1809 = vmatpush.msrb.mxu3 %v2658_v26 }
 0x34d   :  { %1865 = vmatpush.msra.mxu1 %v2679_v50  ;;  %v738_v39 = vpop.f32.mrf.mxu3  ;;  %v620_v50 = vadd.f32 %v619_v30, %v3854_v27  ;;  %v2141_v30 = vld [vmem:[%s5126_s8 + $0x30] sm:$0xff] }
 0x34e   :  { %1810 = vmatpush.msrb.mxu3 %v2657_v12  ;;  %v798_v9 = vpop.f32.mrf.mxu1 }
 0x34f   :  { %1866 = vmatpush.msra.mxu1 %v2678_v6  ;;  %v681_v12 = vadd.f32 %v678_v43, %v620_v50 }
 0x350   :  { %1811 = vmatpush.msrb.mxu3 %v2656_v35 }
 0x351   :  { %1867 = vmatpush.msra.mxu1 %v2677_v3  ;;  %v741_v6 = vadd.f32 %v738_v39, %v681_v12 }
 0x352   :  { %1812 = vmatpush.msrb.mxu3 %v2655_v49 }
 0x353   :  { %1868 = vmatpush.msra.mxu1 %v2676_v17  ;;  %v801_v49 = vadd.f32 %v798_v9, %v741_v6  ;;  %v2140_v9 = vld [vmem:[%s5126_s8 + $0x28] sm:$0xff] }
 0x354   :  { %1813 = vmatpush.msrb.mxu3 %v2654_v54  ;;  %v2136_v6 = vld [vmem:[%s5126_s8 + $0x8] sm:$0xff] }
 0x355   :  { %1869 = vmatpush.msra.mxu1 %v2675_v61  ;;  %v858_v7 = vpop.f32.mrf.mxu3 }
 0x356   :  { %1814 = vmatpush.msrb.mxu3 %v2653_v59  ;;  %v918_v8 = vpop.f32.mrf.mxu1  ;;  %v861_v17 = vadd.f32 %v858_v7, %v801_v49  ;;  %v2139_v7 = vld [vmem:[%s5126_s8 + $0x20] sm:$0xff] }
 0x357   :  { %1870 = vmatpush.msra.mxu1 %v2674_v57  ;;  %v2111_v49 = vld [vmem:[%s5127_s7] sm:$0xff] }
 0x358   :  { %1815 = vmatpush.msrb.mxu3 %v2652_v19  ;;  %v921_v54 = vadd.f32 %v918_v8, %v861_v17  ;;  %v2138_v8 = vld [vmem:[%s5126_s8 + $0x18] sm:$0xff]  ;;  %v2135_v17 = vld [vmem:[%s5126_s8] sm:$0xff] }
 0x359   :  { %1871 = vmatpush.msra.mxu1 %v2673_v23 }
 0x35a   :  { %1816 = vmatpush.msrb.mxu3 %v2651_v37 }
 0x35b   :  { %1872 = vmatpush.msra.mxu1 %v2672_v51 }
 0x35c   :  { %1921 = vmatpush.msra.mxu3 %v2700_v58 }
 0x35d   :  { %1873 = vmatpush.msra.mxu1 %v2671_v0  ;;  %v978_v45 = vpop.f32.mrf.mxu3 }
 0x35e   :  { %1922 = vmatpush.msra.mxu3 %v2699_v55  ;;  %v1038_v26 = vpop.f32.mrf.mxu1  ;;  %v981_v57 = vadd.f32 %v978_v45, %v921_v54  ;;  %v2137_v45 = vld [vmem:[%s5126_s8 + $0x10] sm:$0xff]  ;;  %v2191_v54 = vld [vmem:[%s5129_s10 + $0x78] sm:$0xff] }
 0x35f   :  { %1874 = vmatpush.msra.mxu1 %v2670_v22 }
 0x360   :  { %1923 = vmatpush.msra.mxu3 %v2698_v62  ;;  %v1041_v19 = vadd.f32 %v1038_v26, %v981_v57  ;;  %v2188_v57 = vld [vmem:[%s5129_s10 + $0x60] sm:$0xff] }
 0x361   :  { %1875 = vmatpush.msra.mxu1 %v2669_v1 }
 0x362   :  { %1924 = vmatpush.msra.mxu3 %v2697_v20 }
 0x363   :  { %1876 = vmatpush.msra.mxu1 %v2668_v15 }
 0x364   :  { %1877 = vmatmul.f32.vlgmr.msra.gmra.mxu1 %v1841_v32  ;;  %1925 = vmatpush.msra.mxu3 %v2696_v11 }
 0x365   :  { %1981 = vmatpush.msrb.mxu1 %v2717_v14  ;;  %v1098_v35 = vpop.f32.mrf.mxu3 }
 0x366   :  { %v1781_v33 = vpop.f32.mrf.mxu2  ;;  %1926 = vmatpush.msra.mxu3 %v2695_v47  ;;  %v1158_v3 = vpop.f32.mrf.mxu1  ;;  %v1101_v23 = vadd.f32 %v1098_v35, %v1041_v19  ;;  %v2187_v19 = vld [vmem:[%s5129_s10 + $0x58] sm:$0xff] }
 0x367   :  { %1817 = vmatmul.f32.vlgmr.msrb.gmra.mxu3 %v1781_v33  ;;  %1982 = vmatpush.msrb.mxu1 %v2716_v42 }
 0x368   :  { %1927 = vmatpush.msra.mxu3 %v2694_v5  ;;  %v1161_v58 = vadd.f32 %v1158_v3, %v1101_v23  ;;  %v2186_v23 = vld [vmem:[%s5129_s10 + $0x50] sm:$0xff] }
 0x369   :  { %1983 = vmatpush.msrb.mxu1 %v2715_v16 }
 0x36a   :  { %1928 = vmatpush.msra.mxu3 %v2693_v10 }
 0x36b   :  { %1984 = vmatpush.msrb.mxu1 %v2714_v63 }
 0x36c   :  { %1929 = vmatpush.msra.mxu3 %v2692_v28 }
 0x36d   :  { %1985 = vmatpush.msrb.mxu1 %v2713_v52  ;;  %v1218_v61 = vpop.f32.mrf.mxu3 }
 0x36e   :  { %1930 = vmatpush.msra.mxu3 %v2691_v29  ;;  %v1278_v59 = vpop.f32.mrf.mxu1  ;;  %v1221_v0 = vadd.f32 %v1218_v61, %v1161_v58  ;;  %v2190_v61 = vld [vmem:[%s5129_s10 + $0x70] sm:$0xff]  ;;  %v2183_v58 = vld [vmem:[%s5129_s10 + $0x38] sm:$0xff] }
 0x36f   :  { %1986 = vmatpush.msrb.mxu1 %v2712_v41 }
 0x370   :  { %1931 = vmatpush.msra.mxu3 %v2690_v44  ;;  %v1281_v62 = vadd.f32 %v1278_v59, %v1221_v0  ;;  %v2189_v59 = vld [vmem:[%s5129_s10 + $0x68] sm:$0xff]  ;;  %v2182_v0 = vld [vmem:[%s5129_s10 + $0x30] sm:$0xff] }
 0x371   :  { %1987 = vmatpush.msrb.mxu1 %v2711_v46  ;;  %v2727_v46 = vld [vmem:[%s5124_s5] ss:$0 sm:$0xff] }
 0x372   :  { %1932 = vmatpush.msra.mxu3 %v2689_v38 }
 0x373   :  { %1988 = vmatpush.msrb.mxu1 %v2710_v18 }
 0x374   :  { %1933 = vmatpush.msra.mxu3 %v2688_v60 }
 0x375   :  { %1989 = vmatpush.msrb.mxu1 %v2709_v13  ;;  %v1338_v37 = vpop.f32.mrf.mxu3  ;;  %v2008_v13 = vld [vmem:[%s5125_s6] sm:$0xff] }
 0x376   :  { %1934 = vmatpush.msra.mxu3 %v2687_v40  ;;  %v1398_v51 = vpop.f32.mrf.mxu1  ;;  %v1341_v27 = vadd.f32 %v1338_v37, %v1281_v62  ;;  %v2719_v40 = vld [vmem:[%s5125_s6 + $0x8] sm:$0xff]  ;;  %v2179_v62 = vld [vmem:[%s5129_s10 + $0x18] sm:$0xff] }
 0x377   :  { %1990 = vmatpush.msrb.mxu1 %v2708_v24  ;;  %v2721_v24 = vld [vmem:[%s5125_s6 + $0x10] sm:$0xff]  ;;  %v2185_v37 = vld [vmem:[%s5129_s10 + $0x48] sm:$0xff] }
 0x378   :  { %1935 = vmatpush.msra.mxu3 %v2686_v36  ;;  %v1401_v1 = vadd.f32 %v1398_v51, %v1341_v27  ;;  %v2723_v36 = vld [vmem:[%s5125_s6 + $0x18] sm:$0xff]  ;;  %v2184_v51 = vld [vmem:[%s5129_s10 + $0x40] sm:$0xff] }
 0x379   :  { %1991 = vmatpush.msrb.mxu1 %v2707_v53  ;;  %v2150_v53 = vld [vmem:[%s5126_s8 + $0x78] sm:$0xff] }
 0x37a   :  { %1936 = vmatpush.msra.mxu3 %v2685_v56  ;;  %v2149_v56 = vld [vmem:[%s5126_s8 + $0x70] sm:$0xff] }
 0x37b   :  { %1992 = vmatpush.msrb.mxu1 %v2706_v25  ;;  %v2148_v25 = vld [vmem:[%s5126_s8 + $0x68] sm:$0xff] }
 0x37d   :  { %1993 = vmatpush.msrb.mxu1 %v2705_v34  ;;  %v2147_v34 = vld [vmem:[%s5126_s8 + $0x60] sm:$0xff] }
 0x37f   :  { %1994 = vmatpush.msrb.mxu1 %v2704_v31  ;;  %v2146_v31 = vld [vmem:[%s5126_s8 + $0x58] sm:$0xff] }
 0x381   :  { %1995 = vmatpush.msrb.mxu1 %v2703_v48  ;;  %v1518_v22 = vpop.f32.mrf.mxu1  ;;  %v2145_v48 = vld [vmem:[%s5126_s8 + $0x50] sm:$0xff] }
 0x383   :  { %1996 = vmatpush.msrb.mxu1 %v2702_v4  ;;  %v2144_v4 = vld [vmem:[%s5126_s8 + $0x48] sm:$0xff] }
 0x384   :  { %1997 = vmatmul.f32.vlgmr.msrb.gmra.mxu1 %v1961_v21  ;;  %v2143_v21 = vld [vmem:[%s5126_s8 + $0x40] sm:$0xff] }
 0x386   :  { %v1901_v2 = vpop.f32.mrf.mxu2 }
 0x387   :  { %1937 = vmatmul.f32.vlgmr.msra.gmra.mxu3 %v1901_v2  ;;  %v2142_v2 = vld [vmem:[%s5126_s8 + $0x38] sm:$0xff] }
 0x38a   :  { %v1458_v55 = vpop.f32.mrf.mxu3 }
 0x38b   :  { %v1461_v32 = vadd.f32 %v1458_v55, %v1401_v1  ;;  %v2181_v55 = vld [vmem:[%s5129_s10 + $0x28] sm:$0xff]  ;;  %v2178_v1 = vld [vmem:[%s5129_s10 + $0x10] sm:$0xff] }
 0x38d   :  { %v1521_v11 = vadd.f32 %v1518_v22, %v1461_v32  ;;  %v2180_v22 = vld [vmem:[%s5129_s10 + $0x20] sm:$0xff]  ;;  %v2232_v32 = vld [vmem:[%s5131_s12 + $0x78] sm:$0xff] }
 0x38e   :  { %2237 = vmatpush.msra.mxu0 %v2232_v32 }
 0x3a1   :  { %v1638_v15 = vpop.f32.mrf.mxu1 }
 0x3aa   :  { %v1578_v20 = vpop.f32.mrf.mxu3 }
 0x3ab   :  { %v1581_v33 = vadd.f32 %v1578_v20, %v1521_v11  ;;  %v2177_v20 = vld [vmem:[%s5129_s10 + $0x8] sm:$0xff]  ;;  %v2231_v11 = vld [vmem:[%s5131_s12 + $0x70] sm:$0xff] }
 0x3ac   :  { %2238 = vmatpush.msra.mxu0 %v2231_v11 }
 0x3ad   :  { %v1641_v42 = vadd.f32 %v1638_v15, %v1581_v33  ;;  %v2176_v15 = vld [vmem:[%s5129_s10] sm:$0xff]  ;;  %v2230_v33 = vld [vmem:[%s5131_s12 + $0x68] sm:$0xff] }
 0x3ae   :  { %2239 = vmatpush.msra.mxu0 %v2230_v33 }
 0x3c1   :  { %v1758_v47 = vpop.f32.mrf.mxu1 }
 0x3ca   :  { %v1698_v14 = vpop.f32.mrf.mxu3 }
 0x3cb   :  { %v1701_v5 = vadd.f32 %v1698_v14, %v1641_v42  ;;  %v2229_v14 = vld [vmem:[%s5131_s12 + $0x60] sm:$0xff]  ;;  %v2227_v42 = vld [vmem:[%s5131_s12 + $0x50] sm:$0xff] }
 0x3cc   :  { %2240 = vmatpush.msra.mxu0 %v2229_v14 }
 0x3cd   :  { %v1761_v63 = vadd.f32 %v1758_v47, %v1701_v5  ;;  %v2228_v47 = vld [vmem:[%s5131_s12 + $0x58] sm:$0xff]  ;;  %v2226_v5 = vld [vmem:[%s5131_s12 + $0x48] sm:$0xff] }
 0x3ce   :  { %2241 = vmatpush.msra.mxu0 %v2228_v47 }
 0x3d0   :  { %2242 = vmatpush.msra.mxu0 %v2227_v42 }
 0x3d2   :  { %2243 = vmatpush.msra.mxu0 %v2226_v5 }
 0x3e1   :  { %v1878_v10 = vpop.f32.mrf.mxu1 }
 0x3ea   :  { %v1818_v16 = vpop.f32.mrf.mxu3 }
 0x3eb   :  { %v1821_v28 = vadd.f32 %v1818_v16, %v1761_v63  ;;  %v2225_v16 = vld [vmem:[%s5131_s12 + $0x40] sm:$0xff]  ;;  %v2223_v63 = vld [vmem:[%s5131_s12 + $0x30] sm:$0xff] }
 0x3ec   :  { %2244 = vmatpush.msra.mxu0 %v2225_v16 }
 0x3ed   :  { %v1881_v52 = vadd.f32 %v1878_v10, %v1821_v28  ;;  %v2224_v10 = vld [vmem:[%s5131_s12 + $0x38] sm:$0xff]  ;;  %v2222_v28 = vld [vmem:[%s5131_s12 + $0x28] sm:$0xff] }
 0x3ee   :  { %2245 = vmatpush.msra.mxu0 %v2224_v10 }
 0x3f0   :  { %2246 = vmatpush.msra.mxu0 %v2223_v63 }
 0x3f2   :  { %2247 = vmatpush.msra.mxu0 %v2222_v28 }
 0x401   :  { %v1998_v41 = vpop.f32.mrf.mxu1 }
 0x40a   :  { %v1938_v29 = vpop.f32.mrf.mxu3 }
 0x40b   :  { %v1941_v44 = vadd.f32 %v1938_v29, %v1881_v52  ;;  %v2221_v52 = vld [vmem:[%s5131_s12 + $0x20] sm:$0xff]  ;;  %v2220_v29 = vld [vmem:[%s5131_s12 + $0x18] sm:$0xff] }
 0x40c   :  { %2248 = vmatpush.msra.mxu0 %v2221_v52 }
 0x40d   :  { %v2001_v38 = vadd.f32 %v1998_v41, %v1941_v44  ;;  %v2728_v41 = vld [vmem:[%s5128_s9] ss:$0 sm:$0xff] }
 0x40e   :  { %2249 = vmatpush.msra.mxu0 %v2220_v29 }
 0x40f   :  { %v2006_v18 = vadd.f32 %v2727_v46, %v2001_v38 }
 0x411   :  { %v2007_v60 = vmax.f32 %v2006_v18, 0.0  ;;  %v2219_v18 = vld [vmem:[%s5131_s12 + $0x10] sm:$0xff] }
 0x412   :  { %2250 = vmatpush.msra.mxu0 %v2219_v18 }
 0x413   :  { %2028 = vmatpush.msrb.mxu2 %v2007_v60  ;;  %2053 = vmatpush.msrb.mxu3 %v2007_v60 }
 0x414   :  { %2718 = vmatmul.msk.f32.vlgmr.msrb.gmra.mxu2 %vm2009_vm0, %v2008_v13  ;;  %2720 = vmatmul.msk.f32.vlgmr.msrb.gmra.mxu3 %vm2009_vm0, %v2719_v40  ;;  %v2217_v13 = vld [vmem:[%s5131_s12] sm:$0xff] }
 0x415   :  { %2079 = vmatpush.msra.mxu2 %v2007_v60  ;;  %2105 = vmatpush.msra.mxu3 %v2007_v60  ;;  %v2218_v60 = vld [vmem:[%s5131_s12 + $0x8] sm:$0xff]  ;;  %v2729_v40 = vld [vmem:[%s5130_s11] ss:$0 sm:$0xff] }
 0x416   :  { %2251 = vmatpush.msra.mxu0 %v2218_v60 }
 0x417   :  { %2155 = vmatpush.msrb.mxu3 %v2150_v53 }
 0x418   :  { %2252 = vmatpush.msra.mxu0 %v2217_v13 }
 0x419   :  { %2156 = vmatpush.msrb.mxu3 %v2149_v56  ;;  %v2730_v56 = vld [vmem:[%s5132_s13] ss:$0 sm:$0xff] }
 0x41b   :  { %2157 = vmatpush.msrb.mxu3 %v2148_v25 }
 0x41c   :  { %2722 = vmatmul.msk.f32.vlgmr.msra.gmra.mxu2 %vm2009_vm0, %v2721_v24  ;;  %2724 = vmatmul.msk.f32.vlgmr.msra.gmra.mxu3 %vm2009_vm0, %v2723_v36 }
 0x41d   :  { %2158 = vmatpush.msrb.mxu3 %v2147_v34 }
 0x41f   :  { %2159 = vmatpush.msrb.mxu3 %v2146_v31 }
 0x421   :  { %2160 = vmatpush.msrb.mxu3 %v2145_v48 }
 0x423   :  { %2161 = vmatpush.msrb.mxu3 %v2144_v4 }
 0x425   :  { %2162 = vmatpush.msrb.mxu3 %v2143_v21 }
 0x427   :  { %2163 = vmatpush.msrb.mxu3 %v2142_v2 }
 0x429   :  { %2164 = vmatpush.msrb.mxu3 %v2141_v30 }
 0x42b   :  { %2165 = vmatpush.msrb.mxu3 %v2140_v9 }
 0x42d   :  { %2166 = vmatpush.msrb.mxu3 %v2139_v7 }
 0x42f   :  { %2167 = vmatpush.msrb.mxu3 %v2138_v8 }
 0x431   :  { %2168 = vmatpush.msrb.mxu3 %v2137_v45 }
 0x433   :  { %2169 = vmatpush.msrb.mxu3 %v2136_v6 }
 0x435   :  { %2170 = vmatpush.msrb.mxu3 %v2135_v17 }
 0x497   :  { %v2030_v43 = vpop.f32.mrf.mxu2  ;;  %v2055_v39 = vpop.f32.mrf.mxu3 }
 0x498   :  { %v2058_v26 = vmax.f32 %v2030_v43, %v2055_v39 }
 0x49f   :  { %v2081_v50 = vpop.f32.mrf.mxu2  ;;  %v2107_v12 = vpop.f32.mrf.mxu3 }
 0x4a0   :  { %v2084_v35 = vmax.f32 %v2058_v26, %v2081_v50 }
 0x4a2   :  { %v2110_v3 = vmax.f32 %v2084_v35, %v2107_v12 }
 0x4a4   :  { %2130 = vmatpush.msrb.mxu2 %v2110_v3 }
 0x4a5   :  { %2725 = vmatmul.msk.f32.vlgmr.msrb.gmra.mxu2 %vm2009_vm0, %v2111_v49 }
 0x4a6   :  { %2196 = vmatpush.msra.mxu2 %v2191_v54 }
 0x4a8   :  { %2197 = vmatpush.msra.mxu2 %v2190_v61 }
 0x4aa   :  { %2198 = vmatpush.msra.mxu2 %v2189_v59 }
 0x4ac   :  { %2199 = vmatpush.msra.mxu2 %v2188_v57 }
 0x4ae   :  { %2200 = vmatpush.msra.mxu2 %v2187_v19 }
 0x4b0   :  { %2201 = vmatpush.msra.mxu2 %v2186_v23 }
 0x4b2   :  { %2202 = vmatpush.msra.mxu2 %v2185_v37 }
 0x4b4   :  { %2203 = vmatpush.msra.mxu2 %v2184_v51 }
 0x4b6   :  { %2204 = vmatpush.msra.mxu2 %v2183_v58 }
 0x4b8   :  { %2205 = vmatpush.msra.mxu2 %v2182_v0 }
 0x4ba   :  { %2206 = vmatpush.msra.mxu2 %v2181_v55 }
 0x4bc   :  { %2207 = vmatpush.msra.mxu2 %v2180_v22 }
 0x4be   :  { %2208 = vmatpush.msra.mxu2 %v2179_v62 }
 0x4c0   :  { %2209 = vmatpush.msra.mxu2 %v2178_v1 }
 0x4c2   :  { %2210 = vmatpush.msra.mxu2 %v2177_v20 }
 0x4c4   :  { %2211 = vmatpush.msra.mxu2 %v2176_v15 }
 0x528   :  { %v2132_v27 = vpop.f32.mrf.mxu2 }
 0x529   :  { %2171 = vmatmul.f32.vlgmr.msrb.gmra.mxu3 %v2132_v27 }
 0x5ac   :  { %v2172_v44 = vpop.f32.mrf.mxu3 }
 0x5ad   :  { %v2173_v46 = vadd.f32 %v2728_v41, %v2172_v44 }
 0x5af   :  { %v2175_v38 = vmax.f32 %v2173_v46, 0.0 }
 0x5b1   :  { %2212 = vmatmul.f32.vlgmr.msra.gmra.mxu2 %v2175_v38 }
 0x634   :  { %v2213_v24 = vpop.f32.mrf.mxu2 }
 0x635   :  { %v2214_v36 = vadd.f32 %v2729_v40, %v2213_v24 }
 0x637   :  { %v2216_v53 = vmax.f32 %v2214_v36, 0.0 }
 0x639   :  { %2253 = vmatmul.f32.vlgmr.msra.gmra.mxu0 %v2216_v53 }
 0x6b6   :  { %v2254_v25 = vpop.f32.mrf.mxu0 }
 0x6b7   :  { %v2255_v34 = vadd.f32 %v2730_v56, %v2254_v25 }
 0x6b9   :  { %2257 = vst [vmem:[%s5133_s14] sm:$0xff] %v2255_v34 }

</bundles_post_ra>
